<compile_context>
chip_gen: v7x
topology: tpu7x:2x2x1
jax: 0.10.0
libtpu: 0.0.40
codegen_flags: <defaults>
</compile_context>

<pallas_src>
import functools

import jax
import jax.numpy as jnp
import numpy as np
from jax.experimental import pallas as pl
from jax.experimental.pallas import tpu as pltpu

LANE = 128


def _rotated_bbox_loss_kernel(*refs, reg_max, use_dfl):
    if use_dfl:
        feat_ref, pd_ref, out_ref = refs
    else:
        feat_ref, out_ref = refs
        pd_ref = None

    eps = jnp.float32(1e-7)
    # Row-indexed ref loads: stream (tile_s, 128) slabs on demand instead of one huge value.
    px = feat_ref[0, :, :]
    py = feat_ref[1, :, :]
    pw = feat_ref[2, :, :]
    ph = feat_ref[3, :, :]
    pcos = feat_ref[4, :, :]
    psin = feat_ref[5, :, :]
    tx = feat_ref[6, :, :]
    ty = feat_ref[7, :, :]
    tw = feat_ref[8, :, :]
    th = feat_ref[9, :, :]
    tcos = feat_ref[10, :, :]
    tsin = feat_ref[11, :, :]
    ax = feat_ref[12, :, :]
    ay = feat_ref[13, :, :]
    w = feat_ref[14, :, :]
    valid = w > 0.0          # robustness: non-fg / padded rows never touch the sums

    # ---- probiou (rotated-box Gaussian IoU) ----
    ap_ = pw * pw * (1.0 / 12.0)
    bp_ = ph * ph * (1.0 / 12.0)
    a1 = ap_ * pcos * pcos + bp_ * psin * psin
    b1 = ap_ * psin * psin + bp_ * pcos * pcos
    c1 = (ap_ - bp_) * pcos * psin
    at_ = tw * tw * (1.0 / 12.0)
    bt_ = th * th * (1.0 / 12.0)
    a2 = at_ * tcos * tcos + bt_ * tsin * tsin
    b2 = at_ * tsin * tsin + bt_ * tcos * tcos
    c2 = (at_ - bt_) * tcos * tsin

    sa, sb, sc = a1 + a2, b1 + b2, c1 + c2
    dx, dy = px - tx, py - ty
    det_sum = sa * sb - sc * sc
    inv1 = pl.reciprocal(det_sum + eps, approx=True)        # EUP slot, off the VALU
    t1 = (sa * dy * dy + sb * dx * dx) * inv1 * 0.25
    t2 = (sc * (tx - px) * (py - ty)) * inv1 * 0.5
    det1 = jnp.maximum(a1 * b1 - c1 * c1, 0.0)
    det2 = jnp.maximum(a2 * b2 - c2 * c2, 0.0)
    # exact divide here (feeds a log); only a few vregs/step
    t3 = jnp.log(det_sum / (4.0 * jnp.sqrt(det1 * det2) + eps) + eps) * 0.5
    bd = jnp.clip(t1 + t2 + t3, eps, 100.0)
    hd = jnp.sqrt(1.0 - jnp.exp(-bd) + eps)
    # iou = 1 - hd, so (1 - iou) * w == hd * w
    iou_row = jnp.sum(jnp.where(valid, hd * w, 0.0), axis=0, keepdims=True)

    # ---- DFL (Distribution Focal Loss), per-bin loop: no (R, tile_s, 128) temporaries ----
    if use_dfl:
        R = reg_max + 1
        hw, hh = tw * 0.5, th * 0.5
        dists = (ax - (tx - hw), ay - (ty - hh), (tx + hw) - ax, (ty + hh) - ay)
        dfl_acc = jnp.zeros_like(w)
        for s in range(4):                                   # l, t, r, b sides
            t = jnp.clip(dists[s], 0.0, reg_max - 0.01)      # (tile_s, 128)
            # pass 1: running max + fused hat-weighted gather
            #   wl*(r==tl) + wr*(r==tl+1) == relu(1 - |r - t|)
            logit = pd_ref[s, 0, :, :].astype(jnp.float32)
            m = logit
            gathered = logit * jnp.maximum(1.0 - t, 0.0)     # hat at r = 0 (t >= 0)
            for r in range(1, R):
                logit = pd_ref[s, r, :, :].astype(jnp.float32)
                m = jnp.maximum(m, logit)
                hat = jnp.maximum(1.0 - jnp.abs(float(r) - t), 0.0)
                gathered = gathered + logit * hat
            # pass 2: exp-sum at the known max (re-reads the VMEM-resident bins)
            sexp = jnp.zeros_like(t)
            for r in range(R):
                sexp = sexp + jnp.exp(pd_ref[s, r, :, :].astype(jnp.float32) - m)
            dfl_acc = dfl_acc + (m + jnp.log(sexp) - gathered)   # lse - gathered
        # the 0.25 mean-over-sides factor is applied in the wrapper
        dfl_row = jnp.sum(jnp.where(valid, dfl_acc * w, 0.0), axis=0, keepdims=True)
    else:
        dfl_row = jnp.zeros_like(iou_row)

    # single packed (2, 128) lane-dense partial-sum block per grid step
    out_ref[...] = jnp.concatenate([iou_row, dfl_row], axis=0)


def rotated_bbox_loss(pred_dist, pred_bboxes, anchor_points, target_bboxes,
                      target_scores, target_scores_sum, fg_mask,
                      reg_max, use_dfl=True, tile_s=128, pd_hbm_dtype=jnp.bfloat16):
    """Pallas implementation of RotatedBboxLoss.forward. Returns (loss_iou, loss_dfl).

    tile_s: anchors per grid step = tile_s * 128 (default 128 -> 16384 anchors/step).
    pd_hbm_dtype: dtype pred_dist is carried in through HBM (bf16 halves the transpose
    and kernel DMA; kernel upcasts to f32 in VMEM).  Pass None to keep the input dtype.
    """
    f32 = jnp.float32
    B, A, _ = pred_bboxes.shape                      # rotated boxes: (cx, cy, w, h, angle)
    R = reg_max + 1
    N = B * A

    S = pl.cdiv(N, LANE)
    if S <= tile_s:
        tile_s = S                                   # single full-extent tile
    else:
        tile_s = max(8, (tile_s // 8) * 8)           # keep the (8, 128) tiling constraint
    S_pad = pl.cdiv(S, tile_s) * tile_s
    n_pad = S_pad * LANE
    G = S_pad // tile_s

    pb = pred_bboxes.astype(f32).reshape(N, 5)
    tb = target_bboxes.astype(f32).reshape(N, 5)
    ap = jnp.broadcast_to(anchor_points.astype(f32)[None], (B, A, 2)).reshape(N, 2)
    # weight = target_scores.sum(-1) * fg_mask precomputed here: the (nc, N) score slab
    # never reaches the kernel and the reduction fuses upstream.
    weight = (jnp.sum(target_scores.astype(f32), axis=-1) * fg_mask.astype(f32)).reshape(N)

    feats = jnp.stack(
        [pb[:, 0], pb[:, 1], pb[:, 2], pb[:, 3], jnp.cos(pb[:, 4]), jnp.sin(pb[:, 4]),
         tb[:, 0], tb[:, 1], tb[:, 2], tb[:, 3], jnp.cos(tb[:, 4]), jnp.sin(tb[:, 4]),
         ap[:, 0], ap[:, 1], weight], axis=0)        # (15, N)

    pad = n_pad - N
    if pad:
        feats = jnp.pad(feats, ((0, 0), (0, pad)))
    feats = feats.reshape(15, S_pad, LANE)           # anchors dense over (sublane, lane)

    in_specs = [pl.BlockSpec((15, tile_s, LANE), lambda i: (0, i, 0))]
    args = [feats]
    if use_dfl:
        pd = pred_dist
        if pd_hbm_dtype is not None and pd.dtype != pd_hbm_dtype:
            pd = pd.astype(pd_hbm_dtype)             # halve the HBM transpose + kernel DMA
        # TODO(synk): in a real pipeline fuse this layout change into the head producing
        # pred_dist instead of materializing the (4, R, N) transpose in HBM.
        pd = pd.reshape(N, 4, R).transpose(1, 2, 0)  # (4, R, N)
        if pad:
            pd = jnp.pad(pd, ((0, 0), (0, 0), (0, pad)))
        pd = pd.reshape(4, R, S_pad, LANE)
        in_specs.append(pl.BlockSpec((4, R, tile_s, LANE), lambda i: (0, 0, i, 0)))
        args.append(pd)

    kernel = functools.partial(_rotated_bbox_loss_kernel, reg_max=reg_max, use_dfl=use_dfl)
    parts = pl.pallas_call(
        kernel,
        out_shape=jax.ShapeDtypeStruct((2, G * LANE), f32),
        grid_spec=pltpu.PrefetchScalarGridSpec(
            num_scalar_prefetch=0,
            grid=(G,),
            in_specs=in_specs,
            out_specs=pl.BlockSpec((2, LANE), lambda i: (0, i)),
        ),
        # Per-tile partial sums -> no carried state -> grid axis is truly parallel
        # (lets Mosaic shard tiles across both TensorCores on v7x).  VMEM budget at
        # tile_s=128 with bf16 pd is ~6 MiB double-buffered; 32 MiB limit is ample on
        # v5e/v6e/v7x and below v7x's 64 MiB physical.
        compiler_params=pltpu.CompilerParams(
            dimension_semantics=("parallel",),
            vmem_limit_bytes=32 * 1024 * 1024,
        ),
    )(*args)

    tss = jnp.asarray(target_scores_sum, f32)
    loss_iou = jnp.sum(parts[0]) / tss
    loss_dfl = 0.25 * jnp.sum(parts[1]) / tss if use_dfl else jnp.float32(0.0)
    return loss_iou, loss_dfl


# ----------------------------- plain-JAX reference -----------------------------
def _probiou_ref(obb1, obb2, eps=1e-7):
    x1, y1 = obb1[..., 0], obb1[..., 1]
    x2, y2 = obb2[..., 0], obb2[..., 1]

    def cov(b):
        a = b[..., 2] ** 2 / 12.0
        bb = b[..., 3] ** 2 / 12.0
        c = b[..., 4]
        cs, sn = jnp.cos(c), jnp.sin(c)
        return a * cs ** 2 + bb * sn ** 2, a * sn ** 2 + bb * cs ** 2, (a - bb) * cs * sn

    a1, b1, c1 = cov(obb1)
    a2, b2, c2 = cov(obb2)
    denom = (a1 + a2) * (b1 + b2) - (c1 + c2) ** 2
    t1 = ((a1 + a2) * (y1 - y2) ** 2 + (b1 + b2) * (x1 - x2) ** 2) / (denom + eps) * 0.25
    t2 = ((c1 + c2) * (x2 - x1) * (y1 - y2)) / (denom + eps) * 0.5
    t3 = jnp.log(denom / (4.0 * jnp.sqrt(jnp.maximum(a1 * b1 - c1 ** 2, 0.0) *
                                         jnp.maximum(a2 * b2 - c2 ** 2, 0.0)) + eps) + eps) * 0.5
    bd = jnp.clip(t1 + t2 + t3, eps, 100.0)
    hd = jnp.sqrt(1.0 - jnp.exp(-bd) + eps)
    return 1.0 - hd


def rotated_bbox_loss_ref(pred_dist, pred_bboxes, anchor_points, target_bboxes,
                          target_scores, target_scores_sum, fg_mask, reg_max, use_dfl):
    mask = fg_mask.astype(jnp.float32)
    weight = jnp.sum(target_scores, -1) * mask
    iou = _probiou_ref(pred_bboxes, target_bboxes)
    loss_iou = jnp.sum((1.0 - iou) * weight) / target_scores_sum
    if use_dfl:
        R = reg_max + 1
        cx, cy, w, h = [target_bboxes[..., i] for i in range(4)]
        x1, y1, x2, y2 = cx - w / 2, cy - h / 2, cx + w / 2, cy + h / 2
        ax, ay = anchor_points[..., 0][None], anchor_points[..., 1][None]
        t = jnp.stack([ax - x1, ay - y1, x2 - ax, y2 - ay], -1)
        t = jnp.clip(t, 0.0, reg_max - 0.01)
        logits = pred_dist.reshape(*pred_dist.shape[:-1], 4, R)
        logp = jax.nn.log_softmax(logits, axis=-1)
        tl = t.astype(jnp.int32)
        wl = tl.astype(jnp.float32) + 1.0 - t
        wr = 1.0 - wl
        ce_l = -jnp.take_along_axis(logp, tl[..., None], axis=-1)[..., 0]
        ce_r = -jnp.take_along_axis(logp, (tl + 1)[..., None], axis=-1)[..., 0]
        dfl = jnp.mean(ce_l * wl + ce_r * wr, axis=-1)
        loss_dfl = jnp.sum(dfl * weight) / target_scores_sum
    else:
        loss_dfl = jnp.float32(0.0)
    return loss_iou, loss_dfl


if __name__ == "__main__":
    key = jax.random.PRNGKey(0)
    B, nc, reg_max = 2, 4, 15           # DFL bins per side: reg_max + 1 = 16
    R = reg_max + 1
    gh = gw = 16
    A = gh * gw                         # 256 anchors

    ys, xs = jnp.meshgrid(jnp.arange(gh, dtype=jnp.float32) + 0.5,
                          jnp.arange(gw, dtype=jnp.float32) + 0.5, indexing="ij")
    anchor_points = jnp.stack([xs.reshape(-1), ys.reshape(-1)], axis=-1)     # (A, 2)

    k1, k2, k3, k4, k5, k6, k7, k8 = jax.random.split(key, 8)
    apb = jnp.broadcast_to(anchor_points[None], (B, A, 2))
    p_wh = jax.random.uniform(k1, (B, A, 2), minval=1.0, maxval=6.0)
    t_wh = jax.random.uniform(k2, (B, A, 2), minval=1.0, maxval=6.0)
    p_ang = jax.random.uniform(k6, (B, A, 1), minval=-0.7, maxval=0.7)
    t_ang = jax.random.uniform(k7, (B, A, 1), minval=-0.7, maxval=0.7)
    p_ctr = apb + jax.random.uniform(k8, (B, A, 2), minval=-0.5, maxval=0.5)
    pred_bboxes = jnp.concatenate([p_ctr, p_wh, p_ang], axis=-1)             # (B, A, 5)
    target_bboxes = jnp.concatenate([apb, t_wh, t_ang], axis=-1)             # (B, A, 5)

    pred_dist = jax.random.normal(k3, (B, A, 4 * R), dtype=jnp.float32)
    target_scores = jax.random.uniform(k4, (B, A, nc), dtype=jnp.float32)
    fg_mask = jax.random.bernoulli(k5, 0.6, (B, A))
    target_scores_sum = jnp.maximum(target_scores.sum(), 1.0)

    loss_iou, loss_dfl = rotated_bbox_loss(pred_dist, pred_bboxes, anchor_points,
                                           target_bboxes, target_scores,
                                           target_scores_sum, fg_mask,
                                           reg_max, use_dfl=True)
    jax.block_until_ready((loss_iou, loss_dfl))

    ref_iou, ref_dfl = rotated_bbox_loss_ref(pred_dist, pred_bboxes, anchor_points,
                                             target_bboxes, target_scores,
                                             target_scores_sum, fg_mask,
                                             reg_max, use_dfl=True)
    # tolerance covers pl.reciprocal(approx=True) on the probiou denom and the bf16
    # HBM carriage of pred_dist logits (both ~1e-3 relative per element).
    assert np.allclose(np.asarray(loss_iou), np.asarray(ref_iou), rtol=1e-2, atol=1e-3), \
        (float(loss_iou), float(ref_iou))
    assert np.allclose(np.asarray(loss_dfl), np.asarray(ref_dfl), rtol=1e-2, atol=1e-3), \
        (float(loss_dfl), float(ref_dfl))
    print("KERNEL_OK")
</pallas_src>

<mosaic_0001>
module attributes {stable_mosaic.version = 11 : i64} {
  func.func @_rotated_bbox_loss_kernel(%arg0: i32, %arg1: memref<15x4x128xf32, #tpu.memory_space<vmem>>, %arg2: memref<4x16x4x128xbf16, #tpu.memory_space<vmem>>, %arg3: memref<2x128xf32, #tpu.memory_space<vmem>>) attributes {dimension_semantics = [#tpu.dimension_semantics<parallel>], iteration_bounds = array<i64: 1>, scalar_prefetch = 0 : i64, scratch_operands = 0 : i64, tpu.core_type = #tpu.core_type<tc>, window_params = [{transform_indices = @transform_0, window_bounds = array<i64: 15, 4, 128>}, {transform_indices = @transform_1, window_bounds = array<i64: 4, 16, 4, 128>}, {transform_indices = @transform_2, window_bounds = array<i64: 2, 128>}]} {
    %c0 = arith.constant 0 : index
    %c0_0 = arith.constant 0 : index
    %c0_1 = arith.constant 0 : index
    %0 = vector.load %arg1[%c0, %c0_0, %c0_1] : memref<15x4x128xf32, #tpu.memory_space<vmem>>, vector<1x4x128xf32>
    %1 = vector.shape_cast %0 : vector<1x4x128xf32> to vector<4x128xf32>
    %c1 = arith.constant 1 : index
    %c0_2 = arith.constant 0 : index
    %c0_3 = arith.constant 0 : index
    %2 = vector.load %arg1[%c1, %c0_2, %c0_3] : memref<15x4x128xf32, #tpu.memory_space<vmem>>, vector<1x4x128xf32>
    %3 = vector.shape_cast %2 : vector<1x4x128xf32> to vector<4x128xf32>
    %c2 = arith.constant 2 : index
    %c0_4 = arith.constant 0 : index
    %c0_5 = arith.constant 0 : index
    %4 = vector.load %arg1[%c2, %c0_4, %c0_5] : memref<15x4x128xf32, #tpu.memory_space<vmem>>, vector<1x4x128xf32>
    %5 = vector.shape_cast %4 : vector<1x4x128xf32> to vector<4x128xf32>
    %c3 = arith.constant 3 : index
    %c0_6 = arith.constant 0 : index
    %c0_7 = arith.constant 0 : index
    %6 = vector.load %arg1[%c3, %c0_6, %c0_7] : memref<15x4x128xf32, #tpu.memory_space<vmem>>, vector<1x4x128xf32>
    %7 = vector.shape_cast %6 : vector<1x4x128xf32> to vector<4x128xf32>
    %c4 = arith.constant 4 : index
    %c0_8 = arith.constant 0 : index
    %c0_9 = arith.constant 0 : index
    %8 = vector.load %arg1[%c4, %c0_8, %c0_9] : memref<15x4x128xf32, #tpu.memory_space<vmem>>, vector<1x4x128xf32>
    %9 = vector.shape_cast %8 : vector<1x4x128xf32> to vector<4x128xf32>
    %c5 = arith.constant 5 : index
    %c0_10 = arith.constant 0 : index
    %c0_11 = arith.constant 0 : index
    %10 = vector.load %arg1[%c5, %c0_10, %c0_11] : memref<15x4x128xf32, #tpu.memory_space<vmem>>, vector<1x4x128xf32>
    %11 = vector.shape_cast %10 : vector<1x4x128xf32> to vector<4x128xf32>
    %c6 = arith.constant 6 : index
    %c0_12 = arith.constant 0 : index
    %c0_13 = arith.constant 0 : index
    %12 = vector.load %arg1[%c6, %c0_12, %c0_13] : memref<15x4x128xf32, #tpu.memory_space<vmem>>, vector<1x4x128xf32>
    %13 = vector.shape_cast %12 : vector<1x4x128xf32> to vector<4x128xf32>
    %c7 = arith.constant 7 : index
    %c0_14 = arith.constant 0 : index
    %c0_15 = arith.constant 0 : index
    %14 = vector.load %arg1[%c7, %c0_14, %c0_15] : memref<15x4x128xf32, #tpu.memory_space<vmem>>, vector<1x4x128xf32>
    %15 = vector.shape_cast %14 : vector<1x4x128xf32> to vector<4x128xf32>
    %c8 = arith.constant 8 : index
    %c0_16 = arith.constant 0 : index
    %c0_17 = arith.constant 0 : index
    %16 = vector.load %arg1[%c8, %c0_16, %c0_17] : memref<15x4x128xf32, #tpu.memory_space<vmem>>, vector<1x4x128xf32>
    %17 = vector.shape_cast %16 : vector<1x4x128xf32> to vector<4x128xf32>
    %c9 = arith.constant 9 : index
    %c0_18 = arith.constant 0 : index
    %c0_19 = arith.constant 0 : index
    %18 = vector.load %arg1[%c9, %c0_18, %c0_19] : memref<15x4x128xf32, #tpu.memory_space<vmem>>, vector<1x4x128xf32>
    %19 = vector.shape_cast %18 : vector<1x4x128xf32> to vector<4x128xf32>
    %c10 = arith.constant 10 : index
    %c0_20 = arith.constant 0 : index
    %c0_21 = arith.constant 0 : index
    %20 = vector.load %arg1[%c10, %c0_20, %c0_21] : memref<15x4x128xf32, #tpu.memory_space<vmem>>, vector<1x4x128xf32>
    %21 = vector.shape_cast %20 : vector<1x4x128xf32> to vector<4x128xf32>
    %c11 = arith.constant 11 : index
    %c0_22 = arith.constant 0 : index
    %c0_23 = arith.constant 0 : index
    %22 = vector.load %arg1[%c11, %c0_22, %c0_23] : memref<15x4x128xf32, #tpu.memory_space<vmem>>, vector<1x4x128xf32>
    %23 = vector.shape_cast %22 : vector<1x4x128xf32> to vector<4x128xf32>
    %c12 = arith.constant 12 : index
    %c0_24 = arith.constant 0 : index
    %c0_25 = arith.constant 0 : index
    %24 = vector.load %arg1[%c12, %c0_24, %c0_25] : memref<15x4x128xf32, #tpu.memory_space<vmem>>, vector<1x4x128xf32>
    %25 = vector.shape_cast %24 : vector<1x4x128xf32> to vector<4x128xf32>
    %c13 = arith.constant 13 : index
    %c0_26 = arith.constant 0 : index
    %c0_27 = arith.constant 0 : index
    %26 = vector.load %arg1[%c13, %c0_26, %c0_27] : memref<15x4x128xf32, #tpu.memory_space<vmem>>, vector<1x4x128xf32>
    %27 = vector.shape_cast %26 : vector<1x4x128xf32> to vector<4x128xf32>
    %c14 = arith.constant 14 : index
    %c0_28 = arith.constant 0 : index
    %c0_29 = arith.constant 0 : index
    %28 = vector.load %arg1[%c14, %c0_28, %c0_29] : memref<15x4x128xf32, #tpu.memory_space<vmem>>, vector<1x4x128xf32>
    %29 = vector.shape_cast %28 : vector<1x4x128xf32> to vector<4x128xf32>
    %cst = arith.constant 0.000000e+00 : f32
    %30 = vector.broadcast %cst : f32 to vector<4x128xf32>
    %31 = arith.cmpf ogt, %29, %30 : vector<4x128xf32>
    %32 = arith.mulf %5, %5 : vector<4x128xf32>
    %cst_30 = arith.constant 0.0833333358 : f32
    %33 = vector.broadcast %cst_30 : f32 to vector<4x128xf32>
    %34 = arith.mulf %32, %33 : vector<4x128xf32>
    %35 = arith.mulf %7, %7 : vector<4x128xf32>
    %cst_31 = arith.constant 0.0833333358 : f32
    %36 = vector.broadcast %cst_31 : f32 to vector<4x128xf32>
    %37 = arith.mulf %35, %36 : vector<4x128xf32>
    %38 = arith.mulf %34, %9 : vector<4x128xf32>
    %39 = arith.mulf %38, %9 : vector<4x128xf32>
    %40 = arith.mulf %37, %11 : vector<4x128xf32>
    %41 = arith.mulf %40, %11 : vector<4x128xf32>
    %42 = arith.addf %39, %41 : vector<4x128xf32>
    %43 = arith.mulf %34, %11 : vector<4x128xf32>
    %44 = arith.mulf %43, %11 : vector<4x128xf32>
    %45 = arith.mulf %37, %9 : vector<4x128xf32>
    %46 = arith.mulf %45, %9 : vector<4x128xf32>
    %47 = arith.addf %44, %46 : vector<4x128xf32>
    %48 = arith.subf %34, %37 : vector<4x128xf32>
    %49 = arith.mulf %48, %9 : vector<4x128xf32>
    %50 = arith.mulf %49, %11 : vector<4x128xf32>
    %51 = arith.mulf %17, %17 : vector<4x128xf32>
    %cst_32 = arith.constant 0.0833333358 : f32
    %52 = vector.broadcast %cst_32 : f32 to vector<4x128xf32>
    %53 = arith.mulf %51, %52 : vector<4x128xf32>
    %54 = arith.mulf %19, %19 : vector<4x128xf32>
    %cst_33 = arith.constant 0.0833333358 : f32
    %55 = vector.broadcast %cst_33 : f32 to vector<4x128xf32>
    %56 = arith.mulf %54, %55 : vector<4x128xf32>
    %57 = arith.mulf %53, %21 : vector<4x128xf32>
    %58 = arith.mulf %57, %21 : vector<4x128xf32>
    %59 = arith.mulf %56, %23 : vector<4x128xf32>
    %60 = arith.mulf %59, %23 : vector<4x128xf32>
    %61 = arith.addf %58, %60 : vector<4x128xf32>
    %62 = arith.mulf %53, %23 : vector<4x128xf32>
    %63 = arith.mulf %62, %23 : vector<4x128xf32>
    %64 = arith.mulf %56, %21 : vector<4x128xf32>
    %65 = arith.mulf %64, %21 : vector<4x128xf32>
    %66 = arith.addf %63, %65 : vector<4x128xf32>
    %67 = arith.subf %53, %56 : vector<4x128xf32>
    %68 = arith.mulf %67, %21 : vector<4x128xf32>
    %69 = arith.mulf %68, %23 : vector<4x128xf32>
    %70 = arith.addf %42, %61 : vector<4x128xf32>
    %71 = arith.addf %47, %66 : vector<4x128xf32>
    %72 = arith.addf %50, %69 : vector<4x128xf32>
    %73 = arith.subf %1, %13 : vector<4x128xf32>
    %74 = arith.subf %3, %15 : vector<4x128xf32>
    %75 = arith.mulf %70, %71 : vector<4x128xf32>
    %76 = arith.mulf %72, %72 : vector<4x128xf32>
    %77 = arith.subf %75, %76 : vector<4x128xf32>
    %cst_34 = arith.constant 1.000000e-07 : f32
    %78 = vector.broadcast %cst_34 : f32 to vector<4x128xf32>
    %79 = arith.addf %77, %78 : vector<4x128xf32>
    %80 = tpu.reciprocal %79 {approx = true} : vector<4x128xf32> -> vector<4x128xf32>
    %81 = arith.mulf %70, %74 : vector<4x128xf32>
    %82 = arith.mulf %81, %74 : vector<4x128xf32>
    %83 = arith.mulf %71, %73 : vector<4x128xf32>
    %84 = arith.mulf %83, %73 : vector<4x128xf32>
    %85 = arith.addf %82, %84 : vector<4x128xf32>
    %86 = arith.mulf %85, %80 : vector<4x128xf32>
    %cst_35 = arith.constant 2.500000e-01 : f32
    %87 = vector.broadcast %cst_35 : f32 to vector<4x128xf32>
    %88 = arith.mulf %86, %87 : vector<4x128xf32>
    %89 = arith.subf %13, %1 : vector<4x128xf32>
    %90 = arith.mulf %72, %89 : vector<4x128xf32>
    %91 = arith.subf %3, %15 : vector<4x128xf32>
    %92 = arith.mulf %90, %91 : vector<4x128xf32>
    %93 = arith.mulf %92, %80 : vector<4x128xf32>
    %cst_36 = arith.constant 5.000000e-01 : f32
    %94 = vector.broadcast %cst_36 : f32 to vector<4x128xf32>
    %95 = arith.mulf %93, %94 : vector<4x128xf32>
    %96 = arith.mulf %42, %47 : vector<4x128xf32>
    %97 = arith.mulf %50, %50 : vector<4x128xf32>
    %98 = arith.subf %96, %97 : vector<4x128xf32>
    %cst_37 = arith.constant 0.000000e+00 : f32
    %99 = vector.broadcast %cst_37 : f32 to vector<4x128xf32>
    %100 = arith.maximumf %98, %99 : vector<4x128xf32>
    %101 = arith.mulf %61, %66 : vector<4x128xf32>
    %102 = arith.mulf %69, %69 : vector<4x128xf32>
    %103 = arith.subf %101, %102 : vector<4x128xf32>
    %cst_38 = arith.constant 0.000000e+00 : f32
    %104 = vector.broadcast %cst_38 : f32 to vector<4x128xf32>
    %105 = arith.maximumf %103, %104 : vector<4x128xf32>
    %106 = arith.mulf %100, %105 : vector<4x128xf32>
    %107 = math.sqrt %106 : vector<4x128xf32>
    %cst_39 = arith.constant 4.000000e+00 : f32
    %108 = vector.broadcast %cst_39 : f32 to vector<4x128xf32>
    %109 = arith.mulf %108, %107 : vector<4x128xf32>
    %cst_40 = arith.constant 1.000000e-07 : f32
    %110 = vector.broadcast %cst_40 : f32 to vector<4x128xf32>
    %111 = arith.addf %109, %110 : vector<4x128xf32>
    %112 = arith.divf %77, %111 : vector<4x128xf32>
    %cst_41 = arith.constant 1.000000e-07 : f32
    %113 = vector.broadcast %cst_41 : f32 to vector<4x128xf32>
    %114 = arith.addf %112, %113 : vector<4x128xf32>
    %115 = math.log %114 : vector<4x128xf32>
    %cst_42 = arith.constant 5.000000e-01 : f32
    %116 = vector.broadcast %cst_42 : f32 to vector<4x128xf32>
    %117 = arith.mulf %115, %116 : vector<4x128xf32>
    %118 = arith.addf %88, %95 : vector<4x128xf32>
    %119 = arith.addf %118, %117 : vector<4x128xf32>
    %cst_43 = arith.constant 1.000000e-07 : f32
    %cst_44 = arith.constant 1.000000e+02 : f32
    %120 = vector.broadcast %cst_43 : f32 to vector<4x128xf32>
    %121 = arith.maximumf %120, %119 : vector<4x128xf32>
    %122 = vector.broadcast %cst_44 : f32 to vector<4x128xf32>
    %123 = arith.minimumf %122, %121 : vector<4x128xf32>
    %cst_45 = arith.constant 0.000000e+00 : f32
    %124 = vector.broadcast %cst_45 : f32 to vector<4x128xf32>
    %125 = arith.subf %124, %123 : vector<4x128xf32>
    %126 = math.exp %125 : vector<4x128xf32>
    %cst_46 = arith.constant 1.000000e+00 : f32
    %127 = vector.broadcast %cst_46 : f32 to vector<4x128xf32>
    %128 = arith.subf %127, %126 : vector<4x128xf32>
    %cst_47 = arith.constant 1.000000e-07 : f32
    %129 = vector.broadcast %cst_47 : f32 to vector<4x128xf32>
    %130 = arith.addf %128, %129 : vector<4x128xf32>
    %131 = math.sqrt %130 : vector<4x128xf32>
    %132 = arith.mulf %131, %29 : vector<4x128xf32>
    %cst_48 = arith.constant 0.000000e+00 : f32
    %133 = vector.broadcast %cst_48 : f32 to vector<4x128xf32>
    %134 = arith.select %31, %132, %133 : vector<4x128xi1>, vector<4x128xf32>
    %cst_49 = arith.constant dense<0.000000e+00> : vector<128xf32>
    %135 = vector.multi_reduction <add>, %134, %cst_49 [0] : vector<4x128xf32> to vector<128xf32>
    %136 = vector.shape_cast %135 : vector<128xf32> to vector<1x128xf32>
    %cst_50 = arith.constant 5.000000e-01 : f32
    %137 = vector.broadcast %cst_50 : f32 to vector<4x128xf32>
    %138 = arith.mulf %17, %137 : vector<4x128xf32>
    %cst_51 = arith.constant 5.000000e-01 : f32
    %139 = vector.broadcast %cst_51 : f32 to vector<4x128xf32>
    %140 = arith.mulf %19, %139 : vector<4x128xf32>
    %141 = arith.subf %13, %138 : vector<4x128xf32>
    %142 = arith.subf %25, %141 : vector<4x128xf32>
    %143 = arith.subf %15, %140 : vector<4x128xf32>
    %144 = arith.subf %27, %143 : vector<4x128xf32>
    %145 = arith.addf %13, %138 : vector<4x128xf32>
    %146 = arith.subf %145, %25 : vector<4x128xf32>
    %147 = arith.addf %15, %140 : vector<4x128xf32>
    %148 = arith.subf %147, %27 : vector<4x128xf32>
    %cst_52 = arith.constant 0.000000e+00 : f32
    %149 = vector.broadcast %cst_52 : f32 to vector<4x128xf32>
    %cst_53 = arith.constant 0.000000e+00 : f32
    %cst_54 = arith.constant 1.499000e+01 : f32
    %150 = vector.broadcast %cst_53 : f32 to vector<4x128xf32>
    %151 = arith.maximumf %150, %142 : vector<4x128xf32>
    %152 = vector.broadcast %cst_54 : f32 to vector<4x128xf32>
    %153 = arith.minimumf %152, %151 : vector<4x128xf32>
    %c0_55 = arith.constant 0 : index
    %c0_56 = arith.constant 0 : index
    %c0_57 = arith.constant 0 : index
    %c0_58 = arith.constant 0 : index
    %154 = vector.load %arg2[%c0_55, %c0_56, %c0_57, %c0_58] : memref<4x16x4x128xbf16, #tpu.memory_space<vmem>>, vector<1x1x4x128xbf16>
    %155 = vector.shape_cast %154 : vector<1x1x4x128xbf16> to vector<4x128xbf16>
    %156 = arith.extf %155 : vector<4x128xbf16> to vector<4x128xf32>
    %cst_59 = arith.constant 1.000000e+00 : f32
    %157 = vector.broadcast %cst_59 : f32 to vector<4x128xf32>
    %158 = arith.subf %157, %153 : vector<4x128xf32>
    %cst_60 = arith.constant 0.000000e+00 : f32
    %159 = vector.broadcast %cst_60 : f32 to vector<4x128xf32>
    %160 = arith.maximumf %158, %159 : vector<4x128xf32>
    %161 = arith.mulf %156, %160 : vector<4x128xf32>
    %c0_61 = arith.constant 0 : index
    %c1_62 = arith.constant 1 : index
    %c0_63 = arith.constant 0 : index
    %c0_64 = arith.constant 0 : index
    %162 = vector.load %arg2[%c0_61, %c1_62, %c0_63, %c0_64] : memref<4x16x4x128xbf16, #tpu.memory_space<vmem>>, vector<1x1x4x128xbf16>
    %163 = vector.shape_cast %162 : vector<1x1x4x128xbf16> to vector<4x128xbf16>
    %164 = arith.extf %163 : vector<4x128xbf16> to vector<4x128xf32>
    %165 = arith.maximumf %156, %164 : vector<4x128xf32>
    %cst_65 = arith.constant 1.000000e+00 : f32
    %166 = vector.broadcast %cst_65 : f32 to vector<4x128xf32>
    %167 = arith.subf %166, %153 : vector<4x128xf32>
    %168 = math.absf %167 : vector<4x128xf32>
    %cst_66 = arith.constant 1.000000e+00 : f32
    %169 = vector.broadcast %cst_66 : f32 to vector<4x128xf32>
    %170 = arith.subf %169, %168 : vector<4x128xf32>
    %cst_67 = arith.constant 0.000000e+00 : f32
    %171 = vector.broadcast %cst_67 : f32 to vector<4x128xf32>
    %172 = arith.maximumf %170, %171 : vector<4x128xf32>
    %173 = arith.mulf %164, %172 : vector<4x128xf32>
    %174 = arith.addf %161, %173 : vector<4x128xf32>
    %c0_68 = arith.constant 0 : index
    %c2_69 = arith.constant 2 : index
    %c0_70 = arith.constant 0 : index
    %c0_71 = arith.constant 0 : index
    %175 = vector.load %arg2[%c0_68, %c2_69, %c0_70, %c0_71] : memref<4x16x4x128xbf16, #tpu.memory_space<vmem>>, vector<1x1x4x128xbf16>
    %176 = vector.shape_cast %175 : vector<1x1x4x128xbf16> to vector<4x128xbf16>
    %177 = arith.extf %176 : vector<4x128xbf16> to vector<4x128xf32>
    %178 = arith.maximumf %165, %177 : vector<4x128xf32>
    %cst_72 = arith.constant 2.000000e+00 : f32
    %179 = vector.broadcast %cst_72 : f32 to vector<4x128xf32>
    %180 = arith.subf %179, %153 : vector<4x128xf32>
    %181 = math.absf %180 : vector<4x128xf32>
    %cst_73 = arith.constant 1.000000e+00 : f32
    %182 = vector.broadcast %cst_73 : f32 to vector<4x128xf32>
    %183 = arith.subf %182, %181 : vector<4x128xf32>
    %cst_74 = arith.constant 0.000000e+00 : f32
    %184 = vector.broadcast %cst_74 : f32 to vector<4x128xf32>
    %185 = arith.maximumf %183, %184 : vector<4x128xf32>
    %186 = arith.mulf %177, %185 : vector<4x128xf32>
    %187 = arith.addf %174, %186 : vector<4x128xf32>
    %c0_75 = arith.constant 0 : index
    %c3_76 = arith.constant 3 : index
    %c0_77 = arith.constant 0 : index
    %c0_78 = arith.constant 0 : index
    %188 = vector.load %arg2[%c0_75, %c3_76, %c0_77, %c0_78] : memref<4x16x4x128xbf16, #tpu.memory_space<vmem>>, vector<1x1x4x128xbf16>
    %189 = vector.shape_cast %188 : vector<1x1x4x128xbf16> to vector<4x128xbf16>
    %190 = arith.extf %189 : vector<4x128xbf16> to vector<4x128xf32>
    %191 = arith.maximumf %178, %190 : vector<4x128xf32>
    %cst_79 = arith.constant 3.000000e+00 : f32
    %192 = vector.broadcast %cst_79 : f32 to vector<4x128xf32>
    %193 = arith.subf %192, %153 : vector<4x128xf32>
    %194 = math.absf %193 : vector<4x128xf32>
    %cst_80 = arith.constant 1.000000e+00 : f32
    %195 = vector.broadcast %cst_80 : f32 to vector<4x128xf32>
    %196 = arith.subf %195, %194 : vector<4x128xf32>
    %cst_81 = arith.constant 0.000000e+00 : f32
    %197 = vector.broadcast %cst_81 : f32 to vector<4x128xf32>
    %198 = arith.maximumf %196, %197 : vector<4x128xf32>
    %199 = arith.mulf %190, %198 : vector<4x128xf32>
    %200 = arith.addf %187, %199 : vector<4x128xf32>
    %c0_82 = arith.constant 0 : index
    %c4_83 = arith.constant 4 : index
    %c0_84 = arith.constant 0 : index
    %c0_85 = arith.constant 0 : index
    %201 = vector.load %arg2[%c0_82, %c4_83, %c0_84, %c0_85] : memref<4x16x4x128xbf16, #tpu.memory_space<vmem>>, vector<1x1x4x128xbf16>
    %202 = vector.shape_cast %201 : vector<1x1x4x128xbf16> to vector<4x128xbf16>
    %203 = arith.extf %202 : vector<4x128xbf16> to vector<4x128xf32>
    %204 = arith.maximumf %191, %203 : vector<4x128xf32>
    %cst_86 = arith.constant 4.000000e+00 : f32
    %205 = vector.broadcast %cst_86 : f32 to vector<4x128xf32>
    %206 = arith.subf %205, %153 : vector<4x128xf32>
    %207 = math.absf %206 : vector<4x128xf32>
    %cst_87 = arith.constant 1.000000e+00 : f32
    %208 = vector.broadcast %cst_87 : f32 to vector<4x128xf32>
    %209 = arith.subf %208, %207 : vector<4x128xf32>
    %cst_88 = arith.constant 0.000000e+00 : f32
    %210 = vector.broadcast %cst_88 : f32 to vector<4x128xf32>
    %211 = arith.maximumf %209, %210 : vector<4x128xf32>
    %212 = arith.mulf %203, %211 : vector<4x128xf32>
    %213 = arith.addf %200, %212 : vector<4x128xf32>
    %c0_89 = arith.constant 0 : index
    %c5_90 = arith.constant 5 : index
    %c0_91 = arith.constant 0 : index
    %c0_92 = arith.constant 0 : index
    %214 = vector.load %arg2[%c0_89, %c5_90, %c0_91, %c0_92] : memref<4x16x4x128xbf16, #tpu.memory_space<vmem>>, vector<1x1x4x128xbf16>
    %215 = vector.shape_cast %214 : vector<1x1x4x128xbf16> to vector<4x128xbf16>
    %216 = arith.extf %215 : vector<4x128xbf16> to vector<4x128xf32>
    %217 = arith.maximumf %204, %216 : vector<4x128xf32>
    %cst_93 = arith.constant 5.000000e+00 : f32
    %218 = vector.broadcast %cst_93 : f32 to vector<4x128xf32>
    %219 = arith.subf %218, %153 : vector<4x128xf32>
    %220 = math.absf %219 : vector<4x128xf32>
    %cst_94 = arith.constant 1.000000e+00 : f32
    %221 = vector.broadcast %cst_94 : f32 to vector<4x128xf32>
    %222 = arith.subf %221, %220 : vector<4x128xf32>
    %cst_95 = arith.constant 0.000000e+00 : f32
    %223 = vector.broadcast %cst_95 : f32 to vector<4x128xf32>
    %224 = arith.maximumf %222, %223 : vector<4x128xf32>
    %225 = arith.mulf %216, %224 : vector<4x128xf32>
    %226 = arith.addf %213, %225 : vector<4x128xf32>
    %c0_96 = arith.constant 0 : index
    %c6_97 = arith.constant 6 : index
    %c0_98 = arith.constant 0 : index
    %c0_99 = arith.constant 0 : index
    %227 = vector.load %arg2[%c0_96, %c6_97, %c0_98, %c0_99] : memref<4x16x4x128xbf16, #tpu.memory_space<vmem>>, vector<1x1x4x128xbf16>
    %228 = vector.shape_cast %227 : vector<1x1x4x128xbf16> to vector<4x128xbf16>
    %229 = arith.extf %228 : vector<4x128xbf16> to vector<4x128xf32>
    %230 = arith.maximumf %217, %229 : vector<4x128xf32>
    %cst_100 = arith.constant 6.000000e+00 : f32
    %231 = vector.broadcast %cst_100 : f32 to vector<4x128xf32>
    %232 = arith.subf %231, %153 : vector<4x128xf32>
    %233 = math.absf %232 : vector<4x128xf32>
    %cst_101 = arith.constant 1.000000e+00 : f32
    %234 = vector.broadcast %cst_101 : f32 to vector<4x128xf32>
    %235 = arith.subf %234, %233 : vector<4x128xf32>
    %cst_102 = arith.constant 0.000000e+00 : f32
    %236 = vector.broadcast %cst_102 : f32 to vector<4x128xf32>
    %237 = arith.maximumf %235, %236 : vector<4x128xf32>
    %238 = arith.mulf %229, %237 : vector<4x128xf32>
    %239 = arith.addf %226, %238 : vector<4x128xf32>
    %c0_103 = arith.constant 0 : index
    %c7_104 = arith.constant 7 : index
    %c0_105 = arith.constant 0 : index
    %c0_106 = arith.constant 0 : index
    %240 = vector.load %arg2[%c0_103, %c7_104, %c0_105, %c0_106] : memref<4x16x4x128xbf16, #tpu.memory_space<vmem>>, vector<1x1x4x128xbf16>
    %241 = vector.shape_cast %240 : vector<1x1x4x128xbf16> to vector<4x128xbf16>
    %242 = arith.extf %241 : vector<4x128xbf16> to vector<4x128xf32>
    %243 = arith.maximumf %230, %242 : vector<4x128xf32>
    %cst_107 = arith.constant 7.000000e+00 : f32
    %244 = vector.broadcast %cst_107 : f32 to vector<4x128xf32>
    %245 = arith.subf %244, %153 : vector<4x128xf32>
    %246 = math.absf %245 : vector<4x128xf32>
    %cst_108 = arith.constant 1.000000e+00 : f32
    %247 = vector.broadcast %cst_108 : f32 to vector<4x128xf32>
    %248 = arith.subf %247, %246 : vector<4x128xf32>
    %cst_109 = arith.constant 0.000000e+00 : f32
    %249 = vector.broadcast %cst_109 : f32 to vector<4x128xf32>
    %250 = arith.maximumf %248, %249 : vector<4x128xf32>
    %251 = arith.mulf %242, %250 : vector<4x128xf32>
    %252 = arith.addf %239, %251 : vector<4x128xf32>
    %c0_110 = arith.constant 0 : index
    %c8_111 = arith.constant 8 : index
    %c0_112 = arith.constant 0 : index
    %c0_113 = arith.constant 0 : index
    %253 = vector.load %arg2[%c0_110, %c8_111, %c0_112, %c0_113] : memref<4x16x4x128xbf16, #tpu.memory_space<vmem>>, vector<1x1x4x128xbf16>
    %254 = vector.shape_cast %253 : vector<1x1x4x128xbf16> to vector<4x128xbf16>
    %255 = arith.extf %254 : vector<4x128xbf16> to vector<4x128xf32>
    %256 = arith.maximumf %243, %255 : vector<4x128xf32>
    %cst_114 = arith.constant 8.000000e+00 : f32
    %257 = vector.broadcast %cst_114 : f32 to vector<4x128xf32>
    %258 = arith.subf %257, %153 : vector<4x128xf32>
    %259 = math.absf %258 : vector<4x128xf32>
    %cst_115 = arith.constant 1.000000e+00 : f32
    %260 = vector.broadcast %cst_115 : f32 to vector<4x128xf32>
    %261 = arith.subf %260, %259 : vector<4x128xf32>
    %cst_116 = arith.constant 0.000000e+00 : f32
    %262 = vector.broadcast %cst_116 : f32 to vector<4x128xf32>
    %263 = arith.maximumf %261, %262 : vector<4x128xf32>
    %264 = arith.mulf %255, %263 : vector<4x128xf32>
    %265 = arith.addf %252, %264 : vector<4x128xf32>
    %c0_117 = arith.constant 0 : index
    %c9_118 = arith.constant 9 : index
    %c0_119 = arith.constant 0 : index
    %c0_120 = arith.constant 0 : index
    %266 = vector.load %arg2[%c0_117, %c9_118, %c0_119, %c0_120] : memref<4x16x4x128xbf16, #tpu.memory_space<vmem>>, vector<1x1x4x128xbf16>
    %267 = vector.shape_cast %266 : vector<1x1x4x128xbf16> to vector<4x128xbf16>
    %268 = arith.extf %267 : vector<4x128xbf16> to vector<4x128xf32>
    %269 = arith.maximumf %256, %268 : vector<4x128xf32>
    %cst_121 = arith.constant 9.000000e+00 : f32
    %270 = vector.broadcast %cst_121 : f32 to vector<4x128xf32>
    %271 = arith.subf %270, %153 : vector<4x128xf32>
    %272 = math.absf %271 : vector<4x128xf32>
    %cst_122 = arith.constant 1.000000e+00 : f32
    %273 = vector.broadcast %cst_122 : f32 to vector<4x128xf32>
    %274 = arith.subf %273, %272 : vector<4x128xf32>
    %cst_123 = arith.constant 0.000000e+00 : f32
    %275 = vector.broadcast %cst_123 : f32 to vector<4x128xf32>
    %276 = arith.maximumf %274, %275 : vector<4x128xf32>
    %277 = arith.mulf %268, %276 : vector<4x128xf32>
    %278 = arith.addf %265, %277 : vector<4x128xf32>
    %c0_124 = arith.constant 0 : index
    %c10_125 = arith.constant 10 : index
    %c0_126 = arith.constant 0 : index
    %c0_127 = arith.constant 0 : index
    %279 = vector.load %arg2[%c0_124, %c10_125, %c0_126, %c0_127] : memref<4x16x4x128xbf16, #tpu.memory_space<vmem>>, vector<1x1x4x128xbf16>
    %280 = vector.shape_cast %279 : vector<1x1x4x128xbf16> to vector<4x128xbf16>
    %281 = arith.extf %280 : vector<4x128xbf16> to vector<4x128xf32>
    %282 = arith.maximumf %269, %281 : vector<4x128xf32>
    %cst_128 = arith.constant 1.000000e+01 : f32
    %283 = vector.broadcast %cst_128 : f32 to vector<4x128xf32>
    %284 = arith.subf %283, %153 : vector<4x128xf32>
    %285 = math.absf %284 : vector<4x128xf32>
    %cst_129 = arith.constant 1.000000e+00 : f32
    %286 = vector.broadcast %cst_129 : f32 to vector<4x128xf32>
    %287 = arith.subf %286, %285 : vector<4x128xf32>
    %cst_130 = arith.constant 0.000000e+00 : f32
    %288 = vector.broadcast %cst_130 : f32 to vector<4x128xf32>
    %289 = arith.maximumf %287, %288 : vector<4x128xf32>
    %290 = arith.mulf %281, %289 : vector<4x128xf32>
    %291 = arith.addf %278, %290 : vector<4x128xf32>
    %c0_131 = arith.constant 0 : index
    %c11_132 = arith.constant 11 : index
    %c0_133 = arith.constant 0 : index
    %c0_134 = arith.constant 0 : index
    %292 = vector.load %arg2[%c0_131, %c11_132, %c0_133, %c0_134] : memref<4x16x4x128xbf16, #tpu.memory_space<vmem>>, vector<1x1x4x128xbf16>
    %293 = vector.shape_cast %292 : vector<1x1x4x128xbf16> to vector<4x128xbf16>
    %294 = arith.extf %293 : vector<4x128xbf16> to vector<4x128xf32>
    %295 = arith.maximumf %282, %294 : vector<4x128xf32>
    %cst_135 = arith.constant 1.100000e+01 : f32
    %296 = vector.broadcast %cst_135 : f32 to vector<4x128xf32>
    %297 = arith.subf %296, %153 : vector<4x128xf32>
    %298 = math.absf %297 : vector<4x128xf32>
    %cst_136 = arith.constant 1.000000e+00 : f32
    %299 = vector.broadcast %cst_136 : f32 to vector<4x128xf32>
    %300 = arith.subf %299, %298 : vector<4x128xf32>
    %cst_137 = arith.constant 0.000000e+00 : f32
    %301 = vector.broadcast %cst_137 : f32 to vector<4x128xf32>
    %302 = arith.maximumf %300, %301 : vector<4x128xf32>
    %303 = arith.mulf %294, %302 : vector<4x128xf32>
    %304 = arith.addf %291, %303 : vector<4x128xf32>
    %c0_138 = arith.constant 0 : index
    %c12_139 = arith.constant 12 : index
    %c0_140 = arith.constant 0 : index
    %c0_141 = arith.constant 0 : index
    %305 = vector.load %arg2[%c0_138, %c12_139, %c0_140, %c0_141] : memref<4x16x4x128xbf16, #tpu.memory_space<vmem>>, vector<1x1x4x128xbf16>
    %306 = vector.shape_cast %305 : vector<1x1x4x128xbf16> to vector<4x128xbf16>
    %307 = arith.extf %306 : vector<4x128xbf16> to vector<4x128xf32>
    %308 = arith.maximumf %295, %307 : vector<4x128xf32>
    %cst_142 = arith.constant 1.200000e+01 : f32
    %309 = vector.broadcast %cst_142 : f32 to vector<4x128xf32>
    %310 = arith.subf %309, %153 : vector<4x128xf32>
    %311 = math.absf %310 : vector<4x128xf32>
    %cst_143 = arith.constant 1.000000e+00 : f32
    %312 = vector.broadcast %cst_143 : f32 to vector<4x128xf32>
    %313 = arith.subf %312, %311 : vector<4x128xf32>
    %cst_144 = arith.constant 0.000000e+00 : f32
    %314 = vector.broadcast %cst_144 : f32 to vector<4x128xf32>
    %315 = arith.maximumf %313, %314 : vector<4x128xf32>
    %316 = arith.mulf %307, %315 : vector<4x128xf32>
    %317 = arith.addf %304, %316 : vector<4x128xf32>
    %c0_145 = arith.constant 0 : index
    %c13_146 = arith.constant 13 : index
    %c0_147 = arith.constant 0 : index
    %c0_148 = arith.constant 0 : index
    %318 = vector.load %arg2[%c0_145, %c13_146, %c0_147, %c0_148] : memref<4x16x4x128xbf16, #tpu.memory_space<vmem>>, vector<1x1x4x128xbf16>
    %319 = vector.shape_cast %318 : vector<1x1x4x128xbf16> to vector<4x128xbf16>
    %320 = arith.extf %319 : vector<4x128xbf16> to vector<4x128xf32>
    %321 = arith.maximumf %308, %320 : vector<4x128xf32>
    %cst_149 = arith.constant 1.300000e+01 : f32
    %322 = vector.broadcast %cst_149 : f32 to vector<4x128xf32>
    %323 = arith.subf %322, %153 : vector<4x128xf32>
    %324 = math.absf %323 : vector<4x128xf32>
    %cst_150 = arith.constant 1.000000e+00 : f32
    %325 = vector.broadcast %cst_150 : f32 to vector<4x128xf32>
    %326 = arith.subf %325, %324 : vector<4x128xf32>
    %cst_151 = arith.constant 0.000000e+00 : f32
    %327 = vector.broadcast %cst_151 : f32 to vector<4x128xf32>
    %328 = arith.maximumf %326, %327 : vector<4x128xf32>
    %329 = arith.mulf %320, %328 : vector<4x128xf32>
    %330 = arith.addf %317, %329 : vector<4x128xf32>
    %c0_152 = arith.constant 0 : index
    %c14_153 = arith.constant 14 : index
    %c0_154 = arith.constant 0 : index
    %c0_155 = arith.constant 0 : index
    %331 = vector.load %arg2[%c0_152, %c14_153, %c0_154, %c0_155] : memref<4x16x4x128xbf16, #tpu.memory_space<vmem>>, vector<1x1x4x128xbf16>
    %332 = vector.shape_cast %331 : vector<1x1x4x128xbf16> to vector<4x128xbf16>
    %333 = arith.extf %332 : vector<4x128xbf16> to vector<4x128xf32>
    %334 = arith.maximumf %321, %333 : vector<4x128xf32>
    %cst_156 = arith.constant 1.400000e+01 : f32
    %335 = vector.broadcast %cst_156 : f32 to vector<4x128xf32>
    %336 = arith.subf %335, %153 : vector<4x128xf32>
    %337 = math.absf %336 : vector<4x128xf32>
    %cst_157 = arith.constant 1.000000e+00 : f32
    %338 = vector.broadcast %cst_157 : f32 to vector<4x128xf32>
    %339 = arith.subf %338, %337 : vector<4x128xf32>
    %cst_158 = arith.constant 0.000000e+00 : f32
    %340 = vector.broadcast %cst_158 : f32 to vector<4x128xf32>
    %341 = arith.maximumf %339, %340 : vector<4x128xf32>
    %342 = arith.mulf %333, %341 : vector<4x128xf32>
    %343 = arith.addf %330, %342 : vector<4x128xf32>
    %c0_159 = arith.constant 0 : index
    %c15 = arith.constant 15 : index
    %c0_160 = arith.constant 0 : index
    %c0_161 = arith.constant 0 : index
    %344 = vector.load %arg2[%c0_159, %c15, %c0_160, %c0_161] : memref<4x16x4x128xbf16, #tpu.memory_space<vmem>>, vector<1x1x4x128xbf16>
    %345 = vector.shape_cast %344 : vector<1x1x4x128xbf16> to vector<4x128xbf16>
    %346 = arith.extf %345 : vector<4x128xbf16> to vector<4x128xf32>
    %347 = arith.maximumf %334, %346 : vector<4x128xf32>
    %cst_162 = arith.constant 1.500000e+01 : f32
    %348 = vector.broadcast %cst_162 : f32 to vector<4x128xf32>
    %349 = arith.subf %348, %153 : vector<4x128xf32>
    %350 = math.absf %349 : vector<4x128xf32>
    %cst_163 = arith.constant 1.000000e+00 : f32
    %351 = vector.broadcast %cst_163 : f32 to vector<4x128xf32>
    %352 = arith.subf %351, %350 : vector<4x128xf32>
    %cst_164 = arith.constant 0.000000e+00 : f32
    %353 = vector.broadcast %cst_164 : f32 to vector<4x128xf32>
    %354 = arith.maximumf %352, %353 : vector<4x128xf32>
    %355 = arith.mulf %346, %354 : vector<4x128xf32>
    %356 = arith.addf %343, %355 : vector<4x128xf32>
    %cst_165 = arith.constant 0.000000e+00 : f32
    %357 = vector.broadcast %cst_165 : f32 to vector<4x128xf32>
    %c0_166 = arith.constant 0 : index
    %c0_167 = arith.constant 0 : index
    %c0_168 = arith.constant 0 : index
    %c0_169 = arith.constant 0 : index
    %358 = vector.load %arg2[%c0_166, %c0_167, %c0_168, %c0_169] : memref<4x16x4x128xbf16, #tpu.memory_space<vmem>>, vector<1x1x4x128xbf16>
    %359 = vector.shape_cast %358 : vector<1x1x4x128xbf16> to vector<4x128xbf16>
    %360 = arith.extf %359 : vector<4x128xbf16> to vector<4x128xf32>
    %361 = arith.subf %360, %347 : vector<4x128xf32>
    %362 = math.exp %361 : vector<4x128xf32>
    %363 = arith.addf %357, %362 : vector<4x128xf32>
    %c0_170 = arith.constant 0 : index
    %c1_171 = arith.constant 1 : index
    %c0_172 = arith.constant 0 : index
    %c0_173 = arith.constant 0 : index
    %364 = vector.load %arg2[%c0_170, %c1_171, %c0_172, %c0_173] : memref<4x16x4x128xbf16, #tpu.memory_space<vmem>>, vector<1x1x4x128xbf16>
    %365 = vector.shape_cast %364 : vector<1x1x4x128xbf16> to vector<4x128xbf16>
    %366 = arith.extf %365 : vector<4x128xbf16> to vector<4x128xf32>
    %367 = arith.subf %366, %347 : vector<4x128xf32>
    %368 = math.exp %367 : vector<4x128xf32>
    %369 = arith.addf %363, %368 : vector<4x128xf32>
    %c0_174 = arith.constant 0 : index
    %c2_175 = arith.constant 2 : index
    %c0_176 = arith.constant 0 : index
    %c0_177 = arith.constant 0 : index
    %370 = vector.load %arg2[%c0_174, %c2_175, %c0_176, %c0_177] : memref<4x16x4x128xbf16, #tpu.memory_space<vmem>>, vector<1x1x4x128xbf16>
    %371 = vector.shape_cast %370 : vector<1x1x4x128xbf16> to vector<4x128xbf16>
    %372 = arith.extf %371 : vector<4x128xbf16> to vector<4x128xf32>
    %373 = arith.subf %372, %347 : vector<4x128xf32>
    %374 = math.exp %373 : vector<4x128xf32>
    %375 = arith.addf %369, %374 : vector<4x128xf32>
    %c0_178 = arith.constant 0 : index
    %c3_179 = arith.constant 3 : index
    %c0_180 = arith.constant 0 : index
    %c0_181 = arith.constant 0 : index
    %376 = vector.load %arg2[%c0_178, %c3_179, %c0_180, %c0_181] : memref<4x16x4x128xbf16, #tpu.memory_space<vmem>>, vector<1x1x4x128xbf16>
    %377 = vector.shape_cast %376 : vector<1x1x4x128xbf16> to vector<4x128xbf16>
    %378 = arith.extf %377 : vector<4x128xbf16> to vector<4x128xf32>
    %379 = arith.subf %378, %347 : vector<4x128xf32>
    %380 = math.exp %379 : vector<4x128xf32>
    %381 = arith.addf %375, %380 : vector<4x128xf32>
    %c0_182 = arith.constant 0 : index
    %c4_183 = arith.constant 4 : index
    %c0_184 = arith.constant 0 : index
    %c0_185 = arith.constant 0 : index
    %382 = vector.load %arg2[%c0_182, %c4_183, %c0_184, %c0_185] : memref<4x16x4x128xbf16, #tpu.memory_space<vmem>>, vector<1x1x4x128xbf16>
    %383 = vector.shape_cast %382 : vector<1x1x4x128xbf16> to vector<4x128xbf16>
    %384 = arith.extf %383 : vector<4x128xbf16> to vector<4x128xf32>
    %385 = arith.subf %384, %347 : vector<4x128xf32>
    %386 = math.exp %385 : vector<4x128xf32>
    %387 = arith.addf %381, %386 : vector<4x128xf32>
    %c0_186 = arith.constant 0 : index
    %c5_187 = arith.constant 5 : index
    %c0_188 = arith.constant 0 : index
    %c0_189 = arith.constant 0 : index
    %388 = vector.load %arg2[%c0_186, %c5_187, %c0_188, %c0_189] : memref<4x16x4x128xbf16, #tpu.memory_space<vmem>>, vector<1x1x4x128xbf16>
    %389 = vector.shape_cast %388 : vector<1x1x4x128xbf16> to vector<4x128xbf16>
    %390 = arith.extf %389 : vector<4x128xbf16> to vector<4x128xf32>
    %391 = arith.subf %390, %347 : vector<4x128xf32>
    %392 = math.exp %391 : vector<4x128xf32>
    %393 = arith.addf %387, %392 : vector<4x128xf32>
    %c0_190 = arith.constant 0 : index
    %c6_191 = arith.constant 6 : index
    %c0_192 = arith.constant 0 : index
    %c0_193 = arith.constant 0 : index
    %394 = vector.load %arg2[%c0_190, %c6_191, %c0_192, %c0_193] : memref<4x16x4x128xbf16, #tpu.memory_space<vmem>>, vector<1x1x4x128xbf16>
    %395 = vector.shape_cast %394 : vector<1x1x4x128xbf16> to vector<4x128xbf16>
    %396 = arith.extf %395 : vector<4x128xbf16> to vector<4x128xf32>
    %397 = arith.subf %396, %347 : vector<4x128xf32>
    %398 = math.exp %397 : vector<4x128xf32>
    %399 = arith.addf %393, %398 : vector<4x128xf32>
    %c0_194 = arith.constant 0 : index
    %c7_195 = arith.constant 7 : index
    %c0_196 = arith.constant 0 : index
    %c0_197 = arith.constant 0 : index
    %400 = vector.load %arg2[%c0_194, %c7_195, %c0_196, %c0_197] : memref<4x16x4x128xbf16, #tpu.memory_space<vmem>>, vector<1x1x4x128xbf16>
    %401 = vector.shape_cast %400 : vector<1x1x4x128xbf16> to vector<4x128xbf16>
    %402 = arith.extf %401 : vector<4x128xbf16> to vector<4x128xf32>
    %403 = arith.subf %402, %347 : vector<4x128xf32>
    %404 = math.exp %403 : vector<4x128xf32>
    %405 = arith.addf %399, %404 : vector<4x128xf32>
    %c0_198 = arith.constant 0 : index
    %c8_199 = arith.constant 8 : index
    %c0_200 = arith.constant 0 : index
    %c0_201 = arith.constant 0 : index
    %406 = vector.load %arg2[%c0_198, %c8_199, %c0_200, %c0_201] : memref<4x16x4x128xbf16, #tpu.memory_space<vmem>>, vector<1x1x4x128xbf16>
    %407 = vector.shape_cast %406 : vector<1x1x4x128xbf16> to vector<4x128xbf16>
    %408 = arith.extf %407 : vector<4x128xbf16> to vector<4x128xf32>
    %409 = arith.subf %408, %347 : vector<4x128xf32>
    %410 = math.exp %409 : vector<4x128xf32>
    %411 = arith.addf %405, %410 : vector<4x128xf32>
    %c0_202 = arith.constant 0 : index
    %c9_203 = arith.constant 9 : index
    %c0_204 = arith.constant 0 : index
    %c0_205 = arith.constant 0 : index
    %412 = vector.load %arg2[%c0_202, %c9_203, %c0_204, %c0_205] : memref<4x16x4x128xbf16, #tpu.memory_space<vmem>>, vector<1x1x4x128xbf16>
    %413 = vector.shape_cast %412 : vector<1x1x4x128xbf16> to vector<4x128xbf16>
    %414 = arith.extf %413 : vector<4x128xbf16> to vector<4x128xf32>
    %415 = arith.subf %414, %347 : vector<4x128xf32>
    %416 = math.exp %415 : vector<4x128xf32>
    %417 = arith.addf %411, %416 : vector<4x128xf32>
    %c0_206 = arith.constant 0 : index
    %c10_207 = arith.constant 10 : index
    %c0_208 = arith.constant 0 : index
    %c0_209 = arith.constant 0 : index
    %418 = vector.load %arg2[%c0_206, %c10_207, %c0_208, %c0_209] : memref<4x16x4x128xbf16, #tpu.memory_space<vmem>>, vector<1x1x4x128xbf16>
    %419 = vector.shape_cast %418 : vector<1x1x4x128xbf16> to vector<4x128xbf16>
    %420 = arith.extf %419 : vector<4x128xbf16> to vector<4x128xf32>
    %421 = arith.subf %420, %347 : vector<4x128xf32>
    %422 = math.exp %421 : vector<4x128xf32>
    %423 = arith.addf %417, %422 : vector<4x128xf32>
    %c0_210 = arith.constant 0 : index
    %c11_211 = arith.constant 11 : index
    %c0_212 = arith.constant 0 : index
    %c0_213 = arith.constant 0 : index
    %424 = vector.load %arg2[%c0_210, %c11_211, %c0_212, %c0_213] : memref<4x16x4x128xbf16, #tpu.memory_space<vmem>>, vector<1x1x4x128xbf16>
    %425 = vector.shape_cast %424 : vector<1x1x4x128xbf16> to vector<4x128xbf16>
    %426 = arith.extf %425 : vector<4x128xbf16> to vector<4x128xf32>
    %427 = arith.subf %426, %347 : vector<4x128xf32>
    %428 = math.exp %427 : vector<4x128xf32>
    %429 = arith.addf %423, %428 : vector<4x128xf32>
    %c0_214 = arith.constant 0 : index
    %c12_215 = arith.constant 12 : index
    %c0_216 = arith.constant 0 : index
    %c0_217 = arith.constant 0 : index
    %430 = vector.load %arg2[%c0_214, %c12_215, %c0_216, %c0_217] : memref<4x16x4x128xbf16, #tpu.memory_space<vmem>>, vector<1x1x4x128xbf16>
    %431 = vector.shape_cast %430 : vector<1x1x4x128xbf16> to vector<4x128xbf16>
    %432 = arith.extf %431 : vector<4x128xbf16> to vector<4x128xf32>
    %433 = arith.subf %432, %347 : vector<4x128xf32>
    %434 = math.exp %433 : vector<4x128xf32>
    %435 = arith.addf %429, %434 : vector<4x128xf32>
    %c0_218 = arith.constant 0 : index
    %c13_219 = arith.constant 13 : index
    %c0_220 = arith.constant 0 : index
    %c0_221 = arith.constant 0 : index
    %436 = vector.load %arg2[%c0_218, %c13_219, %c0_220, %c0_221] : memref<4x16x4x128xbf16, #tpu.memory_space<vmem>>, vector<1x1x4x128xbf16>
    %437 = vector.shape_cast %436 : vector<1x1x4x128xbf16> to vector<4x128xbf16>
    %438 = arith.extf %437 : vector<4x128xbf16> to vector<4x128xf32>
    %439 = arith.subf %438, %347 : vector<4x128xf32>
    %440 = math.exp %439 : vector<4x128xf32>
    %441 = arith.addf %435, %440 : vector<4x128xf32>
    %c0_222 = arith.constant 0 : index
    %c14_223 = arith.constant 14 : index
    %c0_224 = arith.constant 0 : index
    %c0_225 = arith.constant 0 : index
    %442 = vector.load %arg2[%c0_222, %c14_223, %c0_224, %c0_225] : memref<4x16x4x128xbf16, #tpu.memory_space<vmem>>, vector<1x1x4x128xbf16>
    %443 = vector.shape_cast %442 : vector<1x1x4x128xbf16> to vector<4x128xbf16>
    %444 = arith.extf %443 : vector<4x128xbf16> to vector<4x128xf32>
    %445 = arith.subf %444, %347 : vector<4x128xf32>
    %446 = math.exp %445 : vector<4x128xf32>
    %447 = arith.addf %441, %446 : vector<4x128xf32>
    %c0_226 = arith.constant 0 : index
    %c15_227 = arith.constant 15 : index
    %c0_228 = arith.constant 0 : index
    %c0_229 = arith.constant 0 : index
    %448 = vector.load %arg2[%c0_226, %c15_227, %c0_228, %c0_229] : memref<4x16x4x128xbf16, #tpu.memory_space<vmem>>, vector<1x1x4x128xbf16>
    %449 = vector.shape_cast %448 : vector<1x1x4x128xbf16> to vector<4x128xbf16>
    %450 = arith.extf %449 : vector<4x128xbf16> to vector<4x128xf32>
    %451 = arith.subf %450, %347 : vector<4x128xf32>
    %452 = math.exp %451 : vector<4x128xf32>
    %453 = arith.addf %447, %452 : vector<4x128xf32>
    %454 = math.log %453 : vector<4x128xf32>
    %455 = arith.addf %347, %454 : vector<4x128xf32>
    %456 = arith.subf %455, %356 : vector<4x128xf32>
    %457 = arith.addf %149, %456 : vector<4x128xf32>
    %cst_230 = arith.constant 0.000000e+00 : f32
    %cst_231 = arith.constant 1.499000e+01 : f32
    %458 = vector.broadcast %cst_230 : f32 to vector<4x128xf32>
    %459 = arith.maximumf %458, %144 : vector<4x128xf32>
    %460 = vector.broadcast %cst_231 : f32 to vector<4x128xf32>
    %461 = arith.minimumf %460, %459 : vector<4x128xf32>
    %c1_232 = arith.constant 1 : index
    %c0_233 = arith.constant 0 : index
    %c0_234 = arith.constant 0 : index
    %c0_235 = arith.constant 0 : index
    %462 = vector.load %arg2[%c1_232, %c0_233, %c0_234, %c0_235] : memref<4x16x4x128xbf16, #tpu.memory_space<vmem>>, vector<1x1x4x128xbf16>
    %463 = vector.shape_cast %462 : vector<1x1x4x128xbf16> to vector<4x128xbf16>
    %464 = arith.extf %463 : vector<4x128xbf16> to vector<4x128xf32>
    %cst_236 = arith.constant 1.000000e+00 : f32
    %465 = vector.broadcast %cst_236 : f32 to vector<4x128xf32>
    %466 = arith.subf %465, %461 : vector<4x128xf32>
    %cst_237 = arith.constant 0.000000e+00 : f32
    %467 = vector.broadcast %cst_237 : f32 to vector<4x128xf32>
    %468 = arith.maximumf %466, %467 : vector<4x128xf32>
    %469 = arith.mulf %464, %468 : vector<4x128xf32>
    %c1_238 = arith.constant 1 : index
    %c1_239 = arith.constant 1 : index
    %c0_240 = arith.constant 0 : index
    %c0_241 = arith.constant 0 : index
    %470 = vector.load %arg2[%c1_238, %c1_239, %c0_240, %c0_241] : memref<4x16x4x128xbf16, #tpu.memory_space<vmem>>, vector<1x1x4x128xbf16>
    %471 = vector.shape_cast %470 : vector<1x1x4x128xbf16> to vector<4x128xbf16>
    %472 = arith.extf %471 : vector<4x128xbf16> to vector<4x128xf32>
    %473 = arith.maximumf %464, %472 : vector<4x128xf32>
    %cst_242 = arith.constant 1.000000e+00 : f32
    %474 = vector.broadcast %cst_242 : f32 to vector<4x128xf32>
    %475 = arith.subf %474, %461 : vector<4x128xf32>
    %476 = math.absf %475 : vector<4x128xf32>
    %cst_243 = arith.constant 1.000000e+00 : f32
    %477 = vector.broadcast %cst_243 : f32 to vector<4x128xf32>
    %478 = arith.subf %477, %476 : vector<4x128xf32>
    %cst_244 = arith.constant 0.000000e+00 : f32
    %479 = vector.broadcast %cst_244 : f32 to vector<4x128xf32>
    %480 = arith.maximumf %478, %479 : vector<4x128xf32>
    %481 = arith.mulf %472, %480 : vector<4x128xf32>
    %482 = arith.addf %469, %481 : vector<4x128xf32>
    %c1_245 = arith.constant 1 : index
    %c2_246 = arith.constant 2 : index
    %c0_247 = arith.constant 0 : index
    %c0_248 = arith.constant 0 : index
    %483 = vector.load %arg2[%c1_245, %c2_246, %c0_247, %c0_248] : memref<4x16x4x128xbf16, #tpu.memory_space<vmem>>, vector<1x1x4x128xbf16>
    %484 = vector.shape_cast %483 : vector<1x1x4x128xbf16> to vector<4x128xbf16>
    %485 = arith.extf %484 : vector<4x128xbf16> to vector<4x128xf32>
    %486 = arith.maximumf %473, %485 : vector<4x128xf32>
    %cst_249 = arith.constant 2.000000e+00 : f32
    %487 = vector.broadcast %cst_249 : f32 to vector<4x128xf32>
    %488 = arith.subf %487, %461 : vector<4x128xf32>
    %489 = math.absf %488 : vector<4x128xf32>
    %cst_250 = arith.constant 1.000000e+00 : f32
    %490 = vector.broadcast %cst_250 : f32 to vector<4x128xf32>
    %491 = arith.subf %490, %489 : vector<4x128xf32>
    %cst_251 = arith.constant 0.000000e+00 : f32
    %492 = vector.broadcast %cst_251 : f32 to vector<4x128xf32>
    %493 = arith.maximumf %491, %492 : vector<4x128xf32>
    %494 = arith.mulf %485, %493 : vector<4x128xf32>
    %495 = arith.addf %482, %494 : vector<4x128xf32>
    %c1_252 = arith.constant 1 : index
    %c3_253 = arith.constant 3 : index
    %c0_254 = arith.constant 0 : index
    %c0_255 = arith.constant 0 : index
    %496 = vector.load %arg2[%c1_252, %c3_253, %c0_254, %c0_255] : memref<4x16x4x128xbf16, #tpu.memory_space<vmem>>, vector<1x1x4x128xbf16>
    %497 = vector.shape_cast %496 : vector<1x1x4x128xbf16> to vector<4x128xbf16>
    %498 = arith.extf %497 : vector<4x128xbf16> to vector<4x128xf32>
    %499 = arith.maximumf %486, %498 : vector<4x128xf32>
    %cst_256 = arith.constant 3.000000e+00 : f32
    %500 = vector.broadcast %cst_256 : f32 to vector<4x128xf32>
    %501 = arith.subf %500, %461 : vector<4x128xf32>
    %502 = math.absf %501 : vector<4x128xf32>
    %cst_257 = arith.constant 1.000000e+00 : f32
    %503 = vector.broadcast %cst_257 : f32 to vector<4x128xf32>
    %504 = arith.subf %503, %502 : vector<4x128xf32>
    %cst_258 = arith.constant 0.000000e+00 : f32
    %505 = vector.broadcast %cst_258 : f32 to vector<4x128xf32>
    %506 = arith.maximumf %504, %505 : vector<4x128xf32>
    %507 = arith.mulf %498, %506 : vector<4x128xf32>
    %508 = arith.addf %495, %507 : vector<4x128xf32>
    %c1_259 = arith.constant 1 : index
    %c4_260 = arith.constant 4 : index
    %c0_261 = arith.constant 0 : index
    %c0_262 = arith.constant 0 : index
    %509 = vector.load %arg2[%c1_259, %c4_260, %c0_261, %c0_262] : memref<4x16x4x128xbf16, #tpu.memory_space<vmem>>, vector<1x1x4x128xbf16>
    %510 = vector.shape_cast %509 : vector<1x1x4x128xbf16> to vector<4x128xbf16>
    %511 = arith.extf %510 : vector<4x128xbf16> to vector<4x128xf32>
    %512 = arith.maximumf %499, %511 : vector<4x128xf32>
    %cst_263 = arith.constant 4.000000e+00 : f32
    %513 = vector.broadcast %cst_263 : f32 to vector<4x128xf32>
    %514 = arith.subf %513, %461 : vector<4x128xf32>
    %515 = math.absf %514 : vector<4x128xf32>
    %cst_264 = arith.constant 1.000000e+00 : f32
    %516 = vector.broadcast %cst_264 : f32 to vector<4x128xf32>
    %517 = arith.subf %516, %515 : vector<4x128xf32>
    %cst_265 = arith.constant 0.000000e+00 : f32
    %518 = vector.broadcast %cst_265 : f32 to vector<4x128xf32>
    %519 = arith.maximumf %517, %518 : vector<4x128xf32>
    %520 = arith.mulf %511, %519 : vector<4x128xf32>
    %521 = arith.addf %508, %520 : vector<4x128xf32>
    %c1_266 = arith.constant 1 : index
    %c5_267 = arith.constant 5 : index
    %c0_268 = arith.constant 0 : index
    %c0_269 = arith.constant 0 : index
    %522 = vector.load %arg2[%c1_266, %c5_267, %c0_268, %c0_269] : memref<4x16x4x128xbf16, #tpu.memory_space<vmem>>, vector<1x1x4x128xbf16>
    %523 = vector.shape_cast %522 : vector<1x1x4x128xbf16> to vector<4x128xbf16>
    %524 = arith.extf %523 : vector<4x128xbf16> to vector<4x128xf32>
    %525 = arith.maximumf %512, %524 : vector<4x128xf32>
    %cst_270 = arith.constant 5.000000e+00 : f32
    %526 = vector.broadcast %cst_270 : f32 to vector<4x128xf32>
    %527 = arith.subf %526, %461 : vector<4x128xf32>
    %528 = math.absf %527 : vector<4x128xf32>
    %cst_271 = arith.constant 1.000000e+00 : f32
    %529 = vector.broadcast %cst_271 : f32 to vector<4x128xf32>
    %530 = arith.subf %529, %528 : vector<4x128xf32>
    %cst_272 = arith.constant 0.000000e+00 : f32
    %531 = vector.broadcast %cst_272 : f32 to vector<4x128xf32>
    %532 = arith.maximumf %530, %531 : vector<4x128xf32>
    %533 = arith.mulf %524, %532 : vector<4x128xf32>
    %534 = arith.addf %521, %533 : vector<4x128xf32>
    %c1_273 = arith.constant 1 : index
    %c6_274 = arith.constant 6 : index
    %c0_275 = arith.constant 0 : index
    %c0_276 = arith.constant 0 : index
    %535 = vector.load %arg2[%c1_273, %c6_274, %c0_275, %c0_276] : memref<4x16x4x128xbf16, #tpu.memory_space<vmem>>, vector<1x1x4x128xbf16>
    %536 = vector.shape_cast %535 : vector<1x1x4x128xbf16> to vector<4x128xbf16>
    %537 = arith.extf %536 : vector<4x128xbf16> to vector<4x128xf32>
    %538 = arith.maximumf %525, %537 : vector<4x128xf32>
    %cst_277 = arith.constant 6.000000e+00 : f32
    %539 = vector.broadcast %cst_277 : f32 to vector<4x128xf32>
    %540 = arith.subf %539, %461 : vector<4x128xf32>
    %541 = math.absf %540 : vector<4x128xf32>
    %cst_278 = arith.constant 1.000000e+00 : f32
    %542 = vector.broadcast %cst_278 : f32 to vector<4x128xf32>
    %543 = arith.subf %542, %541 : vector<4x128xf32>
    %cst_279 = arith.constant 0.000000e+00 : f32
    %544 = vector.broadcast %cst_279 : f32 to vector<4x128xf32>
    %545 = arith.maximumf %543, %544 : vector<4x128xf32>
    %546 = arith.mulf %537, %545 : vector<4x128xf32>
    %547 = arith.addf %534, %546 : vector<4x128xf32>
    %c1_280 = arith.constant 1 : index
    %c7_281 = arith.constant 7 : index
    %c0_282 = arith.constant 0 : index
    %c0_283 = arith.constant 0 : index
    %548 = vector.load %arg2[%c1_280, %c7_281, %c0_282, %c0_283] : memref<4x16x4x128xbf16, #tpu.memory_space<vmem>>, vector<1x1x4x128xbf16>
    %549 = vector.shape_cast %548 : vector<1x1x4x128xbf16> to vector<4x128xbf16>
    %550 = arith.extf %549 : vector<4x128xbf16> to vector<4x128xf32>
    %551 = arith.maximumf %538, %550 : vector<4x128xf32>
    %cst_284 = arith.constant 7.000000e+00 : f32
    %552 = vector.broadcast %cst_284 : f32 to vector<4x128xf32>
    %553 = arith.subf %552, %461 : vector<4x128xf32>
    %554 = math.absf %553 : vector<4x128xf32>
    %cst_285 = arith.constant 1.000000e+00 : f32
    %555 = vector.broadcast %cst_285 : f32 to vector<4x128xf32>
    %556 = arith.subf %555, %554 : vector<4x128xf32>
    %cst_286 = arith.constant 0.000000e+00 : f32
    %557 = vector.broadcast %cst_286 : f32 to vector<4x128xf32>
    %558 = arith.maximumf %556, %557 : vector<4x128xf32>
    %559 = arith.mulf %550, %558 : vector<4x128xf32>
    %560 = arith.addf %547, %559 : vector<4x128xf32>
    %c1_287 = arith.constant 1 : index
    %c8_288 = arith.constant 8 : index
    %c0_289 = arith.constant 0 : index
    %c0_290 = arith.constant 0 : index
    %561 = vector.load %arg2[%c1_287, %c8_288, %c0_289, %c0_290] : memref<4x16x4x128xbf16, #tpu.memory_space<vmem>>, vector<1x1x4x128xbf16>
    %562 = vector.shape_cast %561 : vector<1x1x4x128xbf16> to vector<4x128xbf16>
    %563 = arith.extf %562 : vector<4x128xbf16> to vector<4x128xf32>
    %564 = arith.maximumf %551, %563 : vector<4x128xf32>
    %cst_291 = arith.constant 8.000000e+00 : f32
    %565 = vector.broadcast %cst_291 : f32 to vector<4x128xf32>
    %566 = arith.subf %565, %461 : vector<4x128xf32>
    %567 = math.absf %566 : vector<4x128xf32>
    %cst_292 = arith.constant 1.000000e+00 : f32
    %568 = vector.broadcast %cst_292 : f32 to vector<4x128xf32>
    %569 = arith.subf %568, %567 : vector<4x128xf32>
    %cst_293 = arith.constant 0.000000e+00 : f32
    %570 = vector.broadcast %cst_293 : f32 to vector<4x128xf32>
    %571 = arith.maximumf %569, %570 : vector<4x128xf32>
    %572 = arith.mulf %563, %571 : vector<4x128xf32>
    %573 = arith.addf %560, %572 : vector<4x128xf32>
    %c1_294 = arith.constant 1 : index
    %c9_295 = arith.constant 9 : index
    %c0_296 = arith.constant 0 : index
    %c0_297 = arith.constant 0 : index
    %574 = vector.load %arg2[%c1_294, %c9_295, %c0_296, %c0_297] : memref<4x16x4x128xbf16, #tpu.memory_space<vmem>>, vector<1x1x4x128xbf16>
    %575 = vector.shape_cast %574 : vector<1x1x4x128xbf16> to vector<4x128xbf16>
    %576 = arith.extf %575 : vector<4x128xbf16> to vector<4x128xf32>
    %577 = arith.maximumf %564, %576 : vector<4x128xf32>
    %cst_298 = arith.constant 9.000000e+00 : f32
    %578 = vector.broadcast %cst_298 : f32 to vector<4x128xf32>
    %579 = arith.subf %578, %461 : vector<4x128xf32>
    %580 = math.absf %579 : vector<4x128xf32>
    %cst_299 = arith.constant 1.000000e+00 : f32
    %581 = vector.broadcast %cst_299 : f32 to vector<4x128xf32>
    %582 = arith.subf %581, %580 : vector<4x128xf32>
    %cst_300 = arith.constant 0.000000e+00 : f32
    %583 = vector.broadcast %cst_300 : f32 to vector<4x128xf32>
    %584 = arith.maximumf %582, %583 : vector<4x128xf32>
    %585 = arith.mulf %576, %584 : vector<4x128xf32>
    %586 = arith.addf %573, %585 : vector<4x128xf32>
    %c1_301 = arith.constant 1 : index
    %c10_302 = arith.constant 10 : index
    %c0_303 = arith.constant 0 : index
    %c0_304 = arith.constant 0 : index
    %587 = vector.load %arg2[%c1_301, %c10_302, %c0_303, %c0_304] : memref<4x16x4x128xbf16, #tpu.memory_space<vmem>>, vector<1x1x4x128xbf16>
    %588 = vector.shape_cast %587 : vector<1x1x4x128xbf16> to vector<4x128xbf16>
    %589 = arith.extf %588 : vector<4x128xbf16> to vector<4x128xf32>
    %590 = arith.maximumf %577, %589 : vector<4x128xf32>
    %cst_305 = arith.constant 1.000000e+01 : f32
    %591 = vector.broadcast %cst_305 : f32 to vector<4x128xf32>
    %592 = arith.subf %591, %461 : vector<4x128xf32>
    %593 = math.absf %592 : vector<4x128xf32>
    %cst_306 = arith.constant 1.000000e+00 : f32
    %594 = vector.broadcast %cst_306 : f32 to vector<4x128xf32>
    %595 = arith.subf %594, %593 : vector<4x128xf32>
    %cst_307 = arith.constant 0.000000e+00 : f32
    %596 = vector.broadcast %cst_307 : f32 to vector<4x128xf32>
    %597 = arith.maximumf %595, %596 : vector<4x128xf32>
    %598 = arith.mulf %589, %597 : vector<4x128xf32>
    %599 = arith.addf %586, %598 : vector<4x128xf32>
    %c1_308 = arith.constant 1 : index
    %c11_309 = arith.constant 11 : index
    %c0_310 = arith.constant 0 : index
    %c0_311 = arith.constant 0 : index
    %600 = vector.load %arg2[%c1_308, %c11_309, %c0_310, %c0_311] : memref<4x16x4x128xbf16, #tpu.memory_space<vmem>>, vector<1x1x4x128xbf16>
    %601 = vector.shape_cast %600 : vector<1x1x4x128xbf16> to vector<4x128xbf16>
    %602 = arith.extf %601 : vector<4x128xbf16> to vector<4x128xf32>
    %603 = arith.maximumf %590, %602 : vector<4x128xf32>
    %cst_312 = arith.constant 1.100000e+01 : f32
    %604 = vector.broadcast %cst_312 : f32 to vector<4x128xf32>
    %605 = arith.subf %604, %461 : vector<4x128xf32>
    %606 = math.absf %605 : vector<4x128xf32>
    %cst_313 = arith.constant 1.000000e+00 : f32
    %607 = vector.broadcast %cst_313 : f32 to vector<4x128xf32>
    %608 = arith.subf %607, %606 : vector<4x128xf32>
    %cst_314 = arith.constant 0.000000e+00 : f32
    %609 = vector.broadcast %cst_314 : f32 to vector<4x128xf32>
    %610 = arith.maximumf %608, %609 : vector<4x128xf32>
    %611 = arith.mulf %602, %610 : vector<4x128xf32>
    %612 = arith.addf %599, %611 : vector<4x128xf32>
    %c1_315 = arith.constant 1 : index
    %c12_316 = arith.constant 12 : index
    %c0_317 = arith.constant 0 : index
    %c0_318 = arith.constant 0 : index
    %613 = vector.load %arg2[%c1_315, %c12_316, %c0_317, %c0_318] : memref<4x16x4x128xbf16, #tpu.memory_space<vmem>>, vector<1x1x4x128xbf16>
    %614 = vector.shape_cast %613 : vector<1x1x4x128xbf16> to vector<4x128xbf16>
    %615 = arith.extf %614 : vector<4x128xbf16> to vector<4x128xf32>
    %616 = arith.maximumf %603, %615 : vector<4x128xf32>
    %cst_319 = arith.constant 1.200000e+01 : f32
    %617 = vector.broadcast %cst_319 : f32 to vector<4x128xf32>
    %618 = arith.subf %617, %461 : vector<4x128xf32>
    %619 = math.absf %618 : vector<4x128xf32>
    %cst_320 = arith.constant 1.000000e+00 : f32
    %620 = vector.broadcast %cst_320 : f32 to vector<4x128xf32>
    %621 = arith.subf %620, %619 : vector<4x128xf32>
    %cst_321 = arith.constant 0.000000e+00 : f32
    %622 = vector.broadcast %cst_321 : f32 to vector<4x128xf32>
    %623 = arith.maximumf %621, %622 : vector<4x128xf32>
    %624 = arith.mulf %615, %623 : vector<4x128xf32>
    %625 = arith.addf %612, %624 : vector<4x128xf32>
    %c1_322 = arith.constant 1 : index
    %c13_323 = arith.constant 13 : index
    %c0_324 = arith.constant 0 : index
    %c0_325 = arith.constant 0 : index
    %626 = vector.load %arg2[%c1_322, %c13_323, %c0_324, %c0_325] : memref<4x16x4x128xbf16, #tpu.memory_space<vmem>>, vector<1x1x4x128xbf16>
    %627 = vector.shape_cast %626 : vector<1x1x4x128xbf16> to vector<4x128xbf16>
    %628 = arith.extf %627 : vector<4x128xbf16> to vector<4x128xf32>
    %629 = arith.maximumf %616, %628 : vector<4x128xf32>
    %cst_326 = arith.constant 1.300000e+01 : f32
    %630 = vector.broadcast %cst_326 : f32 to vector<4x128xf32>
    %631 = arith.subf %630, %461 : vector<4x128xf32>
    %632 = math.absf %631 : vector<4x128xf32>
    %cst_327 = arith.constant 1.000000e+00 : f32
    %633 = vector.broadcast %cst_327 : f32 to vector<4x128xf32>
    %634 = arith.subf %633, %632 : vector<4x128xf32>
    %cst_328 = arith.constant 0.000000e+00 : f32
    %635 = vector.broadcast %cst_328 : f32 to vector<4x128xf32>
    %636 = arith.maximumf %634, %635 : vector<4x128xf32>
    %637 = arith.mulf %628, %636 : vector<4x128xf32>
    %638 = arith.addf %625, %637 : vector<4x128xf32>
    %c1_329 = arith.constant 1 : index
    %c14_330 = arith.constant 14 : index
    %c0_331 = arith.constant 0 : index
    %c0_332 = arith.constant 0 : index
    %639 = vector.load %arg2[%c1_329, %c14_330, %c0_331, %c0_332] : memref<4x16x4x128xbf16, #tpu.memory_space<vmem>>, vector<1x1x4x128xbf16>
    %640 = vector.shape_cast %639 : vector<1x1x4x128xbf16> to vector<4x128xbf16>
    %641 = arith.extf %640 : vector<4x128xbf16> to vector<4x128xf32>
    %642 = arith.maximumf %629, %641 : vector<4x128xf32>
    %cst_333 = arith.constant 1.400000e+01 : f32
    %643 = vector.broadcast %cst_333 : f32 to vector<4x128xf32>
    %644 = arith.subf %643, %461 : vector<4x128xf32>
    %645 = math.absf %644 : vector<4x128xf32>
    %cst_334 = arith.constant 1.000000e+00 : f32
    %646 = vector.broadcast %cst_334 : f32 to vector<4x128xf32>
    %647 = arith.subf %646, %645 : vector<4x128xf32>
    %cst_335 = arith.constant 0.000000e+00 : f32
    %648 = vector.broadcast %cst_335 : f32 to vector<4x128xf32>
    %649 = arith.maximumf %647, %648 : vector<4x128xf32>
    %650 = arith.mulf %641, %649 : vector<4x128xf32>
    %651 = arith.addf %638, %650 : vector<4x128xf32>
    %c1_336 = arith.constant 1 : index
    %c15_337 = arith.constant 15 : index
    %c0_338 = arith.constant 0 : index
    %c0_339 = arith.constant 0 : index
    %652 = vector.load %arg2[%c1_336, %c15_337, %c0_338, %c0_339] : memref<4x16x4x128xbf16, #tpu.memory_space<vmem>>, vector<1x1x4x128xbf16>
    %653 = vector.shape_cast %652 : vector<1x1x4x128xbf16> to vector<4x128xbf16>
    %654 = arith.extf %653 : vector<4x128xbf16> to vector<4x128xf32>
    %655 = arith.maximumf %642, %654 : vector<4x128xf32>
    %cst_340 = arith.constant 1.500000e+01 : f32
    %656 = vector.broadcast %cst_340 : f32 to vector<4x128xf32>
    %657 = arith.subf %656, %461 : vector<4x128xf32>
    %658 = math.absf %657 : vector<4x128xf32>
    %cst_341 = arith.constant 1.000000e+00 : f32
    %659 = vector.broadcast %cst_341 : f32 to vector<4x128xf32>
    %660 = arith.subf %659, %658 : vector<4x128xf32>
    %cst_342 = arith.constant 0.000000e+00 : f32
    %661 = vector.broadcast %cst_342 : f32 to vector<4x128xf32>
    %662 = arith.maximumf %660, %661 : vector<4x128xf32>
    %663 = arith.mulf %654, %662 : vector<4x128xf32>
    %664 = arith.addf %651, %663 : vector<4x128xf32>
    %cst_343 = arith.constant 0.000000e+00 : f32
    %665 = vector.broadcast %cst_343 : f32 to vector<4x128xf32>
    %c1_344 = arith.constant 1 : index
    %c0_345 = arith.constant 0 : index
    %c0_346 = arith.constant 0 : index
    %c0_347 = arith.constant 0 : index
    %666 = vector.load %arg2[%c1_344, %c0_345, %c0_346, %c0_347] : memref<4x16x4x128xbf16, #tpu.memory_space<vmem>>, vector<1x1x4x128xbf16>
    %667 = vector.shape_cast %666 : vector<1x1x4x128xbf16> to vector<4x128xbf16>
    %668 = arith.extf %667 : vector<4x128xbf16> to vector<4x128xf32>
    %669 = arith.subf %668, %655 : vector<4x128xf32>
    %670 = math.exp %669 : vector<4x128xf32>
    %671 = arith.addf %665, %670 : vector<4x128xf32>
    %c1_348 = arith.constant 1 : index
    %c1_349 = arith.constant 1 : index
    %c0_350 = arith.constant 0 : index
    %c0_351 = arith.constant 0 : index
    %672 = vector.load %arg2[%c1_348, %c1_349, %c0_350, %c0_351] : memref<4x16x4x128xbf16, #tpu.memory_space<vmem>>, vector<1x1x4x128xbf16>
    %673 = vector.shape_cast %672 : vector<1x1x4x128xbf16> to vector<4x128xbf16>
    %674 = arith.extf %673 : vector<4x128xbf16> to vector<4x128xf32>
    %675 = arith.subf %674, %655 : vector<4x128xf32>
    %676 = math.exp %675 : vector<4x128xf32>
    %677 = arith.addf %671, %676 : vector<4x128xf32>
    %c1_352 = arith.constant 1 : index
    %c2_353 = arith.constant 2 : index
    %c0_354 = arith.constant 0 : index
    %c0_355 = arith.constant 0 : index
    %678 = vector.load %arg2[%c1_352, %c2_353, %c0_354, %c0_355] : memref<4x16x4x128xbf16, #tpu.memory_space<vmem>>, vector<1x1x4x128xbf16>
    %679 = vector.shape_cast %678 : vector<1x1x4x128xbf16> to vector<4x128xbf16>
    %680 = arith.extf %679 : vector<4x128xbf16> to vector<4x128xf32>
    %681 = arith.subf %680, %655 : vector<4x128xf32>
    %682 = math.exp %681 : vector<4x128xf32>
    %683 = arith.addf %677, %682 : vector<4x128xf32>
    %c1_356 = arith.constant 1 : index
    %c3_357 = arith.constant 3 : index
    %c0_358 = arith.constant 0 : index
    %c0_359 = arith.constant 0 : index
    %684 = vector.load %arg2[%c1_356, %c3_357, %c0_358, %c0_359] : memref<4x16x4x128xbf16, #tpu.memory_space<vmem>>, vector<1x1x4x128xbf16>
    %685 = vector.shape_cast %684 : vector<1x1x4x128xbf16> to vector<4x128xbf16>
    %686 = arith.extf %685 : vector<4x128xbf16> to vector<4x128xf32>
    %687 = arith.subf %686, %655 : vector<4x128xf32>
    %688 = math.exp %687 : vector<4x128xf32>
    %689 = arith.addf %683, %688 : vector<4x128xf32>
    %c1_360 = arith.constant 1 : index
    %c4_361 = arith.constant 4 : index
    %c0_362 = arith.constant 0 : index
    %c0_363 = arith.constant 0 : index
    %690 = vector.load %arg2[%c1_360, %c4_361, %c0_362, %c0_363] : memref<4x16x4x128xbf16, #tpu.memory_space<vmem>>, vector<1x1x4x128xbf16>
    %691 = vector.shape_cast %690 : vector<1x1x4x128xbf16> to vector<4x128xbf16>
    %692 = arith.extf %691 : vector<4x128xbf16> to vector<4x128xf32>
    %693 = arith.subf %692, %655 : vector<4x128xf32>
    %694 = math.exp %693 : vector<4x128xf32>
    %695 = arith.addf %689, %694 : vector<4x128xf32>
    %c1_364 = arith.constant 1 : index
    %c5_365 = arith.constant 5 : index
    %c0_366 = arith.constant 0 : index
    %c0_367 = arith.constant 0 : index
    %696 = vector.load %arg2[%c1_364, %c5_365, %c0_366, %c0_367] : memref<4x16x4x128xbf16, #tpu.memory_space<vmem>>, vector<1x1x4x128xbf16>
    %697 = vector.shape_cast %696 : vector<1x1x4x128xbf16> to vector<4x128xbf16>
    %698 = arith.extf %697 : vector<4x128xbf16> to vector<4x128xf32>
    %699 = arith.subf %698, %655 : vector<4x128xf32>
    %700 = math.exp %699 : vector<4x128xf32>
    %701 = arith.addf %695, %700 : vector<4x128xf32>
    %c1_368 = arith.constant 1 : index
    %c6_369 = arith.constant 6 : index
    %c0_370 = arith.constant 0 : index
    %c0_371 = arith.constant 0 : index
    %702 = vector.load %arg2[%c1_368, %c6_369, %c0_370, %c0_371] : memref<4x16x4x128xbf16, #tpu.memory_space<vmem>>, vector<1x1x4x128xbf16>
    %703 = vector.shape_cast %702 : vector<1x1x4x128xbf16> to vector<4x128xbf16>
    %704 = arith.extf %703 : vector<4x128xbf16> to vector<4x128xf32>
    %705 = arith.subf %704, %655 : vector<4x128xf32>
    %706 = math.exp %705 : vector<4x128xf32>
    %707 = arith.addf %701, %706 : vector<4x128xf32>
    %c1_372 = arith.constant 1 : index
    %c7_373 = arith.constant 7 : index
    %c0_374 = arith.constant 0 : index
    %c0_375 = arith.constant 0 : index
    %708 = vector.load %arg2[%c1_372, %c7_373, %c0_374, %c0_375] : memref<4x16x4x128xbf16, #tpu.memory_space<vmem>>, vector<1x1x4x128xbf16>
    %709 = vector.shape_cast %708 : vector<1x1x4x128xbf16> to vector<4x128xbf16>
    %710 = arith.extf %709 : vector<4x128xbf16> to vector<4x128xf32>
    %711 = arith.subf %710, %655 : vector<4x128xf32>
    %712 = math.exp %711 : vector<4x128xf32>
    %713 = arith.addf %707, %712 : vector<4x128xf32>
    %c1_376 = arith.constant 1 : index
    %c8_377 = arith.constant 8 : index
    %c0_378 = arith.constant 0 : index
    %c0_379 = arith.constant 0 : index
    %714 = vector.load %arg2[%c1_376, %c8_377, %c0_378, %c0_379] : memref<4x16x4x128xbf16, #tpu.memory_space<vmem>>, vector<1x1x4x128xbf16>
    %715 = vector.shape_cast %714 : vector<1x1x4x128xbf16> to vector<4x128xbf16>
    %716 = arith.extf %715 : vector<4x128xbf16> to vector<4x128xf32>
    %717 = arith.subf %716, %655 : vector<4x128xf32>
    %718 = math.exp %717 : vector<4x128xf32>
    %719 = arith.addf %713, %718 : vector<4x128xf32>
    %c1_380 = arith.constant 1 : index
    %c9_381 = arith.constant 9 : index
    %c0_382 = arith.constant 0 : index
    %c0_383 = arith.constant 0 : index
    %720 = vector.load %arg2[%c1_380, %c9_381, %c0_382, %c0_383] : memref<4x16x4x128xbf16, #tpu.memory_space<vmem>>, vector<1x1x4x128xbf16>
    %721 = vector.shape_cast %720 : vector<1x1x4x128xbf16> to vector<4x128xbf16>
    %722 = arith.extf %721 : vector<4x128xbf16> to vector<4x128xf32>
    %723 = arith.subf %722, %655 : vector<4x128xf32>
    %724 = math.exp %723 : vector<4x128xf32>
    %725 = arith.addf %719, %724 : vector<4x128xf32>
    %c1_384 = arith.constant 1 : index
    %c10_385 = arith.constant 10 : index
    %c0_386 = arith.constant 0 : index
    %c0_387 = arith.constant 0 : index
    %726 = vector.load %arg2[%c1_384, %c10_385, %c0_386, %c0_387] : memref<4x16x4x128xbf16, #tpu.memory_space<vmem>>, vector<1x1x4x128xbf16>
    %727 = vector.shape_cast %726 : vector<1x1x4x128xbf16> to vector<4x128xbf16>
    %728 = arith.extf %727 : vector<4x128xbf16> to vector<4x128xf32>
    %729 = arith.subf %728, %655 : vector<4x128xf32>
    %730 = math.exp %729 : vector<4x128xf32>
    %731 = arith.addf %725, %730 : vector<4x128xf32>
    %c1_388 = arith.constant 1 : index
    %c11_389 = arith.constant 11 : index
    %c0_390 = arith.constant 0 : index
    %c0_391 = arith.constant 0 : index
    %732 = vector.load %arg2[%c1_388, %c11_389, %c0_390, %c0_391] : memref<4x16x4x128xbf16, #tpu.memory_space<vmem>>, vector<1x1x4x128xbf16>
    %733 = vector.shape_cast %732 : vector<1x1x4x128xbf16> to vector<4x128xbf16>
    %734 = arith.extf %733 : vector<4x128xbf16> to vector<4x128xf32>
    %735 = arith.subf %734, %655 : vector<4x128xf32>
    %736 = math.exp %735 : vector<4x128xf32>
    %737 = arith.addf %731, %736 : vector<4x128xf32>
    %c1_392 = arith.constant 1 : index
    %c12_393 = arith.constant 12 : index
    %c0_394 = arith.constant 0 : index
    %c0_395 = arith.constant 0 : index
    %738 = vector.load %arg2[%c1_392, %c12_393, %c0_394, %c0_395] : memref<4x16x4x128xbf16, #tpu.memory_space<vmem>>, vector<1x1x4x128xbf16>
    %739 = vector.shape_cast %738 : vector<1x1x4x128xbf16> to vector<4x128xbf16>
    %740 = arith.extf %739 : vector<4x128xbf16> to vector<4x128xf32>
    %741 = arith.subf %740, %655 : vector<4x128xf32>
    %742 = math.exp %741 : vector<4x128xf32>
    %743 = arith.addf %737, %742 : vector<4x128xf32>
    %c1_396 = arith.constant 1 : index
    %c13_397 = arith.constant 13 : index
    %c0_398 = arith.constant 0 : index
    %c0_399 = arith.constant 0 : index
    %744 = vector.load %arg2[%c1_396, %c13_397, %c0_398, %c0_399] : memref<4x16x4x128xbf16, #tpu.memory_space<vmem>>, vector<1x1x4x128xbf16>
    %745 = vector.shape_cast %744 : vector<1x1x4x128xbf16> to vector<4x128xbf16>
    %746 = arith.extf %745 : vector<4x128xbf16> to vector<4x128xf32>
    %747 = arith.subf %746, %655 : vector<4x128xf32>
    %748 = math.exp %747 : vector<4x128xf32>
    %749 = arith.addf %743, %748 : vector<4x128xf32>
    %c1_400 = arith.constant 1 : index
    %c14_401 = arith.constant 14 : index
    %c0_402 = arith.constant 0 : index
    %c0_403 = arith.constant 0 : index
    %750 = vector.load %arg2[%c1_400, %c14_401, %c0_402, %c0_403] : memref<4x16x4x128xbf16, #tpu.memory_space<vmem>>, vector<1x1x4x128xbf16>
    %751 = vector.shape_cast %750 : vector<1x1x4x128xbf16> to vector<4x128xbf16>
    %752 = arith.extf %751 : vector<4x128xbf16> to vector<4x128xf32>
    %753 = arith.subf %752, %655 : vector<4x128xf32>
    %754 = math.exp %753 : vector<4x128xf32>
    %755 = arith.addf %749, %754 : vector<4x128xf32>
    %c1_404 = arith.constant 1 : index
    %c15_405 = arith.constant 15 : index
    %c0_406 = arith.constant 0 : index
    %c0_407 = arith.constant 0 : index
    %756 = vector.load %arg2[%c1_404, %c15_405, %c0_406, %c0_407] : memref<4x16x4x128xbf16, #tpu.memory_space<vmem>>, vector<1x1x4x128xbf16>
    %757 = vector.shape_cast %756 : vector<1x1x4x128xbf16> to vector<4x128xbf16>
    %758 = arith.extf %757 : vector<4x128xbf16> to vector<4x128xf32>
    %759 = arith.subf %758, %655 : vector<4x128xf32>
    %760 = math.exp %759 : vector<4x128xf32>
    %761 = arith.addf %755, %760 : vector<4x128xf32>
    %762 = math.log %761 : vector<4x128xf32>
    %763 = arith.addf %655, %762 : vector<4x128xf32>
    %764 = arith.subf %763, %664 : vector<4x128xf32>
    %765 = arith.addf %457, %764 : vector<4x128xf32>
    %cst_408 = arith.constant 0.000000e+00 : f32
    %cst_409 = arith.constant 1.499000e+01 : f32
    %766 = vector.broadcast %cst_408 : f32 to vector<4x128xf32>
    %767 = arith.maximumf %766, %146 : vector<4x128xf32>
    %768 = vector.broadcast %cst_409 : f32 to vector<4x128xf32>
    %769 = arith.minimumf %768, %767 : vector<4x128xf32>
    %c2_410 = arith.constant 2 : index
    %c0_411 = arith.constant 0 : index
    %c0_412 = arith.constant 0 : index
    %c0_413 = arith.constant 0 : index
    %770 = vector.load %arg2[%c2_410, %c0_411, %c0_412, %c0_413] : memref<4x16x4x128xbf16, #tpu.memory_space<vmem>>, vector<1x1x4x128xbf16>
    %771 = vector.shape_cast %770 : vector<1x1x4x128xbf16> to vector<4x128xbf16>
    %772 = arith.extf %771 : vector<4x128xbf16> to vector<4x128xf32>
    %cst_414 = arith.constant 1.000000e+00 : f32
    %773 = vector.broadcast %cst_414 : f32 to vector<4x128xf32>
    %774 = arith.subf %773, %769 : vector<4x128xf32>
    %cst_415 = arith.constant 0.000000e+00 : f32
    %775 = vector.broadcast %cst_415 : f32 to vector<4x128xf32>
    %776 = arith.maximumf %774, %775 : vector<4x128xf32>
    %777 = arith.mulf %772, %776 : vector<4x128xf32>
    %c2_416 = arith.constant 2 : index
    %c1_417 = arith.constant 1 : index
    %c0_418 = arith.constant 0 : index
    %c0_419 = arith.constant 0 : index
    %778 = vector.load %arg2[%c2_416, %c1_417, %c0_418, %c0_419] : memref<4x16x4x128xbf16, #tpu.memory_space<vmem>>, vector<1x1x4x128xbf16>
    %779 = vector.shape_cast %778 : vector<1x1x4x128xbf16> to vector<4x128xbf16>
    %780 = arith.extf %779 : vector<4x128xbf16> to vector<4x128xf32>
    %781 = arith.maximumf %772, %780 : vector<4x128xf32>
    %cst_420 = arith.constant 1.000000e+00 : f32
    %782 = vector.broadcast %cst_420 : f32 to vector<4x128xf32>
    %783 = arith.subf %782, %769 : vector<4x128xf32>
    %784 = math.absf %783 : vector<4x128xf32>
    %cst_421 = arith.constant 1.000000e+00 : f32
    %785 = vector.broadcast %cst_421 : f32 to vector<4x128xf32>
    %786 = arith.subf %785, %784 : vector<4x128xf32>
    %cst_422 = arith.constant 0.000000e+00 : f32
    %787 = vector.broadcast %cst_422 : f32 to vector<4x128xf32>
    %788 = arith.maximumf %786, %787 : vector<4x128xf32>
    %789 = arith.mulf %780, %788 : vector<4x128xf32>
    %790 = arith.addf %777, %789 : vector<4x128xf32>
    %c2_423 = arith.constant 2 : index
    %c2_424 = arith.constant 2 : index
    %c0_425 = arith.constant 0 : index
    %c0_426 = arith.constant 0 : index
    %791 = vector.load %arg2[%c2_423, %c2_424, %c0_425, %c0_426] : memref<4x16x4x128xbf16, #tpu.memory_space<vmem>>, vector<1x1x4x128xbf16>
    %792 = vector.shape_cast %791 : vector<1x1x4x128xbf16> to vector<4x128xbf16>
    %793 = arith.extf %792 : vector<4x128xbf16> to vector<4x128xf32>
    %794 = arith.maximumf %781, %793 : vector<4x128xf32>
    %cst_427 = arith.constant 2.000000e+00 : f32
    %795 = vector.broadcast %cst_427 : f32 to vector<4x128xf32>
    %796 = arith.subf %795, %769 : vector<4x128xf32>
    %797 = math.absf %796 : vector<4x128xf32>
    %cst_428 = arith.constant 1.000000e+00 : f32
    %798 = vector.broadcast %cst_428 : f32 to vector<4x128xf32>
    %799 = arith.subf %798, %797 : vector<4x128xf32>
    %cst_429 = arith.constant 0.000000e+00 : f32
    %800 = vector.broadcast %cst_429 : f32 to vector<4x128xf32>
    %801 = arith.maximumf %799, %800 : vector<4x128xf32>
    %802 = arith.mulf %793, %801 : vector<4x128xf32>
    %803 = arith.addf %790, %802 : vector<4x128xf32>
    %c2_430 = arith.constant 2 : index
    %c3_431 = arith.constant 3 : index
    %c0_432 = arith.constant 0 : index
    %c0_433 = arith.constant 0 : index
    %804 = vector.load %arg2[%c2_430, %c3_431, %c0_432, %c0_433] : memref<4x16x4x128xbf16, #tpu.memory_space<vmem>>, vector<1x1x4x128xbf16>
    %805 = vector.shape_cast %804 : vector<1x1x4x128xbf16> to vector<4x128xbf16>
    %806 = arith.extf %805 : vector<4x128xbf16> to vector<4x128xf32>
    %807 = arith.maximumf %794, %806 : vector<4x128xf32>
    %cst_434 = arith.constant 3.000000e+00 : f32
    %808 = vector.broadcast %cst_434 : f32 to vector<4x128xf32>
    %809 = arith.subf %808, %769 : vector<4x128xf32>
    %810 = math.absf %809 : vector<4x128xf32>
    %cst_435 = arith.constant 1.000000e+00 : f32
    %811 = vector.broadcast %cst_435 : f32 to vector<4x128xf32>
    %812 = arith.subf %811, %810 : vector<4x128xf32>
    %cst_436 = arith.constant 0.000000e+00 : f32
    %813 = vector.broadcast %cst_436 : f32 to vector<4x128xf32>
    %814 = arith.maximumf %812, %813 : vector<4x128xf32>
    %815 = arith.mulf %806, %814 : vector<4x128xf32>
    %816 = arith.addf %803, %815 : vector<4x128xf32>
    %c2_437 = arith.constant 2 : index
    %c4_438 = arith.constant 4 : index
    %c0_439 = arith.constant 0 : index
    %c0_440 = arith.constant 0 : index
    %817 = vector.load %arg2[%c2_437, %c4_438, %c0_439, %c0_440] : memref<4x16x4x128xbf16, #tpu.memory_space<vmem>>, vector<1x1x4x128xbf16>
    %818 = vector.shape_cast %817 : vector<1x1x4x128xbf16> to vector<4x128xbf16>
    %819 = arith.extf %818 : vector<4x128xbf16> to vector<4x128xf32>
    %820 = arith.maximumf %807, %819 : vector<4x128xf32>
    %cst_441 = arith.constant 4.000000e+00 : f32
    %821 = vector.broadcast %cst_441 : f32 to vector<4x128xf32>
    %822 = arith.subf %821, %769 : vector<4x128xf32>
    %823 = math.absf %822 : vector<4x128xf32>
    %cst_442 = arith.constant 1.000000e+00 : f32
    %824 = vector.broadcast %cst_442 : f32 to vector<4x128xf32>
    %825 = arith.subf %824, %823 : vector<4x128xf32>
    %cst_443 = arith.constant 0.000000e+00 : f32
    %826 = vector.broadcast %cst_443 : f32 to vector<4x128xf32>
    %827 = arith.maximumf %825, %826 : vector<4x128xf32>
    %828 = arith.mulf %819, %827 : vector<4x128xf32>
    %829 = arith.addf %816, %828 : vector<4x128xf32>
    %c2_444 = arith.constant 2 : index
    %c5_445 = arith.constant 5 : index
    %c0_446 = arith.constant 0 : index
    %c0_447 = arith.constant 0 : index
    %830 = vector.load %arg2[%c2_444, %c5_445, %c0_446, %c0_447] : memref<4x16x4x128xbf16, #tpu.memory_space<vmem>>, vector<1x1x4x128xbf16>
    %831 = vector.shape_cast %830 : vector<1x1x4x128xbf16> to vector<4x128xbf16>
    %832 = arith.extf %831 : vector<4x128xbf16> to vector<4x128xf32>
    %833 = arith.maximumf %820, %832 : vector<4x128xf32>
    %cst_448 = arith.constant 5.000000e+00 : f32
    %834 = vector.broadcast %cst_448 : f32 to vector<4x128xf32>
    %835 = arith.subf %834, %769 : vector<4x128xf32>
    %836 = math.absf %835 : vector<4x128xf32>
    %cst_449 = arith.constant 1.000000e+00 : f32
    %837 = vector.broadcast %cst_449 : f32 to vector<4x128xf32>
    %838 = arith.subf %837, %836 : vector<4x128xf32>
    %cst_450 = arith.constant 0.000000e+00 : f32
    %839 = vector.broadcast %cst_450 : f32 to vector<4x128xf32>
    %840 = arith.maximumf %838, %839 : vector<4x128xf32>
    %841 = arith.mulf %832, %840 : vector<4x128xf32>
    %842 = arith.addf %829, %841 : vector<4x128xf32>
    %c2_451 = arith.constant 2 : index
    %c6_452 = arith.constant 6 : index
    %c0_453 = arith.constant 0 : index
    %c0_454 = arith.constant 0 : index
    %843 = vector.load %arg2[%c2_451, %c6_452, %c0_453, %c0_454] : memref<4x16x4x128xbf16, #tpu.memory_space<vmem>>, vector<1x1x4x128xbf16>
    %844 = vector.shape_cast %843 : vector<1x1x4x128xbf16> to vector<4x128xbf16>
    %845 = arith.extf %844 : vector<4x128xbf16> to vector<4x128xf32>
    %846 = arith.maximumf %833, %845 : vector<4x128xf32>
    %cst_455 = arith.constant 6.000000e+00 : f32
    %847 = vector.broadcast %cst_455 : f32 to vector<4x128xf32>
    %848 = arith.subf %847, %769 : vector<4x128xf32>
    %849 = math.absf %848 : vector<4x128xf32>
    %cst_456 = arith.constant 1.000000e+00 : f32
    %850 = vector.broadcast %cst_456 : f32 to vector<4x128xf32>
    %851 = arith.subf %850, %849 : vector<4x128xf32>
    %cst_457 = arith.constant 0.000000e+00 : f32
    %852 = vector.broadcast %cst_457 : f32 to vector<4x128xf32>
    %853 = arith.maximumf %851, %852 : vector<4x128xf32>
    %854 = arith.mulf %845, %853 : vector<4x128xf32>
    %855 = arith.addf %842, %854 : vector<4x128xf32>
    %c2_458 = arith.constant 2 : index
    %c7_459 = arith.constant 7 : index
    %c0_460 = arith.constant 0 : index
    %c0_461 = arith.constant 0 : index
    %856 = vector.load %arg2[%c2_458, %c7_459, %c0_460, %c0_461] : memref<4x16x4x128xbf16, #tpu.memory_space<vmem>>, vector<1x1x4x128xbf16>
    %857 = vector.shape_cast %856 : vector<1x1x4x128xbf16> to vector<4x128xbf16>
    %858 = arith.extf %857 : vector<4x128xbf16> to vector<4x128xf32>
    %859 = arith.maximumf %846, %858 : vector<4x128xf32>
    %cst_462 = arith.constant 7.000000e+00 : f32
    %860 = vector.broadcast %cst_462 : f32 to vector<4x128xf32>
    %861 = arith.subf %860, %769 : vector<4x128xf32>
    %862 = math.absf %861 : vector<4x128xf32>
    %cst_463 = arith.constant 1.000000e+00 : f32
    %863 = vector.broadcast %cst_463 : f32 to vector<4x128xf32>
    %864 = arith.subf %863, %862 : vector<4x128xf32>
    %cst_464 = arith.constant 0.000000e+00 : f32
    %865 = vector.broadcast %cst_464 : f32 to vector<4x128xf32>
    %866 = arith.maximumf %864, %865 : vector<4x128xf32>
    %867 = arith.mulf %858, %866 : vector<4x128xf32>
    %868 = arith.addf %855, %867 : vector<4x128xf32>
    %c2_465 = arith.constant 2 : index
    %c8_466 = arith.constant 8 : index
    %c0_467 = arith.constant 0 : index
    %c0_468 = arith.constant 0 : index
    %869 = vector.load %arg2[%c2_465, %c8_466, %c0_467, %c0_468] : memref<4x16x4x128xbf16, #tpu.memory_space<vmem>>, vector<1x1x4x128xbf16>
    %870 = vector.shape_cast %869 : vector<1x1x4x128xbf16> to vector<4x128xbf16>
    %871 = arith.extf %870 : vector<4x128xbf16> to vector<4x128xf32>
    %872 = arith.maximumf %859, %871 : vector<4x128xf32>
    %cst_469 = arith.constant 8.000000e+00 : f32
    %873 = vector.broadcast %cst_469 : f32 to vector<4x128xf32>
    %874 = arith.subf %873, %769 : vector<4x128xf32>
    %875 = math.absf %874 : vector<4x128xf32>
    %cst_470 = arith.constant 1.000000e+00 : f32
    %876 = vector.broadcast %cst_470 : f32 to vector<4x128xf32>
    %877 = arith.subf %876, %875 : vector<4x128xf32>
    %cst_471 = arith.constant 0.000000e+00 : f32
    %878 = vector.broadcast %cst_471 : f32 to vector<4x128xf32>
    %879 = arith.maximumf %877, %878 : vector<4x128xf32>
    %880 = arith.mulf %871, %879 : vector<4x128xf32>
    %881 = arith.addf %868, %880 : vector<4x128xf32>
    %c2_472 = arith.constant 2 : index
    %c9_473 = arith.constant 9 : index
    %c0_474 = arith.constant 0 : index
    %c0_475 = arith.constant 0 : index
    %882 = vector.load %arg2[%c2_472, %c9_473, %c0_474, %c0_475] : memref<4x16x4x128xbf16, #tpu.memory_space<vmem>>, vector<1x1x4x128xbf16>
    %883 = vector.shape_cast %882 : vector<1x1x4x128xbf16> to vector<4x128xbf16>
    %884 = arith.extf %883 : vector<4x128xbf16> to vector<4x128xf32>
    %885 = arith.maximumf %872, %884 : vector<4x128xf32>
    %cst_476 = arith.constant 9.000000e+00 : f32
    %886 = vector.broadcast %cst_476 : f32 to vector<4x128xf32>
    %887 = arith.subf %886, %769 : vector<4x128xf32>
    %888 = math.absf %887 : vector<4x128xf32>
    %cst_477 = arith.constant 1.000000e+00 : f32
    %889 = vector.broadcast %cst_477 : f32 to vector<4x128xf32>
    %890 = arith.subf %889, %888 : vector<4x128xf32>
    %cst_478 = arith.constant 0.000000e+00 : f32
    %891 = vector.broadcast %cst_478 : f32 to vector<4x128xf32>
    %892 = arith.maximumf %890, %891 : vector<4x128xf32>
    %893 = arith.mulf %884, %892 : vector<4x128xf32>
    %894 = arith.addf %881, %893 : vector<4x128xf32>
    %c2_479 = arith.constant 2 : index
    %c10_480 = arith.constant 10 : index
    %c0_481 = arith.constant 0 : index
    %c0_482 = arith.constant 0 : index
    %895 = vector.load %arg2[%c2_479, %c10_480, %c0_481, %c0_482] : memref<4x16x4x128xbf16, #tpu.memory_space<vmem>>, vector<1x1x4x128xbf16>
    %896 = vector.shape_cast %895 : vector<1x1x4x128xbf16> to vector<4x128xbf16>
    %897 = arith.extf %896 : vector<4x128xbf16> to vector<4x128xf32>
    %898 = arith.maximumf %885, %897 : vector<4x128xf32>
    %cst_483 = arith.constant 1.000000e+01 : f32
    %899 = vector.broadcast %cst_483 : f32 to vector<4x128xf32>
    %900 = arith.subf %899, %769 : vector<4x128xf32>
    %901 = math.absf %900 : vector<4x128xf32>
    %cst_484 = arith.constant 1.000000e+00 : f32
    %902 = vector.broadcast %cst_484 : f32 to vector<4x128xf32>
    %903 = arith.subf %902, %901 : vector<4x128xf32>
    %cst_485 = arith.constant 0.000000e+00 : f32
    %904 = vector.broadcast %cst_485 : f32 to vector<4x128xf32>
    %905 = arith.maximumf %903, %904 : vector<4x128xf32>
    %906 = arith.mulf %897, %905 : vector<4x128xf32>
    %907 = arith.addf %894, %906 : vector<4x128xf32>
    %c2_486 = arith.constant 2 : index
    %c11_487 = arith.constant 11 : index
    %c0_488 = arith.constant 0 : index
    %c0_489 = arith.constant 0 : index
    %908 = vector.load %arg2[%c2_486, %c11_487, %c0_488, %c0_489] : memref<4x16x4x128xbf16, #tpu.memory_space<vmem>>, vector<1x1x4x128xbf16>
    %909 = vector.shape_cast %908 : vector<1x1x4x128xbf16> to vector<4x128xbf16>
    %910 = arith.extf %909 : vector<4x128xbf16> to vector<4x128xf32>
    %911 = arith.maximumf %898, %910 : vector<4x128xf32>
    %cst_490 = arith.constant 1.100000e+01 : f32
    %912 = vector.broadcast %cst_490 : f32 to vector<4x128xf32>
    %913 = arith.subf %912, %769 : vector<4x128xf32>
    %914 = math.absf %913 : vector<4x128xf32>
    %cst_491 = arith.constant 1.000000e+00 : f32
    %915 = vector.broadcast %cst_491 : f32 to vector<4x128xf32>
    %916 = arith.subf %915, %914 : vector<4x128xf32>
    %cst_492 = arith.constant 0.000000e+00 : f32
    %917 = vector.broadcast %cst_492 : f32 to vector<4x128xf32>
    %918 = arith.maximumf %916, %917 : vector<4x128xf32>
    %919 = arith.mulf %910, %918 : vector<4x128xf32>
    %920 = arith.addf %907, %919 : vector<4x128xf32>
    %c2_493 = arith.constant 2 : index
    %c12_494 = arith.constant 12 : index
    %c0_495 = arith.constant 0 : index
    %c0_496 = arith.constant 0 : index
    %921 = vector.load %arg2[%c2_493, %c12_494, %c0_495, %c0_496] : memref<4x16x4x128xbf16, #tpu.memory_space<vmem>>, vector<1x1x4x128xbf16>
    %922 = vector.shape_cast %921 : vector<1x1x4x128xbf16> to vector<4x128xbf16>
    %923 = arith.extf %922 : vector<4x128xbf16> to vector<4x128xf32>
    %924 = arith.maximumf %911, %923 : vector<4x128xf32>
    %cst_497 = arith.constant 1.200000e+01 : f32
    %925 = vector.broadcast %cst_497 : f32 to vector<4x128xf32>
    %926 = arith.subf %925, %769 : vector<4x128xf32>
    %927 = math.absf %926 : vector<4x128xf32>
    %cst_498 = arith.constant 1.000000e+00 : f32
    %928 = vector.broadcast %cst_498 : f32 to vector<4x128xf32>
    %929 = arith.subf %928, %927 : vector<4x128xf32>
    %cst_499 = arith.constant 0.000000e+00 : f32
    %930 = vector.broadcast %cst_499 : f32 to vector<4x128xf32>
    %931 = arith.maximumf %929, %930 : vector<4x128xf32>
    %932 = arith.mulf %923, %931 : vector<4x128xf32>
    %933 = arith.addf %920, %932 : vector<4x128xf32>
    %c2_500 = arith.constant 2 : index
    %c13_501 = arith.constant 13 : index
    %c0_502 = arith.constant 0 : index
    %c0_503 = arith.constant 0 : index
    %934 = vector.load %arg2[%c2_500, %c13_501, %c0_502, %c0_503] : memref<4x16x4x128xbf16, #tpu.memory_space<vmem>>, vector<1x1x4x128xbf16>
    %935 = vector.shape_cast %934 : vector<1x1x4x128xbf16> to vector<4x128xbf16>
    %936 = arith.extf %935 : vector<4x128xbf16> to vector<4x128xf32>
    %937 = arith.maximumf %924, %936 : vector<4x128xf32>
    %cst_504 = arith.constant 1.300000e+01 : f32
    %938 = vector.broadcast %cst_504 : f32 to vector<4x128xf32>
    %939 = arith.subf %938, %769 : vector<4x128xf32>
    %940 = math.absf %939 : vector<4x128xf32>
    %cst_505 = arith.constant 1.000000e+00 : f32
    %941 = vector.broadcast %cst_505 : f32 to vector<4x128xf32>
    %942 = arith.subf %941, %940 : vector<4x128xf32>
    %cst_506 = arith.constant 0.000000e+00 : f32
    %943 = vector.broadcast %cst_506 : f32 to vector<4x128xf32>
    %944 = arith.maximumf %942, %943 : vector<4x128xf32>
    %945 = arith.mulf %936, %944 : vector<4x128xf32>
    %946 = arith.addf %933, %945 : vector<4x128xf32>
    %c2_507 = arith.constant 2 : index
    %c14_508 = arith.constant 14 : index
    %c0_509 = arith.constant 0 : index
    %c0_510 = arith.constant 0 : index
    %947 = vector.load %arg2[%c2_507, %c14_508, %c0_509, %c0_510] : memref<4x16x4x128xbf16, #tpu.memory_space<vmem>>, vector<1x1x4x128xbf16>
    %948 = vector.shape_cast %947 : vector<1x1x4x128xbf16> to vector<4x128xbf16>
    %949 = arith.extf %948 : vector<4x128xbf16> to vector<4x128xf32>
    %950 = arith.maximumf %937, %949 : vector<4x128xf32>
    %cst_511 = arith.constant 1.400000e+01 : f32
    %951 = vector.broadcast %cst_511 : f32 to vector<4x128xf32>
    %952 = arith.subf %951, %769 : vector<4x128xf32>
    %953 = math.absf %952 : vector<4x128xf32>
    %cst_512 = arith.constant 1.000000e+00 : f32
    %954 = vector.broadcast %cst_512 : f32 to vector<4x128xf32>
    %955 = arith.subf %954, %953 : vector<4x128xf32>
    %cst_513 = arith.constant 0.000000e+00 : f32
    %956 = vector.broadcast %cst_513 : f32 to vector<4x128xf32>
    %957 = arith.maximumf %955, %956 : vector<4x128xf32>
    %958 = arith.mulf %949, %957 : vector<4x128xf32>
    %959 = arith.addf %946, %958 : vector<4x128xf32>
    %c2_514 = arith.constant 2 : index
    %c15_515 = arith.constant 15 : index
    %c0_516 = arith.constant 0 : index
    %c0_517 = arith.constant 0 : index
    %960 = vector.load %arg2[%c2_514, %c15_515, %c0_516, %c0_517] : memref<4x16x4x128xbf16, #tpu.memory_space<vmem>>, vector<1x1x4x128xbf16>
    %961 = vector.shape_cast %960 : vector<1x1x4x128xbf16> to vector<4x128xbf16>
    %962 = arith.extf %961 : vector<4x128xbf16> to vector<4x128xf32>
    %963 = arith.maximumf %950, %962 : vector<4x128xf32>
    %cst_518 = arith.constant 1.500000e+01 : f32
    %964 = vector.broadcast %cst_518 : f32 to vector<4x128xf32>
    %965 = arith.subf %964, %769 : vector<4x128xf32>
    %966 = math.absf %965 : vector<4x128xf32>
    %cst_519 = arith.constant 1.000000e+00 : f32
    %967 = vector.broadcast %cst_519 : f32 to vector<4x128xf32>
    %968 = arith.subf %967, %966 : vector<4x128xf32>
    %cst_520 = arith.constant 0.000000e+00 : f32
    %969 = vector.broadcast %cst_520 : f32 to vector<4x128xf32>
    %970 = arith.maximumf %968, %969 : vector<4x128xf32>
    %971 = arith.mulf %962, %970 : vector<4x128xf32>
    %972 = arith.addf %959, %971 : vector<4x128xf32>
    %cst_521 = arith.constant 0.000000e+00 : f32
    %973 = vector.broadcast %cst_521 : f32 to vector<4x128xf32>
    %c2_522 = arith.constant 2 : index
    %c0_523 = arith.constant 0 : index
    %c0_524 = arith.constant 0 : index
    %c0_525 = arith.constant 0 : index
    %974 = vector.load %arg2[%c2_522, %c0_523, %c0_524, %c0_525] : memref<4x16x4x128xbf16, #tpu.memory_space<vmem>>, vector<1x1x4x128xbf16>
    %975 = vector.shape_cast %974 : vector<1x1x4x128xbf16> to vector<4x128xbf16>
    %976 = arith.extf %975 : vector<4x128xbf16> to vector<4x128xf32>
    %977 = arith.subf %976, %963 : vector<4x128xf32>
    %978 = math.exp %977 : vector<4x128xf32>
    %979 = arith.addf %973, %978 : vector<4x128xf32>
    %c2_526 = arith.constant 2 : index
    %c1_527 = arith.constant 1 : index
    %c0_528 = arith.constant 0 : index
    %c0_529 = arith.constant 0 : index
    %980 = vector.load %arg2[%c2_526, %c1_527, %c0_528, %c0_529] : memref<4x16x4x128xbf16, #tpu.memory_space<vmem>>, vector<1x1x4x128xbf16>
    %981 = vector.shape_cast %980 : vector<1x1x4x128xbf16> to vector<4x128xbf16>
    %982 = arith.extf %981 : vector<4x128xbf16> to vector<4x128xf32>
    %983 = arith.subf %982, %963 : vector<4x128xf32>
    %984 = math.exp %983 : vector<4x128xf32>
    %985 = arith.addf %979, %984 : vector<4x128xf32>
    %c2_530 = arith.constant 2 : index
    %c2_531 = arith.constant 2 : index
    %c0_532 = arith.constant 0 : index
    %c0_533 = arith.constant 0 : index
    %986 = vector.load %arg2[%c2_530, %c2_531, %c0_532, %c0_533] : memref<4x16x4x128xbf16, #tpu.memory_space<vmem>>, vector<1x1x4x128xbf16>
    %987 = vector.shape_cast %986 : vector<1x1x4x128xbf16> to vector<4x128xbf16>
    %988 = arith.extf %987 : vector<4x128xbf16> to vector<4x128xf32>
    %989 = arith.subf %988, %963 : vector<4x128xf32>
    %990 = math.exp %989 : vector<4x128xf32>
    %991 = arith.addf %985, %990 : vector<4x128xf32>
    %c2_534 = arith.constant 2 : index
    %c3_535 = arith.constant 3 : index
    %c0_536 = arith.constant 0 : index
    %c0_537 = arith.constant 0 : index
    %992 = vector.load %arg2[%c2_534, %c3_535, %c0_536, %c0_537] : memref<4x16x4x128xbf16, #tpu.memory_space<vmem>>, vector<1x1x4x128xbf16>
    %993 = vector.shape_cast %992 : vector<1x1x4x128xbf16> to vector<4x128xbf16>
    %994 = arith.extf %993 : vector<4x128xbf16> to vector<4x128xf32>
    %995 = arith.subf %994, %963 : vector<4x128xf32>
    %996 = math.exp %995 : vector<4x128xf32>
    %997 = arith.addf %991, %996 : vector<4x128xf32>
    %c2_538 = arith.constant 2 : index
    %c4_539 = arith.constant 4 : index
    %c0_540 = arith.constant 0 : index
    %c0_541 = arith.constant 0 : index
    %998 = vector.load %arg2[%c2_538, %c4_539, %c0_540, %c0_541] : memref<4x16x4x128xbf16, #tpu.memory_space<vmem>>, vector<1x1x4x128xbf16>
    %999 = vector.shape_cast %998 : vector<1x1x4x128xbf16> to vector<4x128xbf16>
    %1000 = arith.extf %999 : vector<4x128xbf16> to vector<4x128xf32>
    %1001 = arith.subf %1000, %963 : vector<4x128xf32>
    %1002 = math.exp %1001 : vector<4x128xf32>
    %1003 = arith.addf %997, %1002 : vector<4x128xf32>
    %c2_542 = arith.constant 2 : index
    %c5_543 = arith.constant 5 : index
    %c0_544 = arith.constant 0 : index
    %c0_545 = arith.constant 0 : index
    %1004 = vector.load %arg2[%c2_542, %c5_543, %c0_544, %c0_545] : memref<4x16x4x128xbf16, #tpu.memory_space<vmem>>, vector<1x1x4x128xbf16>
    %1005 = vector.shape_cast %1004 : vector<1x1x4x128xbf16> to vector<4x128xbf16>
    %1006 = arith.extf %1005 : vector<4x128xbf16> to vector<4x128xf32>
    %1007 = arith.subf %1006, %963 : vector<4x128xf32>
    %1008 = math.exp %1007 : vector<4x128xf32>
    %1009 = arith.addf %1003, %1008 : vector<4x128xf32>
    %c2_546 = arith.constant 2 : index
    %c6_547 = arith.constant 6 : index
    %c0_548 = arith.constant 0 : index
    %c0_549 = arith.constant 0 : index
    %1010 = vector.load %arg2[%c2_546, %c6_547, %c0_548, %c0_549] : memref<4x16x4x128xbf16, #tpu.memory_space<vmem>>, vector<1x1x4x128xbf16>
    %1011 = vector.shape_cast %1010 : vector<1x1x4x128xbf16> to vector<4x128xbf16>
    %1012 = arith.extf %1011 : vector<4x128xbf16> to vector<4x128xf32>
    %1013 = arith.subf %1012, %963 : vector<4x128xf32>
    %1014 = math.exp %1013 : vector<4x128xf32>
    %1015 = arith.addf %1009, %1014 : vector<4x128xf32>
    %c2_550 = arith.constant 2 : index
    %c7_551 = arith.constant 7 : index
    %c0_552 = arith.constant 0 : index
    %c0_553 = arith.constant 0 : index
    %1016 = vector.load %arg2[%c2_550, %c7_551, %c0_552, %c0_553] : memref<4x16x4x128xbf16, #tpu.memory_space<vmem>>, vector<1x1x4x128xbf16>
    %1017 = vector.shape_cast %1016 : vector<1x1x4x128xbf16> to vector<4x128xbf16>
    %1018 = arith.extf %1017 : vector<4x128xbf16> to vector<4x128xf32>
    %1019 = arith.subf %1018, %963 : vector<4x128xf32>
    %1020 = math.exp %1019 : vector<4x128xf32>
    %1021 = arith.addf %1015, %1020 : vector<4x128xf32>
    %c2_554 = arith.constant 2 : index
    %c8_555 = arith.constant 8 : index
    %c0_556 = arith.constant 0 : index
    %c0_557 = arith.constant 0 : index
    %1022 = vector.load %arg2[%c2_554, %c8_555, %c0_556, %c0_557] : memref<4x16x4x128xbf16, #tpu.memory_space<vmem>>, vector<1x1x4x128xbf16>
    %1023 = vector.shape_cast %1022 : vector<1x1x4x128xbf16> to vector<4x128xbf16>
    %1024 = arith.extf %1023 : vector<4x128xbf16> to vector<4x128xf32>
    %1025 = arith.subf %1024, %963 : vector<4x128xf32>
    %1026 = math.exp %1025 : vector<4x128xf32>
    %1027 = arith.addf %1021, %1026 : vector<4x128xf32>
    %c2_558 = arith.constant 2 : index
    %c9_559 = arith.constant 9 : index
    %c0_560 = arith.constant 0 : index
    %c0_561 = arith.constant 0 : index
    %1028 = vector.load %arg2[%c2_558, %c9_559, %c0_560, %c0_561] : memref<4x16x4x128xbf16, #tpu.memory_space<vmem>>, vector<1x1x4x128xbf16>
    %1029 = vector.shape_cast %1028 : vector<1x1x4x128xbf16> to vector<4x128xbf16>
    %1030 = arith.extf %1029 : vector<4x128xbf16> to vector<4x128xf32>
    %1031 = arith.subf %1030, %963 : vector<4x128xf32>
    %1032 = math.exp %1031 : vector<4x128xf32>
    %1033 = arith.addf %1027, %1032 : vector<4x128xf32>
    %c2_562 = arith.constant 2 : index
    %c10_563 = arith.constant 10 : index
    %c0_564 = arith.constant 0 : index
    %c0_565 = arith.constant 0 : index
    %1034 = vector.load %arg2[%c2_562, %c10_563, %c0_564, %c0_565] : memref<4x16x4x128xbf16, #tpu.memory_space<vmem>>, vector<1x1x4x128xbf16>
    %1035 = vector.shape_cast %1034 : vector<1x1x4x128xbf16> to vector<4x128xbf16>
    %1036 = arith.extf %1035 : vector<4x128xbf16> to vector<4x128xf32>
    %1037 = arith.subf %1036, %963 : vector<4x128xf32>
    %1038 = math.exp %1037 : vector<4x128xf32>
    %1039 = arith.addf %1033, %1038 : vector<4x128xf32>
    %c2_566 = arith.constant 2 : index
    %c11_567 = arith.constant 11 : index
    %c0_568 = arith.constant 0 : index
    %c0_569 = arith.constant 0 : index
    %1040 = vector.load %arg2[%c2_566, %c11_567, %c0_568, %c0_569] : memref<4x16x4x128xbf16, #tpu.memory_space<vmem>>, vector<1x1x4x128xbf16>
    %1041 = vector.shape_cast %1040 : vector<1x1x4x128xbf16> to vector<4x128xbf16>
    %1042 = arith.extf %1041 : vector<4x128xbf16> to vector<4x128xf32>
    %1043 = arith.subf %1042, %963 : vector<4x128xf32>
    %1044 = math.exp %1043 : vector<4x128xf32>
    %1045 = arith.addf %1039, %1044 : vector<4x128xf32>
    %c2_570 = arith.constant 2 : index
    %c12_571 = arith.constant 12 : index
    %c0_572 = arith.constant 0 : index
    %c0_573 = arith.constant 0 : index
    %1046 = vector.load %arg2[%c2_570, %c12_571, %c0_572, %c0_573] : memref<4x16x4x128xbf16, #tpu.memory_space<vmem>>, vector<1x1x4x128xbf16>
    %1047 = vector.shape_cast %1046 : vector<1x1x4x128xbf16> to vector<4x128xbf16>
    %1048 = arith.extf %1047 : vector<4x128xbf16> to vector<4x128xf32>
    %1049 = arith.subf %1048, %963 : vector<4x128xf32>
    %1050 = math.exp %1049 : vector<4x128xf32>
    %1051 = arith.addf %1045, %1050 : vector<4x128xf32>
    %c2_574 = arith.constant 2 : index
    %c13_575 = arith.constant 13 : index
    %c0_576 = arith.constant 0 : index
    %c0_577 = arith.constant 0 : index
    %1052 = vector.load %arg2[%c2_574, %c13_575, %c0_576, %c0_577] : memref<4x16x4x128xbf16, #tpu.memory_space<vmem>>, vector<1x1x4x128xbf16>
    %1053 = vector.shape_cast %1052 : vector<1x1x4x128xbf16> to vector<4x128xbf16>
    %1054 = arith.extf %1053 : vector<4x128xbf16> to vector<4x128xf32>
    %1055 = arith.subf %1054, %963 : vector<4x128xf32>
    %1056 = math.exp %1055 : vector<4x128xf32>
    %1057 = arith.addf %1051, %1056 : vector<4x128xf32>
    %c2_578 = arith.constant 2 : index
    %c14_579 = arith.constant 14 : index
    %c0_580 = arith.constant 0 : index
    %c0_581 = arith.constant 0 : index
    %1058 = vector.load %arg2[%c2_578, %c14_579, %c0_580, %c0_581] : memref<4x16x4x128xbf16, #tpu.memory_space<vmem>>, vector<1x1x4x128xbf16>
    %1059 = vector.shape_cast %1058 : vector<1x1x4x128xbf16> to vector<4x128xbf16>
    %1060 = arith.extf %1059 : vector<4x128xbf16> to vector<4x128xf32>
    %1061 = arith.subf %1060, %963 : vector<4x128xf32>
    %1062 = math.exp %1061 : vector<4x128xf32>
    %1063 = arith.addf %1057, %1062 : vector<4x128xf32>
    %c2_582 = arith.constant 2 : index
    %c15_583 = arith.constant 15 : index
    %c0_584 = arith.constant 0 : index
    %c0_585 = arith.constant 0 : index
    %1064 = vector.load %arg2[%c2_582, %c15_583, %c0_584, %c0_585] : memref<4x16x4x128xbf16, #tpu.memory_space<vmem>>, vector<1x1x4x128xbf16>
    %1065 = vector.shape_cast %1064 : vector<1x1x4x128xbf16> to vector<4x128xbf16>
    %1066 = arith.extf %1065 : vector<4x128xbf16> to vector<4x128xf32>
    %1067 = arith.subf %1066, %963 : vector<4x128xf32>
    %1068 = math.exp %1067 : vector<4x128xf32>
    %1069 = arith.addf %1063, %1068 : vector<4x128xf32>
    %1070 = math.log %1069 : vector<4x128xf32>
    %1071 = arith.addf %963, %1070 : vector<4x128xf32>
    %1072 = arith.subf %1071, %972 : vector<4x128xf32>
    %1073 = arith.addf %765, %1072 : vector<4x128xf32>
    %cst_586 = arith.constant 0.000000e+00 : f32
    %cst_587 = arith.constant 1.499000e+01 : f32
    %1074 = vector.broadcast %cst_586 : f32 to vector<4x128xf32>
    %1075 = arith.maximumf %1074, %148 : vector<4x128xf32>
    %1076 = vector.broadcast %cst_587 : f32 to vector<4x128xf32>
    %1077 = arith.minimumf %1076, %1075 : vector<4x128xf32>
    %c3_588 = arith.constant 3 : index
    %c0_589 = arith.constant 0 : index
    %c0_590 = arith.constant 0 : index
    %c0_591 = arith.constant 0 : index
    %1078 = vector.load %arg2[%c3_588, %c0_589, %c0_590, %c0_591] : memref<4x16x4x128xbf16, #tpu.memory_space<vmem>>, vector<1x1x4x128xbf16>
    %1079 = vector.shape_cast %1078 : vector<1x1x4x128xbf16> to vector<4x128xbf16>
    %1080 = arith.extf %1079 : vector<4x128xbf16> to vector<4x128xf32>
    %cst_592 = arith.constant 1.000000e+00 : f32
    %1081 = vector.broadcast %cst_592 : f32 to vector<4x128xf32>
    %1082 = arith.subf %1081, %1077 : vector<4x128xf32>
    %cst_593 = arith.constant 0.000000e+00 : f32
    %1083 = vector.broadcast %cst_593 : f32 to vector<4x128xf32>
    %1084 = arith.maximumf %1082, %1083 : vector<4x128xf32>
    %1085 = arith.mulf %1080, %1084 : vector<4x128xf32>
    %c3_594 = arith.constant 3 : index
    %c1_595 = arith.constant 1 : index
    %c0_596 = arith.constant 0 : index
    %c0_597 = arith.constant 0 : index
    %1086 = vector.load %arg2[%c3_594, %c1_595, %c0_596, %c0_597] : memref<4x16x4x128xbf16, #tpu.memory_space<vmem>>, vector<1x1x4x128xbf16>
    %1087 = vector.shape_cast %1086 : vector<1x1x4x128xbf16> to vector<4x128xbf16>
    %1088 = arith.extf %1087 : vector<4x128xbf16> to vector<4x128xf32>
    %1089 = arith.maximumf %1080, %1088 : vector<4x128xf32>
    %cst_598 = arith.constant 1.000000e+00 : f32
    %1090 = vector.broadcast %cst_598 : f32 to vector<4x128xf32>
    %1091 = arith.subf %1090, %1077 : vector<4x128xf32>
    %1092 = math.absf %1091 : vector<4x128xf32>
    %cst_599 = arith.constant 1.000000e+00 : f32
    %1093 = vector.broadcast %cst_599 : f32 to vector<4x128xf32>
    %1094 = arith.subf %1093, %1092 : vector<4x128xf32>
    %cst_600 = arith.constant 0.000000e+00 : f32
    %1095 = vector.broadcast %cst_600 : f32 to vector<4x128xf32>
    %1096 = arith.maximumf %1094, %1095 : vector<4x128xf32>
    %1097 = arith.mulf %1088, %1096 : vector<4x128xf32>
    %1098 = arith.addf %1085, %1097 : vector<4x128xf32>
    %c3_601 = arith.constant 3 : index
    %c2_602 = arith.constant 2 : index
    %c0_603 = arith.constant 0 : index
    %c0_604 = arith.constant 0 : index
    %1099 = vector.load %arg2[%c3_601, %c2_602, %c0_603, %c0_604] : memref<4x16x4x128xbf16, #tpu.memory_space<vmem>>, vector<1x1x4x128xbf16>
    %1100 = vector.shape_cast %1099 : vector<1x1x4x128xbf16> to vector<4x128xbf16>
    %1101 = arith.extf %1100 : vector<4x128xbf16> to vector<4x128xf32>
    %1102 = arith.maximumf %1089, %1101 : vector<4x128xf32>
    %cst_605 = arith.constant 2.000000e+00 : f32
    %1103 = vector.broadcast %cst_605 : f32 to vector<4x128xf32>
    %1104 = arith.subf %1103, %1077 : vector<4x128xf32>
    %1105 = math.absf %1104 : vector<4x128xf32>
    %cst_606 = arith.constant 1.000000e+00 : f32
    %1106 = vector.broadcast %cst_606 : f32 to vector<4x128xf32>
    %1107 = arith.subf %1106, %1105 : vector<4x128xf32>
    %cst_607 = arith.constant 0.000000e+00 : f32
    %1108 = vector.broadcast %cst_607 : f32 to vector<4x128xf32>
    %1109 = arith.maximumf %1107, %1108 : vector<4x128xf32>
    %1110 = arith.mulf %1101, %1109 : vector<4x128xf32>
    %1111 = arith.addf %1098, %1110 : vector<4x128xf32>
    %c3_608 = arith.constant 3 : index
    %c3_609 = arith.constant 3 : index
    %c0_610 = arith.constant 0 : index
    %c0_611 = arith.constant 0 : index
    %1112 = vector.load %arg2[%c3_608, %c3_609, %c0_610, %c0_611] : memref<4x16x4x128xbf16, #tpu.memory_space<vmem>>, vector<1x1x4x128xbf16>
    %1113 = vector.shape_cast %1112 : vector<1x1x4x128xbf16> to vector<4x128xbf16>
    %1114 = arith.extf %1113 : vector<4x128xbf16> to vector<4x128xf32>
    %1115 = arith.maximumf %1102, %1114 : vector<4x128xf32>
    %cst_612 = arith.constant 3.000000e+00 : f32
    %1116 = vector.broadcast %cst_612 : f32 to vector<4x128xf32>
    %1117 = arith.subf %1116, %1077 : vector<4x128xf32>
    %1118 = math.absf %1117 : vector<4x128xf32>
    %cst_613 = arith.constant 1.000000e+00 : f32
    %1119 = vector.broadcast %cst_613 : f32 to vector<4x128xf32>
    %1120 = arith.subf %1119, %1118 : vector<4x128xf32>
    %cst_614 = arith.constant 0.000000e+00 : f32
    %1121 = vector.broadcast %cst_614 : f32 to vector<4x128xf32>
    %1122 = arith.maximumf %1120, %1121 : vector<4x128xf32>
    %1123 = arith.mulf %1114, %1122 : vector<4x128xf32>
    %1124 = arith.addf %1111, %1123 : vector<4x128xf32>
    %c3_615 = arith.constant 3 : index
    %c4_616 = arith.constant 4 : index
    %c0_617 = arith.constant 0 : index
    %c0_618 = arith.constant 0 : index
    %1125 = vector.load %arg2[%c3_615, %c4_616, %c0_617, %c0_618] : memref<4x16x4x128xbf16, #tpu.memory_space<vmem>>, vector<1x1x4x128xbf16>
    %1126 = vector.shape_cast %1125 : vector<1x1x4x128xbf16> to vector<4x128xbf16>
    %1127 = arith.extf %1126 : vector<4x128xbf16> to vector<4x128xf32>
    %1128 = arith.maximumf %1115, %1127 : vector<4x128xf32>
    %cst_619 = arith.constant 4.000000e+00 : f32
    %1129 = vector.broadcast %cst_619 : f32 to vector<4x128xf32>
    %1130 = arith.subf %1129, %1077 : vector<4x128xf32>
    %1131 = math.absf %1130 : vector<4x128xf32>
    %cst_620 = arith.constant 1.000000e+00 : f32
    %1132 = vector.broadcast %cst_620 : f32 to vector<4x128xf32>
    %1133 = arith.subf %1132, %1131 : vector<4x128xf32>
    %cst_621 = arith.constant 0.000000e+00 : f32
    %1134 = vector.broadcast %cst_621 : f32 to vector<4x128xf32>
    %1135 = arith.maximumf %1133, %1134 : vector<4x128xf32>
    %1136 = arith.mulf %1127, %1135 : vector<4x128xf32>
    %1137 = arith.addf %1124, %1136 : vector<4x128xf32>
    %c3_622 = arith.constant 3 : index
    %c5_623 = arith.constant 5 : index
    %c0_624 = arith.constant 0 : index
    %c0_625 = arith.constant 0 : index
    %1138 = vector.load %arg2[%c3_622, %c5_623, %c0_624, %c0_625] : memref<4x16x4x128xbf16, #tpu.memory_space<vmem>>, vector<1x1x4x128xbf16>
    %1139 = vector.shape_cast %1138 : vector<1x1x4x128xbf16> to vector<4x128xbf16>
    %1140 = arith.extf %1139 : vector<4x128xbf16> to vector<4x128xf32>
    %1141 = arith.maximumf %1128, %1140 : vector<4x128xf32>
    %cst_626 = arith.constant 5.000000e+00 : f32
    %1142 = vector.broadcast %cst_626 : f32 to vector<4x128xf32>
    %1143 = arith.subf %1142, %1077 : vector<4x128xf32>
    %1144 = math.absf %1143 : vector<4x128xf32>
    %cst_627 = arith.constant 1.000000e+00 : f32
    %1145 = vector.broadcast %cst_627 : f32 to vector<4x128xf32>
    %1146 = arith.subf %1145, %1144 : vector<4x128xf32>
    %cst_628 = arith.constant 0.000000e+00 : f32
    %1147 = vector.broadcast %cst_628 : f32 to vector<4x128xf32>
    %1148 = arith.maximumf %1146, %1147 : vector<4x128xf32>
    %1149 = arith.mulf %1140, %1148 : vector<4x128xf32>
    %1150 = arith.addf %1137, %1149 : vector<4x128xf32>
    %c3_629 = arith.constant 3 : index
    %c6_630 = arith.constant 6 : index
    %c0_631 = arith.constant 0 : index
    %c0_632 = arith.constant 0 : index
    %1151 = vector.load %arg2[%c3_629, %c6_630, %c0_631, %c0_632] : memref<4x16x4x128xbf16, #tpu.memory_space<vmem>>, vector<1x1x4x128xbf16>
    %1152 = vector.shape_cast %1151 : vector<1x1x4x128xbf16> to vector<4x128xbf16>
    %1153 = arith.extf %1152 : vector<4x128xbf16> to vector<4x128xf32>
    %1154 = arith.maximumf %1141, %1153 : vector<4x128xf32>
    %cst_633 = arith.constant 6.000000e+00 : f32
    %1155 = vector.broadcast %cst_633 : f32 to vector<4x128xf32>
    %1156 = arith.subf %1155, %1077 : vector<4x128xf32>
    %1157 = math.absf %1156 : vector<4x128xf32>
    %cst_634 = arith.constant 1.000000e+00 : f32
    %1158 = vector.broadcast %cst_634 : f32 to vector<4x128xf32>
    %1159 = arith.subf %1158, %1157 : vector<4x128xf32>
    %cst_635 = arith.constant 0.000000e+00 : f32
    %1160 = vector.broadcast %cst_635 : f32 to vector<4x128xf32>
    %1161 = arith.maximumf %1159, %1160 : vector<4x128xf32>
    %1162 = arith.mulf %1153, %1161 : vector<4x128xf32>
    %1163 = arith.addf %1150, %1162 : vector<4x128xf32>
    %c3_636 = arith.constant 3 : index
    %c7_637 = arith.constant 7 : index
    %c0_638 = arith.constant 0 : index
    %c0_639 = arith.constant 0 : index
    %1164 = vector.load %arg2[%c3_636, %c7_637, %c0_638, %c0_639] : memref<4x16x4x128xbf16, #tpu.memory_space<vmem>>, vector<1x1x4x128xbf16>
    %1165 = vector.shape_cast %1164 : vector<1x1x4x128xbf16> to vector<4x128xbf16>
    %1166 = arith.extf %1165 : vector<4x128xbf16> to vector<4x128xf32>
    %1167 = arith.maximumf %1154, %1166 : vector<4x128xf32>
    %cst_640 = arith.constant 7.000000e+00 : f32
    %1168 = vector.broadcast %cst_640 : f32 to vector<4x128xf32>
    %1169 = arith.subf %1168, %1077 : vector<4x128xf32>
    %1170 = math.absf %1169 : vector<4x128xf32>
    %cst_641 = arith.constant 1.000000e+00 : f32
    %1171 = vector.broadcast %cst_641 : f32 to vector<4x128xf32>
    %1172 = arith.subf %1171, %1170 : vector<4x128xf32>
    %cst_642 = arith.constant 0.000000e+00 : f32
    %1173 = vector.broadcast %cst_642 : f32 to vector<4x128xf32>
    %1174 = arith.maximumf %1172, %1173 : vector<4x128xf32>
    %1175 = arith.mulf %1166, %1174 : vector<4x128xf32>
    %1176 = arith.addf %1163, %1175 : vector<4x128xf32>
    %c3_643 = arith.constant 3 : index
    %c8_644 = arith.constant 8 : index
    %c0_645 = arith.constant 0 : index
    %c0_646 = arith.constant 0 : index
    %1177 = vector.load %arg2[%c3_643, %c8_644, %c0_645, %c0_646] : memref<4x16x4x128xbf16, #tpu.memory_space<vmem>>, vector<1x1x4x128xbf16>
    %1178 = vector.shape_cast %1177 : vector<1x1x4x128xbf16> to vector<4x128xbf16>
    %1179 = arith.extf %1178 : vector<4x128xbf16> to vector<4x128xf32>
    %1180 = arith.maximumf %1167, %1179 : vector<4x128xf32>
    %cst_647 = arith.constant 8.000000e+00 : f32
    %1181 = vector.broadcast %cst_647 : f32 to vector<4x128xf32>
    %1182 = arith.subf %1181, %1077 : vector<4x128xf32>
    %1183 = math.absf %1182 : vector<4x128xf32>
    %cst_648 = arith.constant 1.000000e+00 : f32
    %1184 = vector.broadcast %cst_648 : f32 to vector<4x128xf32>
    %1185 = arith.subf %1184, %1183 : vector<4x128xf32>
    %cst_649 = arith.constant 0.000000e+00 : f32
    %1186 = vector.broadcast %cst_649 : f32 to vector<4x128xf32>
    %1187 = arith.maximumf %1185, %1186 : vector<4x128xf32>
    %1188 = arith.mulf %1179, %1187 : vector<4x128xf32>
    %1189 = arith.addf %1176, %1188 : vector<4x128xf32>
    %c3_650 = arith.constant 3 : index
    %c9_651 = arith.constant 9 : index
    %c0_652 = arith.constant 0 : index
    %c0_653 = arith.constant 0 : index
    %1190 = vector.load %arg2[%c3_650, %c9_651, %c0_652, %c0_653] : memref<4x16x4x128xbf16, #tpu.memory_space<vmem>>, vector<1x1x4x128xbf16>
    %1191 = vector.shape_cast %1190 : vector<1x1x4x128xbf16> to vector<4x128xbf16>
    %1192 = arith.extf %1191 : vector<4x128xbf16> to vector<4x128xf32>
    %1193 = arith.maximumf %1180, %1192 : vector<4x128xf32>
    %cst_654 = arith.constant 9.000000e+00 : f32
    %1194 = vector.broadcast %cst_654 : f32 to vector<4x128xf32>
    %1195 = arith.subf %1194, %1077 : vector<4x128xf32>
    %1196 = math.absf %1195 : vector<4x128xf32>
    %cst_655 = arith.constant 1.000000e+00 : f32
    %1197 = vector.broadcast %cst_655 : f32 to vector<4x128xf32>
    %1198 = arith.subf %1197, %1196 : vector<4x128xf32>
    %cst_656 = arith.constant 0.000000e+00 : f32
    %1199 = vector.broadcast %cst_656 : f32 to vector<4x128xf32>
    %1200 = arith.maximumf %1198, %1199 : vector<4x128xf32>
    %1201 = arith.mulf %1192, %1200 : vector<4x128xf32>
    %1202 = arith.addf %1189, %1201 : vector<4x128xf32>
    %c3_657 = arith.constant 3 : index
    %c10_658 = arith.constant 10 : index
    %c0_659 = arith.constant 0 : index
    %c0_660 = arith.constant 0 : index
    %1203 = vector.load %arg2[%c3_657, %c10_658, %c0_659, %c0_660] : memref<4x16x4x128xbf16, #tpu.memory_space<vmem>>, vector<1x1x4x128xbf16>
    %1204 = vector.shape_cast %1203 : vector<1x1x4x128xbf16> to vector<4x128xbf16>
    %1205 = arith.extf %1204 : vector<4x128xbf16> to vector<4x128xf32>
    %1206 = arith.maximumf %1193, %1205 : vector<4x128xf32>
    %cst_661 = arith.constant 1.000000e+01 : f32
    %1207 = vector.broadcast %cst_661 : f32 to vector<4x128xf32>
    %1208 = arith.subf %1207, %1077 : vector<4x128xf32>
    %1209 = math.absf %1208 : vector<4x128xf32>
    %cst_662 = arith.constant 1.000000e+00 : f32
    %1210 = vector.broadcast %cst_662 : f32 to vector<4x128xf32>
    %1211 = arith.subf %1210, %1209 : vector<4x128xf32>
    %cst_663 = arith.constant 0.000000e+00 : f32
    %1212 = vector.broadcast %cst_663 : f32 to vector<4x128xf32>
    %1213 = arith.maximumf %1211, %1212 : vector<4x128xf32>
    %1214 = arith.mulf %1205, %1213 : vector<4x128xf32>
    %1215 = arith.addf %1202, %1214 : vector<4x128xf32>
    %c3_664 = arith.constant 3 : index
    %c11_665 = arith.constant 11 : index
    %c0_666 = arith.constant 0 : index
    %c0_667 = arith.constant 0 : index
    %1216 = vector.load %arg2[%c3_664, %c11_665, %c0_666, %c0_667] : memref<4x16x4x128xbf16, #tpu.memory_space<vmem>>, vector<1x1x4x128xbf16>
    %1217 = vector.shape_cast %1216 : vector<1x1x4x128xbf16> to vector<4x128xbf16>
    %1218 = arith.extf %1217 : vector<4x128xbf16> to vector<4x128xf32>
    %1219 = arith.maximumf %1206, %1218 : vector<4x128xf32>
    %cst_668 = arith.constant 1.100000e+01 : f32
    %1220 = vector.broadcast %cst_668 : f32 to vector<4x128xf32>
    %1221 = arith.subf %1220, %1077 : vector<4x128xf32>
    %1222 = math.absf %1221 : vector<4x128xf32>
    %cst_669 = arith.constant 1.000000e+00 : f32
    %1223 = vector.broadcast %cst_669 : f32 to vector<4x128xf32>
    %1224 = arith.subf %1223, %1222 : vector<4x128xf32>
    %cst_670 = arith.constant 0.000000e+00 : f32
    %1225 = vector.broadcast %cst_670 : f32 to vector<4x128xf32>
    %1226 = arith.maximumf %1224, %1225 : vector<4x128xf32>
    %1227 = arith.mulf %1218, %1226 : vector<4x128xf32>
    %1228 = arith.addf %1215, %1227 : vector<4x128xf32>
    %c3_671 = arith.constant 3 : index
    %c12_672 = arith.constant 12 : index
    %c0_673 = arith.constant 0 : index
    %c0_674 = arith.constant 0 : index
    %1229 = vector.load %arg2[%c3_671, %c12_672, %c0_673, %c0_674] : memref<4x16x4x128xbf16, #tpu.memory_space<vmem>>, vector<1x1x4x128xbf16>
    %1230 = vector.shape_cast %1229 : vector<1x1x4x128xbf16> to vector<4x128xbf16>
    %1231 = arith.extf %1230 : vector<4x128xbf16> to vector<4x128xf32>
    %1232 = arith.maximumf %1219, %1231 : vector<4x128xf32>
    %cst_675 = arith.constant 1.200000e+01 : f32
    %1233 = vector.broadcast %cst_675 : f32 to vector<4x128xf32>
    %1234 = arith.subf %1233, %1077 : vector<4x128xf32>
    %1235 = math.absf %1234 : vector<4x128xf32>
    %cst_676 = arith.constant 1.000000e+00 : f32
    %1236 = vector.broadcast %cst_676 : f32 to vector<4x128xf32>
    %1237 = arith.subf %1236, %1235 : vector<4x128xf32>
    %cst_677 = arith.constant 0.000000e+00 : f32
    %1238 = vector.broadcast %cst_677 : f32 to vector<4x128xf32>
    %1239 = arith.maximumf %1237, %1238 : vector<4x128xf32>
    %1240 = arith.mulf %1231, %1239 : vector<4x128xf32>
    %1241 = arith.addf %1228, %1240 : vector<4x128xf32>
    %c3_678 = arith.constant 3 : index
    %c13_679 = arith.constant 13 : index
    %c0_680 = arith.constant 0 : index
    %c0_681 = arith.constant 0 : index
    %1242 = vector.load %arg2[%c3_678, %c13_679, %c0_680, %c0_681] : memref<4x16x4x128xbf16, #tpu.memory_space<vmem>>, vector<1x1x4x128xbf16>
    %1243 = vector.shape_cast %1242 : vector<1x1x4x128xbf16> to vector<4x128xbf16>
    %1244 = arith.extf %1243 : vector<4x128xbf16> to vector<4x128xf32>
    %1245 = arith.maximumf %1232, %1244 : vector<4x128xf32>
    %cst_682 = arith.constant 1.300000e+01 : f32
    %1246 = vector.broadcast %cst_682 : f32 to vector<4x128xf32>
    %1247 = arith.subf %1246, %1077 : vector<4x128xf32>
    %1248 = math.absf %1247 : vector<4x128xf32>
    %cst_683 = arith.constant 1.000000e+00 : f32
    %1249 = vector.broadcast %cst_683 : f32 to vector<4x128xf32>
    %1250 = arith.subf %1249, %1248 : vector<4x128xf32>
    %cst_684 = arith.constant 0.000000e+00 : f32
    %1251 = vector.broadcast %cst_684 : f32 to vector<4x128xf32>
    %1252 = arith.maximumf %1250, %1251 : vector<4x128xf32>
    %1253 = arith.mulf %1244, %1252 : vector<4x128xf32>
    %1254 = arith.addf %1241, %1253 : vector<4x128xf32>
    %c3_685 = arith.constant 3 : index
    %c14_686 = arith.constant 14 : index
    %c0_687 = arith.constant 0 : index
    %c0_688 = arith.constant 0 : index
    %1255 = vector.load %arg2[%c3_685, %c14_686, %c0_687, %c0_688] : memref<4x16x4x128xbf16, #tpu.memory_space<vmem>>, vector<1x1x4x128xbf16>
    %1256 = vector.shape_cast %1255 : vector<1x1x4x128xbf16> to vector<4x128xbf16>
    %1257 = arith.extf %1256 : vector<4x128xbf16> to vector<4x128xf32>
    %1258 = arith.maximumf %1245, %1257 : vector<4x128xf32>
    %cst_689 = arith.constant 1.400000e+01 : f32
    %1259 = vector.broadcast %cst_689 : f32 to vector<4x128xf32>
    %1260 = arith.subf %1259, %1077 : vector<4x128xf32>
    %1261 = math.absf %1260 : vector<4x128xf32>
    %cst_690 = arith.constant 1.000000e+00 : f32
    %1262 = vector.broadcast %cst_690 : f32 to vector<4x128xf32>
    %1263 = arith.subf %1262, %1261 : vector<4x128xf32>
    %cst_691 = arith.constant 0.000000e+00 : f32
    %1264 = vector.broadcast %cst_691 : f32 to vector<4x128xf32>
    %1265 = arith.maximumf %1263, %1264 : vector<4x128xf32>
    %1266 = arith.mulf %1257, %1265 : vector<4x128xf32>
    %1267 = arith.addf %1254, %1266 : vector<4x128xf32>
    %c3_692 = arith.constant 3 : index
    %c15_693 = arith.constant 15 : index
    %c0_694 = arith.constant 0 : index
    %c0_695 = arith.constant 0 : index
    %1268 = vector.load %arg2[%c3_692, %c15_693, %c0_694, %c0_695] : memref<4x16x4x128xbf16, #tpu.memory_space<vmem>>, vector<1x1x4x128xbf16>
    %1269 = vector.shape_cast %1268 : vector<1x1x4x128xbf16> to vector<4x128xbf16>
    %1270 = arith.extf %1269 : vector<4x128xbf16> to vector<4x128xf32>
    %1271 = arith.maximumf %1258, %1270 : vector<4x128xf32>
    %cst_696 = arith.constant 1.500000e+01 : f32
    %1272 = vector.broadcast %cst_696 : f32 to vector<4x128xf32>
    %1273 = arith.subf %1272, %1077 : vector<4x128xf32>
    %1274 = math.absf %1273 : vector<4x128xf32>
    %cst_697 = arith.constant 1.000000e+00 : f32
    %1275 = vector.broadcast %cst_697 : f32 to vector<4x128xf32>
    %1276 = arith.subf %1275, %1274 : vector<4x128xf32>
    %cst_698 = arith.constant 0.000000e+00 : f32
    %1277 = vector.broadcast %cst_698 : f32 to vector<4x128xf32>
    %1278 = arith.maximumf %1276, %1277 : vector<4x128xf32>
    %1279 = arith.mulf %1270, %1278 : vector<4x128xf32>
    %1280 = arith.addf %1267, %1279 : vector<4x128xf32>
    %cst_699 = arith.constant 0.000000e+00 : f32
    %1281 = vector.broadcast %cst_699 : f32 to vector<4x128xf32>
    %c3_700 = arith.constant 3 : index
    %c0_701 = arith.constant 0 : index
    %c0_702 = arith.constant 0 : index
    %c0_703 = arith.constant 0 : index
    %1282 = vector.load %arg2[%c3_700, %c0_701, %c0_702, %c0_703] : memref<4x16x4x128xbf16, #tpu.memory_space<vmem>>, vector<1x1x4x128xbf16>
    %1283 = vector.shape_cast %1282 : vector<1x1x4x128xbf16> to vector<4x128xbf16>
    %1284 = arith.extf %1283 : vector<4x128xbf16> to vector<4x128xf32>
    %1285 = arith.subf %1284, %1271 : vector<4x128xf32>
    %1286 = math.exp %1285 : vector<4x128xf32>
    %1287 = arith.addf %1281, %1286 : vector<4x128xf32>
    %c3_704 = arith.constant 3 : index
    %c1_705 = arith.constant 1 : index
    %c0_706 = arith.constant 0 : index
    %c0_707 = arith.constant 0 : index
    %1288 = vector.load %arg2[%c3_704, %c1_705, %c0_706, %c0_707] : memref<4x16x4x128xbf16, #tpu.memory_space<vmem>>, vector<1x1x4x128xbf16>
    %1289 = vector.shape_cast %1288 : vector<1x1x4x128xbf16> to vector<4x128xbf16>
    %1290 = arith.extf %1289 : vector<4x128xbf16> to vector<4x128xf32>
    %1291 = arith.subf %1290, %1271 : vector<4x128xf32>
    %1292 = math.exp %1291 : vector<4x128xf32>
    %1293 = arith.addf %1287, %1292 : vector<4x128xf32>
    %c3_708 = arith.constant 3 : index
    %c2_709 = arith.constant 2 : index
    %c0_710 = arith.constant 0 : index
    %c0_711 = arith.constant 0 : index
    %1294 = vector.load %arg2[%c3_708, %c2_709, %c0_710, %c0_711] : memref<4x16x4x128xbf16, #tpu.memory_space<vmem>>, vector<1x1x4x128xbf16>
    %1295 = vector.shape_cast %1294 : vector<1x1x4x128xbf16> to vector<4x128xbf16>
    %1296 = arith.extf %1295 : vector<4x128xbf16> to vector<4x128xf32>
    %1297 = arith.subf %1296, %1271 : vector<4x128xf32>
    %1298 = math.exp %1297 : vector<4x128xf32>
    %1299 = arith.addf %1293, %1298 : vector<4x128xf32>
    %c3_712 = arith.constant 3 : index
    %c3_713 = arith.constant 3 : index
    %c0_714 = arith.constant 0 : index
    %c0_715 = arith.constant 0 : index
    %1300 = vector.load %arg2[%c3_712, %c3_713, %c0_714, %c0_715] : memref<4x16x4x128xbf16, #tpu.memory_space<vmem>>, vector<1x1x4x128xbf16>
    %1301 = vector.shape_cast %1300 : vector<1x1x4x128xbf16> to vector<4x128xbf16>
    %1302 = arith.extf %1301 : vector<4x128xbf16> to vector<4x128xf32>
    %1303 = arith.subf %1302, %1271 : vector<4x128xf32>
    %1304 = math.exp %1303 : vector<4x128xf32>
    %1305 = arith.addf %1299, %1304 : vector<4x128xf32>
    %c3_716 = arith.constant 3 : index
    %c4_717 = arith.constant 4 : index
    %c0_718 = arith.constant 0 : index
    %c0_719 = arith.constant 0 : index
    %1306 = vector.load %arg2[%c3_716, %c4_717, %c0_718, %c0_719] : memref<4x16x4x128xbf16, #tpu.memory_space<vmem>>, vector<1x1x4x128xbf16>
    %1307 = vector.shape_cast %1306 : vector<1x1x4x128xbf16> to vector<4x128xbf16>
    %1308 = arith.extf %1307 : vector<4x128xbf16> to vector<4x128xf32>
    %1309 = arith.subf %1308, %1271 : vector<4x128xf32>
    %1310 = math.exp %1309 : vector<4x128xf32>
    %1311 = arith.addf %1305, %1310 : vector<4x128xf32>
    %c3_720 = arith.constant 3 : index
    %c5_721 = arith.constant 5 : index
    %c0_722 = arith.constant 0 : index
    %c0_723 = arith.constant 0 : index
    %1312 = vector.load %arg2[%c3_720, %c5_721, %c0_722, %c0_723] : memref<4x16x4x128xbf16, #tpu.memory_space<vmem>>, vector<1x1x4x128xbf16>
    %1313 = vector.shape_cast %1312 : vector<1x1x4x128xbf16> to vector<4x128xbf16>
    %1314 = arith.extf %1313 : vector<4x128xbf16> to vector<4x128xf32>
    %1315 = arith.subf %1314, %1271 : vector<4x128xf32>
    %1316 = math.exp %1315 : vector<4x128xf32>
    %1317 = arith.addf %1311, %1316 : vector<4x128xf32>
    %c3_724 = arith.constant 3 : index
    %c6_725 = arith.constant 6 : index
    %c0_726 = arith.constant 0 : index
    %c0_727 = arith.constant 0 : index
    %1318 = vector.load %arg2[%c3_724, %c6_725, %c0_726, %c0_727] : memref<4x16x4x128xbf16, #tpu.memory_space<vmem>>, vector<1x1x4x128xbf16>
    %1319 = vector.shape_cast %1318 : vector<1x1x4x128xbf16> to vector<4x128xbf16>
    %1320 = arith.extf %1319 : vector<4x128xbf16> to vector<4x128xf32>
    %1321 = arith.subf %1320, %1271 : vector<4x128xf32>
    %1322 = math.exp %1321 : vector<4x128xf32>
    %1323 = arith.addf %1317, %1322 : vector<4x128xf32>
    %c3_728 = arith.constant 3 : index
    %c7_729 = arith.constant 7 : index
    %c0_730 = arith.constant 0 : index
    %c0_731 = arith.constant 0 : index
    %1324 = vector.load %arg2[%c3_728, %c7_729, %c0_730, %c0_731] : memref<4x16x4x128xbf16, #tpu.memory_space<vmem>>, vector<1x1x4x128xbf16>
    %1325 = vector.shape_cast %1324 : vector<1x1x4x128xbf16> to vector<4x128xbf16>
    %1326 = arith.extf %1325 : vector<4x128xbf16> to vector<4x128xf32>
    %1327 = arith.subf %1326, %1271 : vector<4x128xf32>
    %1328 = math.exp %1327 : vector<4x128xf32>
    %1329 = arith.addf %1323, %1328 : vector<4x128xf32>
    %c3_732 = arith.constant 3 : index
    %c8_733 = arith.constant 8 : index
    %c0_734 = arith.constant 0 : index
    %c0_735 = arith.constant 0 : index
    %1330 = vector.load %arg2[%c3_732, %c8_733, %c0_734, %c0_735] : memref<4x16x4x128xbf16, #tpu.memory_space<vmem>>, vector<1x1x4x128xbf16>
    %1331 = vector.shape_cast %1330 : vector<1x1x4x128xbf16> to vector<4x128xbf16>
    %1332 = arith.extf %1331 : vector<4x128xbf16> to vector<4x128xf32>
    %1333 = arith.subf %1332, %1271 : vector<4x128xf32>
    %1334 = math.exp %1333 : vector<4x128xf32>
    %1335 = arith.addf %1329, %1334 : vector<4x128xf32>
    %c3_736 = arith.constant 3 : index
    %c9_737 = arith.constant 9 : index
    %c0_738 = arith.constant 0 : index
    %c0_739 = arith.constant 0 : index
    %1336 = vector.load %arg2[%c3_736, %c9_737, %c0_738, %c0_739] : memref<4x16x4x128xbf16, #tpu.memory_space<vmem>>, vector<1x1x4x128xbf16>
    %1337 = vector.shape_cast %1336 : vector<1x1x4x128xbf16> to vector<4x128xbf16>
    %1338 = arith.extf %1337 : vector<4x128xbf16> to vector<4x128xf32>
    %1339 = arith.subf %1338, %1271 : vector<4x128xf32>
    %1340 = math.exp %1339 : vector<4x128xf32>
    %1341 = arith.addf %1335, %1340 : vector<4x128xf32>
    %c3_740 = arith.constant 3 : index
    %c10_741 = arith.constant 10 : index
    %c0_742 = arith.constant 0 : index
    %c0_743 = arith.constant 0 : index
    %1342 = vector.load %arg2[%c3_740, %c10_741, %c0_742, %c0_743] : memref<4x16x4x128xbf16, #tpu.memory_space<vmem>>, vector<1x1x4x128xbf16>
    %1343 = vector.shape_cast %1342 : vector<1x1x4x128xbf16> to vector<4x128xbf16>
    %1344 = arith.extf %1343 : vector<4x128xbf16> to vector<4x128xf32>
    %1345 = arith.subf %1344, %1271 : vector<4x128xf32>
    %1346 = math.exp %1345 : vector<4x128xf32>
    %1347 = arith.addf %1341, %1346 : vector<4x128xf32>
    %c3_744 = arith.constant 3 : index
    %c11_745 = arith.constant 11 : index
    %c0_746 = arith.constant 0 : index
    %c0_747 = arith.constant 0 : index
    %1348 = vector.load %arg2[%c3_744, %c11_745, %c0_746, %c0_747] : memref<4x16x4x128xbf16, #tpu.memory_space<vmem>>, vector<1x1x4x128xbf16>
    %1349 = vector.shape_cast %1348 : vector<1x1x4x128xbf16> to vector<4x128xbf16>
    %1350 = arith.extf %1349 : vector<4x128xbf16> to vector<4x128xf32>
    %1351 = arith.subf %1350, %1271 : vector<4x128xf32>
    %1352 = math.exp %1351 : vector<4x128xf32>
    %1353 = arith.addf %1347, %1352 : vector<4x128xf32>
    %c3_748 = arith.constant 3 : index
    %c12_749 = arith.constant 12 : index
    %c0_750 = arith.constant 0 : index
    %c0_751 = arith.constant 0 : index
    %1354 = vector.load %arg2[%c3_748, %c12_749, %c0_750, %c0_751] : memref<4x16x4x128xbf16, #tpu.memory_space<vmem>>, vector<1x1x4x128xbf16>
    %1355 = vector.shape_cast %1354 : vector<1x1x4x128xbf16> to vector<4x128xbf16>
    %1356 = arith.extf %1355 : vector<4x128xbf16> to vector<4x128xf32>
    %1357 = arith.subf %1356, %1271 : vector<4x128xf32>
    %1358 = math.exp %1357 : vector<4x128xf32>
    %1359 = arith.addf %1353, %1358 : vector<4x128xf32>
    %c3_752 = arith.constant 3 : index
    %c13_753 = arith.constant 13 : index
    %c0_754 = arith.constant 0 : index
    %c0_755 = arith.constant 0 : index
    %1360 = vector.load %arg2[%c3_752, %c13_753, %c0_754, %c0_755] : memref<4x16x4x128xbf16, #tpu.memory_space<vmem>>, vector<1x1x4x128xbf16>
    %1361 = vector.shape_cast %1360 : vector<1x1x4x128xbf16> to vector<4x128xbf16>
    %1362 = arith.extf %1361 : vector<4x128xbf16> to vector<4x128xf32>
    %1363 = arith.subf %1362, %1271 : vector<4x128xf32>
    %1364 = math.exp %1363 : vector<4x128xf32>
    %1365 = arith.addf %1359, %1364 : vector<4x128xf32>
    %c3_756 = arith.constant 3 : index
    %c14_757 = arith.constant 14 : index
    %c0_758 = arith.constant 0 : index
    %c0_759 = arith.constant 0 : index
    %1366 = vector.load %arg2[%c3_756, %c14_757, %c0_758, %c0_759] : memref<4x16x4x128xbf16, #tpu.memory_space<vmem>>, vector<1x1x4x128xbf16>
    %1367 = vector.shape_cast %1366 : vector<1x1x4x128xbf16> to vector<4x128xbf16>
    %1368 = arith.extf %1367 : vector<4x128xbf16> to vector<4x128xf32>
    %1369 = arith.subf %1368, %1271 : vector<4x128xf32>
    %1370 = math.exp %1369 : vector<4x128xf32>
    %1371 = arith.addf %1365, %1370 : vector<4x128xf32>
    %c3_760 = arith.constant 3 : index
    %c15_761 = arith.constant 15 : index
    %c0_762 = arith.constant 0 : index
    %c0_763 = arith.constant 0 : index
    %1372 = vector.load %arg2[%c3_760, %c15_761, %c0_762, %c0_763] : memref<4x16x4x128xbf16, #tpu.memory_space<vmem>>, vector<1x1x4x128xbf16>
    %1373 = vector.shape_cast %1372 : vector<1x1x4x128xbf16> to vector<4x128xbf16>
    %1374 = arith.extf %1373 : vector<4x128xbf16> to vector<4x128xf32>
    %1375 = arith.subf %1374, %1271 : vector<4x128xf32>
    %1376 = math.exp %1375 : vector<4x128xf32>
    %1377 = arith.addf %1371, %1376 : vector<4x128xf32>
    %1378 = math.log %1377 : vector<4x128xf32>
    %1379 = arith.addf %1271, %1378 : vector<4x128xf32>
    %1380 = arith.subf %1379, %1280 : vector<4x128xf32>
    %1381 = arith.addf %1073, %1380 : vector<4x128xf32>
    %1382 = arith.mulf %1381, %29 : vector<4x128xf32>
    %cst_764 = arith.constant 0.000000e+00 : f32
    %1383 = vector.broadcast %cst_764 : f32 to vector<4x128xf32>
    %1384 = arith.select %31, %1382, %1383 : vector<4x128xi1>, vector<4x128xf32>
    %cst_765 = arith.constant dense<0.000000e+00> : vector<128xf32>
    %1385 = vector.multi_reduction <add>, %1384, %cst_765 [0] : vector<4x128xf32> to vector<128xf32>
    %1386 = vector.shape_cast %1385 : vector<128xf32> to vector<1x128xf32>
    %1387 = tpu.concatenate %136, %1386 in 0 : vector<1x128xf32>, vector<1x128xf32> -> vector<2x128xf32>
    %c0_766 = arith.constant 0 : index
    %c0_767 = arith.constant 0 : index
    %1388 = vector.load %arg3[%c0_766, %c0_767] : memref<2x128xf32, #tpu.memory_space<vmem>>, vector<2x128xf32>
    tpu.vector_store %arg3[%c0_766, %c0_767], %1387 {strides = array<i32>} : memref<2x128xf32, #tpu.memory_space<vmem>>, vector<2x128xf32>,
    return
  }
  func.func @transform_0(%arg0: i32) -> (i32, i32, i32) {
    %c0_i32 = arith.constant 0 : i32
    %c0_i32_0 = arith.constant 0 : i32
    %c0_i32_1 = arith.constant 0 : i32
    return %c0_i32, %arg0, %c0_i32_0 : i32, i32, i32
  }
  func.func @transform_1(%arg0: i32) -> (i32, i32, i32, i32) {
    %c0_i32 = arith.constant 0 : i32
    %c0_i32_0 = arith.constant 0 : i32
    %c0_i32_1 = arith.constant 0 : i32
    %c0_i32_2 = arith.constant 0 : i32
    return %c0_i32, %c0_i32_0, %arg0, %c0_i32_1 : i32, i32, i32, i32
  }
  func.func @transform_2(%arg0: i32) -> (i32, i32) {
    %c0_i32 = arith.constant 0 : i32
    %c0_i32_0 = arith.constant 0 : i32
    return %c0_i32, %arg0 : i32, i32
  }
}

</mosaic_0001>

<bundles_post_ra>
// kernel: tpu_custom_call.1
= control target key start
LH: loop header
LB: loop body
LE: loop exit
PB: predicated region body
PF: predicated region fallthrough
CT: control target
= control target key end

     0   :  { %7 = vsyncpa [#allocation3], 0  ;;  %s2043_s0 = inlined_call_operand.hbm [shape: f32[15,4,128], index: 0, kind: input, shape index: {}]   ;;  %s2044_s1 = inlined_call_operand.hbm [shape: bf16[4,16,4,128], index: 1, kind: input, shape index: {}]   ;;  %s2045_s2 = inlined_call_operand.hbm [shape: f32[2,128], index: 2, kind: output, shape index: {}]  }
   0x1   :  { %8 = vsyncpa [#allocation6], 0 }
   0x2   :  { %9 = vsyncpa [#allocation4], 0  ;;  %s1344_s9 = smov [#allocation2]   ;;  %s1272_s13 = scalar_lea.hbm %s2043_s0, 960 }
   0x3   :  { %s15_s10 = sshll.u32 %s1344_s9, 4  ;;  %p1273_p0 = scmp.ne.s32.totalorder %s2043_s0, %s1272_s13  ;;  %s16_s10 = int_to_ptr.vmem [resolvable:$true] %s15_s10 }
   0x4   :  { %p1276_p1 = scmp.lt.u32.totalorder %s1272_s13, %s2043_s0 }
   0x6   :  { %p1278_p2 = pnand %p1276_p1, %p1273_p0 }
   0x8   :  { %1281 = shalt.err (!%p1278_p2)
}
   0x9   :  { %s1282_s18 = scalar_lea.vmem %s16_s10, 960  ;;  %p1287_p4 = scmp.lt.s32.totalorder %s16_s10, %s16_s10 }
   0xa   :  { %p1283_p3 = scmp.ne.s32.totalorder %s16_s10, %s1282_s18  ;;  %p1288_p5 = scmp.lt.s32.totalorder %s1282_s18, %s1282_s18 }
   0xc   :  { %p1289_p6 = por %p1288_p5, %p1287_p4 }
   0xe   :  { %p1290_p7 = pnand %p1289_p6, %p1283_p3 }
  0x10   :  { %1293 = shalt.err (!%p1290_p7)
}
  0x11   :  { %s1345_s19 = smov 64   ;;  %s1346_s20 = smov 4  }
  0x12   :  { %21 = dma.hbm_to_vmem [thread:$0]  %s2043_s0, 960, %s16_s10, [#allocation3], %s1345_s19, %s1345_s19, %s1346_s20  }
  0x13   :  { %s1347_s23 = smov [#allocation5]   ;;  %s1294_s27 = scalar_lea.hbm %s2044_s1, 2048 }
  0x14   :  { %s27_s24 = sshll.u32 %s1347_s23, 4  ;;  %p1295_p8 = scmp.ne.s32.totalorder %s2044_s1, %s1294_s27  ;;  %s28_s24 = int_to_ptr.vmem [resolvable:$true] %s27_s24 }
  0x15   :  { %p1298_p9 = scmp.lt.u32.totalorder %s1294_s27, %s2044_s1 }
  0x17   :  { %p1300_p10 = pnand %p1298_p9, %p1295_p8 }
  0x19   :  { %1303 = shalt.err (!%p1300_p10)
}
  0x1a   :  { %s1304_s4 = scalar_lea.vmem %s28_s24, 2048  ;;  %p1309_p12 = scmp.lt.s32.totalorder %s28_s24, %s28_s24 }
  0x1b   :  { %p1305_p11 = scmp.ne.s32.totalorder %s28_s24, %s1304_s4  ;;  %p1310_p13 = scmp.lt.s32.totalorder %s1304_s4, %s1304_s4 }
  0x1d   :  { %p1311_p0 = por %p1310_p13, %p1309_p12 }
  0x1f   :  { %p1312_p1 = pnand %p1311_p0, %p1305_p11 }
  0x21   :  { %1315 = shalt.err (!%p1312_p1)
}
  0x22   :  { %s1348_s0 = smov 32   ;;  %s1349_s5 = smov 2  }
  0x23   :  { %33 = dma.hbm_to_vmem [thread:$0]  %s2044_s1, 2048, %s28_s24, [#allocation6], %s1348_s0, %s1348_s0, %s1349_s5  }
  0x24   :  { %1338 = dma.done.wait [#allocation3], 960  }
  0x25   :  { %1339 = vsyncadd [#allocation3], 4294966336 }
  0x26   :  { %1340 = dma.done.wait [#allocation6], 2048  }
  0x27   :  { %1341 = vsyncadd [#allocation6], 4294965248  ;;  %v44_v0 = vld [vmem:[#allocation2 + $0x8] sm:$0xf]  ;;  %v46_v1 = vld [vmem:[#allocation2 + $0xc] sm:$0xf] }
  0x28   :  { %v70_v2 = vmul.f32 %v44_v0, %v44_v0  ;;  %v56_v3 = vld [vmem:[#allocation2 + $0x20] sm:$0xf]  ;;  %v72_v4 = vmul.f32 %v46_v1, %v46_v1  ;;  %v1390_v5 = vld [vmem:[#allocation2 + $0x24] sm:$0xf]  ;;  %v48_v7 = vld [vmem:[#allocation2 + $0x10] sm:$0xf] }
  0x29   :  { %v87_v6 = vmul.f32 %v56_v3, %v56_v3  ;;  %v50_v8 = vld [vmem:[#allocation2 + $0x14] sm:$0xf]  ;;  %v60_v9 = vld [vmem:[#allocation2 + $0x28] sm:$0xf]  ;;  %v89_v10 = vmul.f32 %v1390_v5, %v1390_v5  ;;  %v62_v11 = vld [vmem:[#allocation2 + $0x2c] sm:$0xf] }
  0x2a   :  { %v71_v12 = vmul.f32 0.083333336, %v70_v2  ;;  %v73_v13 = vmul.f32 0.083333336, %v72_v4  ;;  %v188_v44 = vld [vmem:[#allocation5] sm:$0x3] }
  0x2b   :  { %v88_v14 = vmul.f32 0.083333336, %v87_v6  ;;  %v90_v15 = vmul.f32 0.083333336, %v89_v10  ;;  %v194_v47 = vld [vmem:[#allocation5 + $0x2] sm:$0x3]  ;;  %v1414_v49 = vunpack.c.l.bf16 %v188_v44 }
  0x2c   :  { %v74_v16 = vmul.f32 %v71_v12, %v48_v7  ;;  %v76_v17 = vmul.f32 %v73_v13, %v50_v8  ;;  %v79_v18 = vmul.f32 %v71_v12, %v50_v8  ;;  %v81_v19 = vmul.f32 %v73_v13, %v48_v7  ;;  %v203_v48 = vld [vmem:[#allocation5 + $0x4] sm:$0x3]  ;;  %v213_v54 = vld [vmem:[#allocation5 + $0x6] sm:$0x3]  ;;  %v223_v56 = vld [vmem:[#allocation5 + $0x8] sm:$0x3] }
  0x2d   :  { %v84_v20 = vsub.f32 %v71_v12, %v73_v13  ;;  %v91_v21 = vmul.f32 %v88_v14, %v60_v9  ;;  %v93_v22 = vmul.f32 %v90_v15, %v62_v11  ;;  %v96_v23 = vmul.f32 %v88_v14, %v62_v11  ;;  %v233_v62 = vld [vmem:[#allocation5 + $0xa] sm:$0x3]  ;;  %v243_v0 = vld [vmem:[#allocation5 + $0xc] sm:$0x3]  ;;  %v1429_v1 = vld [vmem:[#allocation2 + $0x18] sm:$0xf] }
  0x2e   :  { %v75_v24 = vmul.f32 %v74_v16, %v48_v7  ;;  %v77_v25 = vmul.f32 %v76_v17, %v50_v8  ;;  %v80_v26 = vmul.f32 %v79_v18, %v50_v8  ;;  %v82_v27 = vmul.f32 %v81_v19, %v48_v7  ;;  %v1439_v12 = vld [vmem:[#allocation2 + $0x30] sm:$0xf]  ;;  %v273_v17 = vld [vmem:[#allocation5 + $0x12] sm:$0x3]  ;;  %s1350_s1 = smov [#allocation7]  }
  0x2f   :  { %v85_v28 = vmul.f32 %v84_v20, %v48_v7  ;;  %v92_v29 = vmul.f32 %v91_v21, %v60_v9  ;;  %v94_v30 = vmul.f32 %v93_v22, %v62_v11  ;;  %v97_v31 = vmul.f32 %v96_v23, %v62_v11  ;;  %v253_v7 = vld [vmem:[#allocation5 + $0xe] sm:$0x3]  ;;  %v283_v22 = vld [vmem:[#allocation5 + $0x14] sm:$0x3]  ;;  %s1107_s8 = sshll.u32 %s1350_s1, 4  ;;  %s1108_s8 = int_to_ptr.vmem [resolvable:$true] %s1107_s8 }
  0x30   :  { %v1394_v32 = vadd.f32 %v77_v25, %v75_v24  ;;  %v1396_v33 = vadd.f32 %v82_v27, %v80_v26  ;;  %v98_v34 = vmul.f32 %v90_v15, %v60_v9  ;;  %v101_v35 = vsub.f32 %v88_v14, %v90_v15  ;;  %v293_v27 = vld [vmem:[#allocation5 + $0x16] sm:$0x3]  ;;  %s1316_s9 = scalar_lea.vmem %s1108_s8, 32  ;;  %p1321_p3 = scmp.lt.s32.totalorder %s1108_s8, %s1108_s8 }
  0x31   :  { %v1398_v36 = vmul.f32 %v85_v28, %v50_v8  ;;  %v1400_v37 = vadd.f32 %v94_v30, %v92_v29  ;;  %v1416_v52 = vunpack.c.l.bf16 %v194_v47  ;;  %v1418_v53 = vunpack.c.l.bf16 %v203_v48  ;;  %p1317_p2 = scmp.ne.s32.totalorder %s1108_s8, %s1316_s9  ;;  %p1322_p4 = scmp.lt.s32.totalorder %s1316_s9, %s1316_s9 }
  0x32   :  { %v99_v38 = vmul.f32 %v98_v34, %v60_v9  ;;  %v102_v39 = vmul.f32 %v101_v35, %v60_v9  ;;  %v126_v42 = vmul.f32 %v1396_v33, %v1394_v32  ;;  %v1422_v59 = vunpack.c.l.bf16 %v213_v54  ;;  %v303_v34 = vld [vmem:[#allocation5 + $0x18] sm:$0x3] }
  0x33   :  { %v127_v43 = vmul.f32 %v1398_v36, %v1398_v36  ;;  %v196_v55 = vmax.f32 %v1414_v49, %v1416_v52  ;;  %v1425_v61 = vunpack.c.l.bf16 %v223_v56  ;;  %v1427_v63 = vmul.f32 0.5, %v56_v3  ;;  %v323_v56 = vld [vmem:[#allocation5 + $0x1c] sm:$0x3]  ;;  %p1323_p5 = por %p1322_p4, %p1321_p3 }
  0x34   :  { %v1402_v40 = vadd.f32 %v99_v38, %v97_v31  ;;  %v1404_v41 = vmul.f32 %v102_v39, %v62_v11  ;;  %v1432_v6 = vunpack.c.l.bf16 %v233_v62  ;;  %v1435_v9 = vunpack.c.l.bf16 %v243_v0  ;;  %v263_v11 = vld [vmem:[#allocation5 + $0x10] sm:$0x3] }
  0x35   :  { %v128_v50 = vsub.f32 %v126_v42, %v127_v43  ;;  %v205_v60 = vmax.f32 %v196_v55, %v1418_v53  ;;  %v178_v10 = vsub.f32 %v1429_v1, %v1427_v63  ;;  %v1442_v13 = vunpack.c.l.bf16 %v253_v7  ;;  %v333_v7 = vld [vmem:[#allocation5 + $0x1e] sm:$0x3]  ;;  %p1324_p6 = pnand %p1323_p5, %p1317_p2 }
  0x36   :  { %v130_v45 = vmul.f32 %v1402_v40, %v1400_v37  ;;  %v131_v46 = vmul.f32 %v1404_v41, %v1404_v41  ;;  %v1445_v15 = vunpack.c.l.bf16 %v263_v11  ;;  %v1450_v20 = vunpack.c.l.bf16 %v273_v17  ;;  %v420_v17 = vld [vmem:[#allocation5 + $0x22] sm:$0x3] }
  0x37   :  { %v129_v57 = vmax.f32 %v128_v50, 0.0  ;;  %v215_v4 = vmax.f32 %v205_v60, %v1422_v59  ;;  %v179_v16 = vsub.f32 %v1439_v12, %v178_v10  ;;  %v1453_v25 = vunpack.c.l.bf16 %v283_v22  ;;  %v40_v22 = vld [vmem:[#allocation2] sm:$0xf] }
  0x38   :  { %v132_v51 = vsub.f32 %v130_v45, %v131_v46  ;;  %v1458_v30 = vunpack.c.l.bf16 %v293_v27  ;;  %v1463_v43 = vunpack.c.l.bf16 %v303_v34  ;;  %v313_v45 = vld [vmem:[#allocation5 + $0x1a] sm:$0x3]  ;;  %v1475_v60 = vadd.f32 %v1404_v41, %v1398_v36  ;;  %v1496_v34 = vld [vmem:[#allocation2 + $0x1c] sm:$0xf] }
  0x39   :  { %v225_v8 = vmax.f32 %v215_v4, %v1425_v61  ;;  %v186_v21 = vmax.f32 %v179_v16, 0.0  ;;  %v1466_v50 = vunpack.c.l.bf16 %v313_v45  ;;  %v1478_v4 = vunpack.c.l.bf16 %v323_v56  ;;  %v414_v16 = vld [vmem:[#allocation5 + $0x20] sm:$0x3] }
  0x3a   :  { %v133_v58 = vmax.f32 %v132_v51, 0.0  ;;  %v1490_v27 = vmul.f32 0.5, %v1390_v5  ;;  %v439_v5 = vld [vmem:[#allocation5 + $0x26] sm:$0x3]  ;;  %vm168_vm5 = vcmask 1043456   ;;  %vm1098_vm6 = vcmask 1040384  }
  0x3b   :  { %v235_v3 = vmax.f32 %v225_v8, %v1432_v6  ;;  %v1455_v26 = vmin.f32 %v186_v21, 14.99 }
  0x3c   :  { %v134_v2 = vmul.f32 %v133_v58, %v129_v57  ;;  %v104_v57 = vadd.f32 %v1400_v37, %v1394_v32  ;;  %v105_v58 = vadd.f32 %v1402_v40, %v1396_v33  ;;  %v110_v33 = vmul.f32 %v1475_v60, %v1475_v60 }
  0x3d   :  { %v245_v14 = vmax.f32 %v235_v3, %v1435_v9  ;;  %v190_v31 = vsub.f32 1.0, %v1455_v26  ;;  %v206_v39 = vsub.f32 2.0, %v1455_v26  ;;  %v216_v55 = vsub.f32 3.0, %v1455_v26 }
  0x3e   :  { %1124 = vrsqrt.f32 %v134_v2  ;;  %vm137_vm0 = vcmp.eq.f32.partialorder %v134_v2, inf  ;;  %v140_v35 = vand.u32 2147483648, %v134_v2  ;;  %vm139_vm1 = vcmp.eq.f32.partialorder %v134_v2, 0.0 }
  0x3f   :  { %v255_v18 = vmax.f32 %v245_v14, %v1442_v13  ;;  %v197_v44 = vand.u32 2147483647, %v190_v31  ;;  %v207_v47 = vand.u32 2147483647, %v206_v39  ;;  %v191_v62 = vmax.f32 %v190_v31, 0.0 }
  0x40   :  { %v217_v11 = vand.u32 2147483647, %v216_v55  ;;  %v226_v3 = vsub.f32 4.0, %v1455_v26  ;;  %v109_v32 = vmul.f32 %v105_v58, %v104_v57  ;;  %v236_v37 = vsub.f32 5.0, %v1455_v26 }
  0x41   :  { %v265_v19 = vmax.f32 %v255_v18, %v1445_v15  ;;  %v198_v54 = vsub.f32 1.0, %v197_v44  ;;  %v208_v0 = vsub.f32 1.0, %v207_v47  ;;  %v192_v36 = vmul.f32 %v191_v62, %v1414_v49 }
  0x42   :  { %v1486_v14 = vunpack.c.l.bf16 %v333_v7  ;;  %v227_v21 = vand.u32 2147483647, %v226_v3  ;;  %v1494_v31 = vunpack.c.l.bf16 %v420_v17  ;;  %v107_v47 = vsub.f32 %v40_v22, %v1429_v1 }
  0x43   :  { %v275_v24 = vmax.f32 %v265_v19, %v1450_v20  ;;  %v199_v10 = vmax.f32 %v198_v54, 0.0  ;;  %v209_v40 = vmax.f32 %v208_v0, 0.0  ;;  %v218_v19 = vsub.f32 1.0, %v217_v11 }
  0x44   :  { %v228_v45 = vsub.f32 1.0, %v227_v21  ;;  %v180_v54 = vsub.f32 %v1496_v34, %v1490_v27  ;;  %v256_v56 = vsub.f32 7.0, %v1455_v26 }
  0x45   :  { %v285_v29 = vmax.f32 %v275_v24, %v1453_v25  ;;  %v200_v18 = vmul.f32 %v199_v10, %v1416_v52  ;;  %v42_v24 = vld [vmem:[#allocation2 + $0x4] sm:$0xf]  ;;  %v219_v44 = vmax.f32 %v218_v19, 0.0  ;;  %v1516_v10 = vld [vmem:[#allocation2 + $0x34] sm:$0xf] }
  0x46   :  { %v257_v17 = vand.u32 2147483647, %v256_v56  ;;  %v181_v19 = vsub.f32 %v1516_v10, %v180_v54 }
  0x47   :  { %v295_v42 = vmax.f32 %v285_v29, %v1458_v30  ;;  %v1492_v29 = vunpack.c.l.bf16 %v414_v16  ;;  %v201_v39 = vadd.f32 %v200_v18, %v192_v36  ;;  %v220_v3 = vmul.f32 %v219_v44, %v1422_v59  ;;  %v449_v18 = vld [vmem:[#allocation5 + $0x28] sm:$0x3] }
  0x48   :  { %v1125_v23 = vpop.eup %1124  ;;  %v258_v54 = vsub.f32 1.0, %v257_v17  ;;  %v489_v17 = vld [vmem:[#allocation5 + $0x30] sm:$0x3] }
  0x49   :  { %v136_v28 = vmul.f32 %v1125_v23, %v134_v2  ;;  %v305_v48 = vmax.f32 %v295_v42, %v1463_v43  ;;  %v111_v23 = vsub.f32 %v109_v32, %v110_v33  ;;  %v210_v42 = vmul.f32 %v209_v40, %v1418_v53 }
  0x4a   :  { %v422_v62 = vmax.f32 %v1492_v29, %v1494_v31  ;;  %v229_v32 = vmax.f32 %v228_v45, 0.0  ;;  %v1529_v45 = vunpack.c.l.bf16 %v449_v18 }
  0x4b   :  { %v138_v38 = vsel %vm137_vm0, %v134_v2, %v136_v28  ;;  %v315_v2 = vmax.f32 %v305_v48, %v1466_v50  ;;  %v237_v28 = vand.u32 2147483647, %v236_v37  ;;  %v108_v48 = vsub.f32 %v42_v24, %v1496_v34 }
  0x4c   :  { %v141_v46 = vsel %vm139_vm1, %v140_v35, %v138_v38  ;;  %v246_v35 = vsub.f32 6.0, %v1455_v26  ;;  %v211_v11 = vadd.f32 %v210_v42, %v201_v39  ;;  %v459_v42 = vld [vmem:[#allocation5 + $0x2a] sm:$0x3] }
  0x4d   :  { %v142_v51 = vmul.f32 4.0, %v141_v46  ;;  %v325_v41 = vmax.f32 %v315_v2, %v1478_v4  ;;  %v429_v46 = vld [vmem:[#allocation5 + $0x24] sm:$0x3]  ;;  %v238_v55 = vsub.f32 1.0, %v237_v28  ;;  %v114_v37 = vmul.f32 %v108_v48, %v104_v57 }
  0x4e   :  { %v247_v0 = vand.u32 2147483647, %v246_v35  ;;  %v1512_v7 = vunpack.c.l.bf16 %v429_v46  ;;  %v221_v35 = vadd.f32 %v220_v3, %v211_v11 }
  0x4f   :  { %v143_v8 = vadd.f32 1e-07, %v142_v51  ;;  %v1500_v38 = vmax.f32 %v325_v41, %v1486_v14  ;;  %v112_v51 = vadd.f32 1e-07, %v111_v23  ;;  %v116_v41 = vmul.f32 %v107_v47, %v105_v58 }
  0x50   :  { %v431_v36 = vmax.f32 %v422_v62, %v1512_v7  ;;  %v239_v16 = vmax.f32 %v238_v55, 0.0  ;;  %v248_v21 = vsub.f32 1.0, %v247_v0  ;;  %v115_v58 = vmul.f32 %v114_v37, %v108_v48  ;;  %v469_v55 = vld [vmem:[#allocation5 + $0x2c] sm:$0x3] }
  0x51   :  { %1126 = vrcp.f32 %v143_v8  ;;  %2050 = vst [vmem:[#allocation11_spill] sm:$0xff] %v1500_v38  ;;  %v342_v2 = vsub.f32 %v1414_v49, %v1500_v38  ;;  %v1514_v8 = vunpack.c.l.bf16 %v439_v5  ;;  %v346_v33 = vsub.f32 %v1416_v52, %v1500_v38 }
  0x52   :  { %1128 = vrcp.f32 %v112_v51  ;;  %v121_v49 = vsub.f32 %v1429_v1, %v40_v22  ;;  %v230_v52 = vmul.f32 %v229_v32, %v1425_v61  ;;  %v350_v57 = vsub.f32 %v1418_v53, %v1500_v38  ;;  %v479_v32 = vld [vmem:[#allocation5 + $0x2e] sm:$0x3] }
  0x53   :  { %v343_v24 = vmul.f32 1.442695, %v342_v2  ;;  %v441_v28 = vmax.f32 %v431_v36, %v1514_v8  ;;  %v347_v39 = vmul.f32 1.442695, %v346_v33  ;;  %v266_v22 = vsub.f32 8.0, %v1455_v26 }
  0x54   :  { %v117_v46 = vmul.f32 %v116_v41, %v107_v47  ;;  %v122_v5 = vmul.f32 %v121_v49, %v1475_v60  ;;  %v240_v51 = vmul.f32 %v239_v16, %v1432_v6  ;;  %v249_v56 = vmax.f32 %v248_v21, 0.0 }
  0x55   :  { %1130 = vpow2.f32 %v343_v24  ;;  %v451_v62 = vmax.f32 %v441_v28, %v1529_v45  ;;  %v1534_v0 = vunpack.c.l.bf16 %v459_v42  ;;  %v231_v53 = vadd.f32 %v230_v52, %v221_v35 }
  0x56   :  { %1132 = vpow2.f32 %v347_v39  ;;  %v354_v2 = vsub.f32 %v1422_v59, %v1500_v38  ;;  %v267_v47 = vand.u32 2147483647, %v266_v22  ;;  %v1539_v3 = vunpack.c.l.bf16 %v469_v55 }
  0x57   :  { %v461_v60 = vmax.f32 %v451_v62, %v1534_v0  ;;  %v118_v33 = vadd.f32 %v117_v46, %v115_v58  ;;  %v411_v37 = vmax.f32 %v181_v19, 0.0  ;;  %v250_v41 = vmul.f32 %v249_v56, %v1435_v9 }
  0x58   :  { %v259_v49 = vmax.f32 %v258_v54, 0.0  ;;  %v355_v18 = vmul.f32 1.442695, %v354_v2  ;;  %v358_v59 = vsub.f32 %v1425_v61, %v1500_v38  ;;  %v1545_v21 = vunpack.c.l.bf16 %v479_v32 }
  0x59   :  { %v471_v16 = vmax.f32 %v461_v60, %v1539_v3  ;;  %v241_v24 = vadd.f32 %v240_v51, %v231_v53  ;;  %v268_v28 = vsub.f32 1.0, %v267_v47  ;;  %v276_v19 = vsub.f32 9.0, %v1455_v26  ;;  %v509_v51 = vld [vmem:[#allocation5 + $0x34] sm:$0x3] }
  0x5a   :  { %v1551_v39 = vunpack.c.l.bf16 %v489_v17  ;;  %v260_v58 = vmul.f32 %v259_v49, %v1442_v13  ;;  %v286_v61 = vsub.f32 10.0, %v1455_v26  ;;  %v359_v22 = vmul.f32 1.442695, %v358_v59 }
  0x5b   :  { %v1127_v40 = vpop.eup %1126  ;;  %v481_v52 = vmax.f32 %v471_v16, %v1545_v21  ;;  %v362_v46 = vsub.f32 %v1432_v6, %v1500_v38  ;;  %v251_v55 = vadd.f32 %v250_v41, %v241_v24  ;;  %v269_v56 = vmax.f32 %v268_v28, 0.0 }
  0x5c   :  { %v145_v44 = vmul.f32 %v1127_v40, %v111_v23  ;;  %v351_v23 = vmul.f32 1.442695, %v350_v57  ;;  %v1129_v36 = vpop.eup %1128  ;;  %v123_v40 = vmul.f32 %v122_v5, %v108_v48  ;;  %v1548_v48 = vmin.f32 %v411_v37, 14.99  ;;  %v499_v57 = vld [vmem:[#allocation5 + $0x32] sm:$0x3] }
  0x5d   :  { %v119_v35 = vmul.f32 %v1129_v36, %v118_v33  ;;  %v491_v5 = vmax.f32 %v481_v52, %v1551_v39  ;;  %v277_v62 = vand.u32 2147483647, %v276_v19  ;;  %v1559_v53 = vunpack.c.l.bf16 %v499_v57 }
  0x5e   :  { %v146_v11 = vadd.f32 1e-07, %v145_v44  ;;  %1134 = vpow2.f32 %v351_v23  ;;  %v124_v42 = vmul.f32 %v1129_v36, %v123_v40  ;;  %v296_v44 = vsub.f32 11.0, %v1455_v26 }
  0x5f   :  { %v1131_v54 = vpop.eup %1130  ;;  %v120_v2 = vmul.f32 0.25, %v119_v35  ;;  %v1567_v47 = vadd.f32 %v1490_v27, %v1496_v34  ;;  %v416_v6 = vsub.f32 1.0, %v1548_v48  ;;  %v287_v32 = vand.u32 2147483647, %v286_v61  ;;  %v529_v61 = vld [vmem:[#allocation5 + $0x38] sm:$0x3] }
  0x60   :  { %1136 = vlog2.f32 %v146_v11  ;;  %v1133_v23 = vpop.eup %1132  ;;  %v1563_v11 = vadd.f32 %v1427_v63, %v1429_v1  ;;  %v125_v60 = vmul.f32 0.5, %v124_v42  ;;  %v501_v33 = vmax.f32 %v491_v5, %v1559_v53  ;;  %v519_v63 = vld [vmem:[#allocation5 + $0x36] sm:$0x3] }
  0x61   :  { %1138 = vpow2.f32 %v355_v18  ;;  %v1571_v37 = vunpack.c.l.bf16 %v509_v51  ;;  %v297_v36 = vand.u32 2147483647, %v296_v44  ;;  %v363_v40 = vmul.f32 1.442695, %v362_v46 }
  0x62   :  { %1140 = vpow2.f32 %v359_v22  ;;  %v366_v41 = vsub.f32 %v1435_v9, %v1500_v38  ;;  %v261_v1 = vadd.f32 %v260_v58, %v251_v55  ;;  %v270_v49 = vmul.f32 %v269_v56, %v1445_v15 }
  0x63   :  { %v278_v27 = vsub.f32 1.0, %v277_v62  ;;  %v349_v34 = vadd.f32 %v1133_v23, %v1131_v54  ;;  %v183_v17 = vsub.f32 %v1563_v11, %v1439_v12  ;;  %v185_v18 = vsub.f32 %v1567_v47, %v1516_v10 }
  0x64   :  { %v423_v59 = vand.u32 2147483647, %v416_v6  ;;  %v432_v24 = vsub.f32 2.0, %v1548_v48  ;;  %v150_v19 = vadd.f32 %v125_v60, %v120_v2  ;;  %v288_v35 = vsub.f32 1.0, %v287_v32 }
  0x65   :  { %v511_v9 = vmax.f32 %v501_v33, %v1571_v37  ;;  %v1582_v52 = vunpack.c.l.bf16 %v519_v63  ;;  %v298_v57 = vsub.f32 1.0, %v297_v36  ;;  %1142 = vpow2.f32 %v363_v40  ;;  %v539_v40 = vld [vmem:[#allocation5 + $0x3a] sm:$0x3] }
  0x66   :  { %v367_v42 = vmul.f32 1.442695, %v366_v41  ;;  %v370_v58 = vsub.f32 %v1442_v13, %v1500_v38  ;;  %v271_v44 = vadd.f32 %v270_v49, %v261_v1  ;;  %v279_v22 = vmax.f32 %v278_v27, 0.0 }
  0x67   :  { %v306_v46 = vsub.f32 12.0, %v1455_v26  ;;  %v424_v55 = vsub.f32 1.0, %v423_v59  ;;  %v433_v56 = vand.u32 2147483647, %v432_v24  ;;  %v442_v62 = vsub.f32 3.0, %v1548_v48 }
  0x68   :  { %v1135_v16 = vpop.eup %1134  ;;  %v289_v23 = vmax.f32 %v288_v35, 0.0  ;;  %v316_v2 = vsub.f32 13.0, %v1455_v26  ;;  %v521_v60 = vmax.f32 %v511_v9, %v1582_v52  ;;  %v1590_v32 = vunpack.c.l.bf16 %v529_v61 }
  0x69   :  { %v353_v5 = vadd.f32 %v1135_v16, %v349_v34  ;;  %v299_v13 = vmax.f32 %v298_v57, 0.0  ;;  %1144 = vpow2.f32 %v367_v42  ;;  %v371_v33 = vmul.f32 1.442695, %v370_v58  ;;  %v549_v58 = vld [vmem:[#allocation5 + $0x3c] sm:$0x3] }
  0x6a   :  { %v1137_v28 = vpop.eup %1136  ;;  %v374_v36 = vsub.f32 %v1445_v15, %v1500_v38  ;;  %v307_v41 = vand.u32 2147483647, %v306_v46  ;;  %v326_v63 = vsub.f32 14.0, %v1455_v26  ;;  %v417_v49 = vmax.f32 %v416_v6, 0.0 }
  0x6b   :  { %v1139_v51 = vpop.eup %1138  ;;  %v148_v54 = vmul.f32 0.6931472, %v1137_v28  ;;  %v425_v16 = vmax.f32 %v424_v55, 0.0  ;;  %v434_v59 = vsub.f32 1.0, %v433_v56  ;;  %v443_v24 = vand.u32 2147483647, %v442_v62 }
  0x6c   :  { %v357_v1 = vadd.f32 %v1139_v51, %v353_v5  ;;  %v1141_v27 = vpop.eup %1140  ;;  %v280_v28 = vmul.f32 %v279_v22, %v1450_v20  ;;  %v452_v35 = vsub.f32 4.0, %v1548_v48  ;;  %v531_v9 = vmax.f32 %v521_v60, %v1590_v32 }
  0x6d   :  { %v149_v34 = vmul.f32 0.5, %v148_v54  ;;  %v1598_v57 = vunpack.c.l.bf16 %v539_v40  ;;  %v290_v15 = vmul.f32 %v289_v23, %v1453_v25  ;;  %1146 = vpow2.f32 %v371_v33  ;;  %v559_v40 = vld [vmem:[#allocation5 + $0x3e] sm:$0x3] }
  0x6e   :  { %v375_v42 = vmul.f32 1.442695, %v374_v36  ;;  %v378_v6 = vsub.f32 %v1450_v20, %v1500_v38  ;;  %v1604_v61 = vmul.f32 %v299_v13, %v1458_v30  ;;  %v317_v46 = vand.u32 2147483647, %v316_v2 }
  0x6f   :  { %v361_v5 = vadd.f32 %v1141_v27, %v357_v1  ;;  %v418_v22 = vmul.f32 %v417_v49, %v1492_v29  ;;  %v1143_v51 = vpop.eup %1142  ;;  %v151_v54 = vadd.f32 %v150_v19, %v149_v34  ;;  %v426_v55 = vmul.f32 %v425_v16, %v1494_v31 }
  0x70   :  { %v435_v56 = vmax.f32 %v434_v59, 0.0  ;;  %v444_v62 = vsub.f32 1.0, %v443_v24  ;;  %v453_v23 = vand.u32 2147483647, %v452_v35  ;;  %v462_v60 = vsub.f32 5.0, %v1548_v48 }
  0x71   :  { %v541_v33 = vmax.f32 %v531_v9, %v1598_v57  ;;  %v1610_v20 = vunpack.c.l.bf16 %v549_v58  ;;  %v308_v36 = vsub.f32 1.0, %v307_v41  ;;  %1148 = vpow2.f32 %v375_v42 }
  0x72   :  { %v379_v13 = vmul.f32 1.442695, %v378_v6  ;;  %v382_v2 = vsub.f32 %v1453_v25, %v1500_v38  ;;  %v281_v1 = vadd.f32 %v280_v28, %v271_v44  ;;  %v318_v19 = vsub.f32 1.0, %v317_v46 }
  0x73   :  { %v327_v49 = vand.u32 2147483647, %v326_v63  ;;  %v365_v27 = vadd.f32 %v1143_v51, %v361_v5  ;;  %v1145_v34 = vpop.eup %1144  ;;  %v152_v16 = vmax.f32 %v151_v54, 1e-07  ;;  %v427_v59 = vadd.f32 %v426_v55, %v418_v22 }
  0x74   :  { %v436_v24 = vmul.f32 %v435_v56, %v1512_v7  ;;  %v445_v35 = vmax.f32 %v444_v62, 0.0  ;;  %v454_v9 = vsub.f32 1.0, %v453_v23  ;;  %v463_v58 = vand.u32 2147483647, %v462_v60 }
  0x75   :  { %v551_v41 = vmax.f32 %v541_v33, %v1610_v20  ;;  %v1616_v42 = vunpack.c.l.bf16 %v559_v40  ;;  %v336_v6 = vsub.f32 15.0, %v1455_v26  ;;  %1150 = vpow2.f32 %v379_v13 }
  0x76   :  { %v383_v25 = vmul.f32 1.442695, %v382_v2  ;;  %v386_v44 = vsub.f32 %v1458_v30, %v1500_v38  ;;  %v309_v63 = vmax.f32 %v308_v36, 0.0  ;;  %v328_v28 = vsub.f32 1.0, %v327_v49  ;;  %v640_v30 = vld [vmem:[#allocation5 + $0x40] sm:$0x3] }
  0x77   :  { %2051 = vst [vmem:[#allocation12_spill] sm:$0xff] %v1616_v42  ;;  %v369_v46 = vadd.f32 %v1145_v34, %v365_v27  ;;  %v472_v5 = vsub.f32 6.0, %v1548_v48  ;;  %v1147_v22 = vpop.eup %1146  ;;  %v153_v51 = vmin.f32 %v152_v16, 100.0  ;;  %v291_v54 = vadd.f32 %v290_v15, %v281_v1  ;;  %v646_v49 = vld [vmem:[#allocation5 + $0x42] sm:$0x3] }
  0x78   :  { %v390_v55 = vsub.f32 %v1463_v43, %v1500_v38  ;;  %v437_v56 = vadd.f32 %v436_v24, %v427_v59  ;;  %v446_v62 = vmul.f32 %v445_v35, %v1514_v8  ;;  %v455_v26 = vmax.f32 %v454_v9, 0.0 }
  0x79   :  { %v464_v23 = vsub.f32 1.0, %v463_v58  ;;  %v1626_v60 = vmax.f32 %v551_v41, %v1616_v42  ;;  %v319_v33 = vmax.f32 %v318_v19, 0.0  ;;  %v1628_v36 = vand.u32 2147483647, %v336_v6 }
  0x7a   :  { %1152 = vpow2.f32 %v383_v25  ;;  %v387_v13 = vmul.f32 1.442695, %v386_v44  ;;  %v373_v2 = vadd.f32 %v1147_v22, %v369_v46  ;;  %v394_v15 = vsub.f32 %v1466_v50, %v1500_v38 }
  0x7b   :  { %2052 = vst [vmem:[#allocation13_spill] sm:$0xff] %v1626_v60  ;;  %v473_v40 = vand.u32 2147483647, %v472_v5  ;;  %v482_v1 = vsub.f32 7.0, %v1548_v48  ;;  %v1149_v27 = vpop.eup %1148  ;;  %v154_v34 = vsub.f32 0.0, %v153_v51  ;;  %v1634_v16 = vmul.f32 %v309_v63, %v1463_v43 }
  0x7c   :  { %v1636_v59 = vmax.f32 %v328_v28, 0.0  ;;  %v391_v19 = vmul.f32 1.442695, %v390_v55  ;;  %v447_v24 = vadd.f32 %v446_v62, %v437_v56  ;;  %v456_v35 = vmul.f32 %v455_v26, %v1529_v45  ;;  %v655_v26 = vld [vmem:[#allocation5 + $0x44] sm:$0x3] }
  0x7d   :  { %v465_v9 = vmax.f32 %v464_v23, 0.0  ;;  %v568_v58 = vsub.f32 %v1492_v29, %v1626_v60  ;;  %1154 = vpow2.f32 %v387_v13  ;;  %v572_v41 = vsub.f32 %v1494_v31, %v1626_v60 }
  0x7e   :  { %v1643_v6 = vunpack.c.l.bf16 %v640_v30  ;;  %v1645_v25 = vunpack.c.l.bf16 %v646_v49  ;;  %v377_v43 = vadd.f32 %v1149_v27, %v373_v2  ;;  %v395_v44 = vmul.f32 1.442695, %v394_v15 }
  0x7f   :  { %v474_v63 = vsub.f32 1.0, %v473_v40  ;;  %v483_v28 = vand.u32 2147483647, %v482_v1  ;;  %v1151_v46 = vpop.eup %1150  ;;  %v155_v5 = vmul.f32 1.442695, %v154_v34  ;;  %v301_v22 = vadd.f32 %v1604_v61, %v291_v54 }
  0x80   :  { %v1649_v51 = vmul.f32 %v319_v33, %v1466_v50  ;;  %v492_v29 = vsub.f32 8.0, %v1548_v48  ;;  %v398_v31 = vsub.f32 %v1478_v4, %v1500_v38  ;;  %v457_v55 = vadd.f32 %v456_v35, %v447_v24  ;;  %v665_v1 = vld [vmem:[#allocation5 + $0x46] sm:$0x3]  ;;  %v675_v34 = vld [vmem:[#allocation5 + $0x48] sm:$0x3] }
  0x81   :  { %v466_v56 = vmul.f32 %v465_v9, %v1534_v0  ;;  %v569_v62 = vmul.f32 1.442695, %v568_v58  ;;  %1156 = vpow2.f32 %v391_v19  ;;  %v573_v23 = vmul.f32 1.442695, %v572_v41 }
  0x82   :  { %v576_v30 = vsub.f32 %v1512_v7, %v1626_v60  ;;  %v648_v61 = vmax.f32 %v1643_v6, %v1645_v25  ;;  %v381_v50 = vadd.f32 %v1151_v46, %v377_v43  ;;  %1158 = vpow2.f32 %v395_v44  ;;  %v685_v44 = vld [vmem:[#allocation5 + $0x4a] sm:$0x3] }
  0x83   :  { %v475_v54 = vmax.f32 %v474_v63, 0.0  ;;  %v484_v33 = vsub.f32 1.0, %v483_v28  ;;  %1160 = vpow2.f32 %v155_v5  ;;  %v493_v2 = vand.u32 2147483647, %v492_v29 }
  0x84   :  { %v1153_v13 = vpop.eup %1152  ;;  %v502_v15 = vsub.f32 9.0, %v1548_v48  ;;  %v1660_v40 = vunpack.c.l.bf16 %v655_v26  ;;  %v399_v49 = vmul.f32 1.442695, %v398_v31  ;;  %v402_v27 = vsub.f32 %v1486_v14, %v1500_v38 }
  0x85   :  { %v467_v7 = vadd.f32 %v466_v56, %v457_v55  ;;  %1162 = vpow2.f32 %v569_v62  ;;  %v577_v19 = vmul.f32 1.442695, %v576_v30  ;;  %v580_v24 = vsub.f32 %v1514_v8, %v1626_v60  ;;  %v695_v56 = vld [vmem:[#allocation5 + $0x4c] sm:$0x3] }
  0x86   :  { %1164 = vpow2.f32 %v573_v23  ;;  %v657_v35 = vmax.f32 %v648_v61, %v1660_v40  ;;  %v385_v9 = vadd.f32 %v1153_v13, %v381_v50  ;;  %v476_v58 = vmul.f32 %v475_v54, %v1539_v3 }
  0x87   :  { %v485_v41 = vmax.f32 %v484_v33, 0.0  ;;  %v1668_v43 = vunpack.c.l.bf16 %v665_v1  ;;  %v1155_v63 = vpop.eup %1154  ;;  %v494_v28 = vsub.f32 1.0, %v493_v2  ;;  %v503_v46 = vand.u32 2147483647, %v502_v15  ;;  %v705_v33 = vld [vmem:[#allocation5 + $0x4e] sm:$0x3] }
  0x88   :  { %v512_v5 = vsub.f32 10.0, %v1548_v48  ;;  %v1671_v29 = vunpack.c.l.bf16 %v675_v34  ;;  %v338_v31 = vsub.f32 1.0, %v1628_v36  ;;  %1166 = vpow2.f32 %v399_v49 }
  0x89   :  { %v403_v8 = vmul.f32 1.442695, %v402_v27  ;;  %v667_v55 = vmax.f32 %v657_v35, %v1668_v43  ;;  %1168 = vpow2.f32 %v577_v19  ;;  %v581_v62 = vmul.f32 1.442695, %v580_v24 }
  0x8a   :  { %v584_v26 = vsub.f32 %v1529_v45, %v1626_v60  ;;  %v1677_v23 = vunpack.c.l.bf16 %v685_v44  ;;  %v389_v30 = vadd.f32 %v1155_v63, %v385_v9  ;;  %v477_v61 = vadd.f32 %v476_v58, %v467_v7 }
  0x8b   :  { %v486_v50 = vmul.f32 %v485_v41, %v1545_v21  ;;  %v677_v54 = vmax.f32 %v667_v55, %v1671_v29  ;;  %v1157_v13 = vpop.eup %1156  ;;  %v495_v2 = vmax.f32 %v494_v28, 0.0  ;;  %v504_v15 = vsub.f32 1.0, %v503_v46  ;;  %v715_v41 = vld [vmem:[#allocation5 + $0x50] sm:$0x3]  ;;  %v725_v55 = vld [vmem:[#allocation5 + $0x52] sm:$0x3] }
  0x8c   :  { %v513_v1 = vand.u32 2147483647, %v512_v5  ;;  %v1681_v49 = vunpack.c.l.bf16 %v695_v56  ;;  %v1159_v27 = vpop.eup %1158  ;;  %v311_v34 = vadd.f32 %v1634_v16, %v301_v22  ;;  %v1686_v45 = vmul.f32 %v1636_v59, %v1478_v4 }
  0x8d   :  { %v522_v7 = vsub.f32 11.0, %v1548_v48  ;;  %v687_v19 = vmax.f32 %v677_v54, %v1677_v23  ;;  %v1161_v24 = vpop.eup %1160  ;;  %1170 = vpow2.f32 %v581_v62  ;;  %v585_v35 = vmul.f32 1.442695, %v584_v26 }
  0x8e   :  { %2053 = vst [vmem:[#allocation14_spill] sm:$0xff] %v1686_v45  ;;  %v588_v9 = vsub.f32 %v1534_v0, %v1626_v60  ;;  %v1692_v58 = vunpack.c.l.bf16 %v705_v33  ;;  %v393_v63 = vadd.f32 %v1157_v13, %v389_v30  ;;  %1172 = vpow2.f32 %v403_v8 }
  0x8f   :  { %v1163_v44 = vpop.eup %1162  ;;  %v487_v16 = vadd.f32 %v486_v50, %v477_v61  ;;  %v697_v4 = vmax.f32 %v687_v19, %v1681_v49  ;;  %v496_v22 = vmul.f32 %v495_v2, %v1551_v39  ;;  %v505_v28 = vmax.f32 %v504_v15, 0.0  ;;  %v735_v50 = vld [vmem:[#allocation5 + $0x54] sm:$0x3] }
  0x90   :  { %v1165_v59 = vpop.eup %1164  ;;  %v514_v46 = vsub.f32 1.0, %v513_v1  ;;  %v637_v5 = vmax.f32 %v183_v17, 0.0  ;;  %v523_v0 = vand.u32 2147483647, %v522_v7  ;;  %v532_v56 = vsub.f32 12.0, %v1548_v48 }
  0x91   :  { %v707_v62 = vmax.f32 %v697_v4, %v1692_v58  ;;  %v1701_v26 = vunpack.c.l.bf16 %v715_v41  ;;  %v157_v8 = vsub.f32 1.0, %v1161_v24  ;;  %1174 = vpow2.f32 %v585_v35 }
  0x92   :  { %v589_v30 = vmul.f32 1.442695, %v588_v9  ;;  %v592_v61 = vsub.f32 %v1539_v3, %v1626_v60  ;;  %v1167_v54 = vpop.eup %1166  ;;  %v397_v33 = vadd.f32 %v1159_v27, %v393_v63  ;;  %v575_v13 = vadd.f32 %v1165_v59, %v1163_v44  ;;  %v745_v9 = vld [vmem:[#allocation5 + $0x56] sm:$0x3] }
  0x93   :  { %v717_v12 = vmax.f32 %v707_v62, %v1701_v26  ;;  %v1706_v11 = vunpack.c.l.bf16 %v725_v55  ;;  %v1169_v17 = vpop.eup %1168  ;;  %v497_v2 = vadd.f32 %v496_v22, %v487_v16  ;;  %v506_v15 = vmul.f32 %v505_v28, %v1559_v53  ;;  %v755_v22 = vld [vmem:[#allocation5 + $0x58] sm:$0x3] }
  0x94   :  { %v515_v1 = vmax.f32 %v514_v46, 0.0  ;;  %v1709_v7 = vmin.f32 %v637_v5, 14.99  ;;  %v524_v19 = vsub.f32 1.0, %v523_v0  ;;  %v533_v24 = vand.u32 2147483647, %v532_v56 }
  0x95   :  { %v727_v35 = vmax.f32 %v717_v12, %v1706_v11  ;;  %v1712_v3 = vunpack.c.l.bf16 %v735_v50  ;;  %v339_v27 = vmax.f32 %v338_v31, 0.0  ;;  %1176 = vpow2.f32 %v589_v30 }
  0x96   :  { %v593_v41 = vmul.f32 1.442695, %v592_v61  ;;  %v596_v44 = vsub.f32 %v1545_v21, %v1626_v60  ;;  %v1718_v63 = vadd.f32 1e-07, %v157_v8  ;;  %v1721_v16 = vadd.f32 %v1649_v51, %v311_v34  ;;  %v765_v34 = vld [vmem:[#allocation5 + $0x5a] sm:$0x3] }
  0x97   :  { %v579_v4 = vadd.f32 %v1169_v17, %v575_v13  ;;  %v737_v59 = vmax.f32 %v727_v35, %v1712_v3  ;;  %v1171_v28 = vpop.eup %1170  ;;  %v401_v46 = vadd.f32 %v1167_v54, %v397_v33  ;;  %v507_v5 = vadd.f32 %v506_v15, %v497_v2  ;;  %v775_v2 = vld [vmem:[#allocation5 + $0x5c] sm:$0x3] }
  0x98   :  { %2054 = vst [vmem:[#allocation15_spill] sm:$0xff] %v1721_v16  ;;  %v642_v36 = vsub.f32 1.0, %v1709_v7  ;;  %v1725_v31 = vunpack.c.l.bf16 %v745_v9  ;;  %v1173_v55 = vpop.eup %1172  ;;  %v516_v0 = vmul.f32 %v515_v1, %v1571_v37  ;;  %v525_v21 = vmax.f32 %v524_v19, 0.0 }
  0x99   :  { %v534_v56 = vsub.f32 1.0, %v533_v24  ;;  %v600_v51 = vsub.f32 %v1551_v39, %v1626_v60  ;;  %1178 = vpow2.f32 %v593_v41  ;;  %v597_v62 = vmul.f32 1.442695, %v596_v44 }
  0x9a   :  { %v747_v8 = vmax.f32 %v737_v59, %v1725_v31  ;;  %v1731_v30 = vunpack.c.l.bf16 %v755_v22  ;;  %v1734_v61 = vmul.f32 %v339_v27, %v1486_v14  ;;  %v542_v50 = vsub.f32 13.0, %v1548_v48  ;;  %v785_v27 = vld [vmem:[#allocation5 + $0x5e] sm:$0x3] }
  0x9b   :  { %v583_v54 = vadd.f32 %v1171_v28, %v579_v4  ;;  %v658_v33 = vsub.f32 2.0, %v1709_v7  ;;  %v1175_v13 = vpop.eup %1174  ;;  %1180 = vrsqrt.f32 %v1718_v63  ;;  %v649_v12 = vand.u32 2147483647, %v642_v36 }
  0x9c   :  { %2055 = vst [vmem:[#allocation16_spill] sm:$0xff] %v1734_v61  ;;  %v757_v39 = vmax.f32 %v747_v8, %v1731_v30  ;;  %v1740_v17 = vunpack.c.l.bf16 %v765_v34  ;;  %v405_v15 = vadd.f32 %v1173_v55, %v401_v46  ;;  %v517_v1 = vadd.f32 %v516_v0, %v507_v5 }
  0x9d   :  { %v526_v19 = vmul.f32 %v525_v21, %v1582_v52  ;;  %v535_v14 = vmax.f32 %v534_v56, 0.0  ;;  %1182 = vpow2.f32 %v597_v62  ;;  %v601_v24 = vmul.f32 1.442695, %v600_v51 }
  0x9e   :  { %2056 = vst [vmem:[#allocation17_spill] sm:$0xff] %v1740_v17  ;;  %v604_v35 = vsub.f32 %v1559_v53, %v1626_v60  ;;  %v767_v9 = vmax.f32 %v757_v39, %v1740_v17  ;;  %v587_v44 = vadd.f32 %v1175_v13, %v583_v54  ;;  %v659_v4 = vand.u32 2147483647, %v658_v33 }
  0x9f   :  { %v1747_v59 = vunpack.c.l.bf16 %v775_v2  ;;  %v1177_v22 = vpop.eup %1176  ;;  %v543_v28 = vand.u32 2147483647, %v542_v50  ;;  %v552_v46 = vsub.f32 14.0, %v1548_v48  ;;  %v650_v5 = vsub.f32 1.0, %v649_v12 }
  0xa0   :  { %v668_v55 = vsub.f32 3.0, %v1709_v7  ;;  %1184 = vlog2.f32 %v405_v15  ;;  %v527_v0 = vadd.f32 %v526_v19, %v517_v1  ;;  %v1752_v21 = vunpack.c.l.bf16 %v785_v27 }
  0xa1   :  { %v777_v53 = vmax.f32 %v767_v9, %v1747_v59  ;;  %v536_v56 = vmul.f32 %v535_v14, %v1590_v32  ;;  %1186 = vpow2.f32 %v601_v24  ;;  %v605_v51 = vmul.f32 1.442695, %v604_v35 }
  0xa2   :  { %v608_v34 = vsub.f32 %v1571_v37, %v1626_v60  ;;  %v591_v62 = vadd.f32 %v1177_v22, %v587_v44  ;;  %v660_v8 = vsub.f32 1.0, %v659_v4  ;;  %v678_v50 = vsub.f32 4.0, %v1709_v7 }
  0xa3   :  { %v1759_v54 = vmax.f32 %v777_v53, %v1752_v21  ;;  %v1179_v33 = vpop.eup %1178  ;;  %v562_v13 = vsub.f32 15.0, %v1548_v48  ;;  %v643_v12 = vmax.f32 %v642_v36, 0.0  ;;  %v651_v39 = vmax.f32 %v650_v5, 0.0 }
  0xa4   :  { %v669_v2 = vand.u32 2147483647, %v668_v55  ;;  %v544_v15 = vsub.f32 1.0, %v543_v28  ;;  %v1762_v1 = vand.u32 2147483647, %v552_v46  ;;  %v1770_v24 = vadd.f32 %v536_v56, %v527_v0 }
  0xa5   :  { %v794_v19 = vsub.f32 %v1643_v6, %v1759_v54  ;;  %v798_v37 = vsub.f32 %v1645_v25, %v1759_v54  ;;  %v1768_v14 = vpop.eup %1180  ;;  %1188 = vpow2.f32 %v605_v51  ;;  %v609_v35 = vmul.f32 1.442695, %v608_v34 }
  0xa6   :  { %v612_v48 = vsub.f32 %v1582_v52, %v1626_v60  ;;  %v595_v36 = vadd.f32 %v1179_v33, %v591_v62  ;;  %v661_v9 = vmax.f32 %v660_v8, 0.0  ;;  %v679_v27 = vand.u32 2147483647, %v678_v50 }
  0xa7   :  { %v688_v44 = vsub.f32 5.0, %v1709_v7  ;;  %v1183_v4 = vpop.eup %1182  ;;  %v644_v22 = vmul.f32 %v643_v12, %v1643_v6  ;;  %v652_v28 = vmul.f32 %v651_v39, %v1645_v25  ;;  %v670_v46 = vsub.f32 1.0, %v669_v2 }
  0xa8   :  { %v795_v5 = vmul.f32 1.442695, %v794_v19  ;;  %v1777_v55 = vmax.f32 %v544_v15, 0.0  ;;  %v1779_v0 = vand.u32 2147483647, %v562_v13  ;;  %v802_v52 = vsub.f32 %v1660_v40, %v1759_v54 }
  0xa9   :  { %v799_v53 = vmul.f32 1.442695, %v798_v37  ;;  %1190 = vpow2.f32 %v609_v35  ;;  %v613_v51 = vmul.f32 1.442695, %v612_v48  ;;  %v616_v34 = vsub.f32 %v1590_v32, %v1626_v60  ;;  %v866_v19 = vld [vmem:[#allocation5 + $0x60] sm:$0x3] }
  0xaa   :  { %v1786_v6 = vpop.eup %1184  ;;  %v599_v25 = vadd.f32 %v1183_v4, %v595_v36  ;;  %v662_v62 = vmul.f32 %v661_v9, %v1660_v40  ;;  %v680_v8 = vsub.f32 1.0, %v679_v27  ;;  %v689_v50 = vand.u32 2147483647, %v688_v44  ;;  %v872_v44 = vld [vmem:[#allocation5 + $0x62] sm:$0x3] }
  0xab   :  { %2057 = vst [vmem:[#allocation18_spill] sm:$0xff] %v1786_v6  ;;  %v1187_v33 = vpop.eup %1186  ;;  %v653_v13 = vadd.f32 %v652_v28, %v644_v22  ;;  %v671_v12 = vmax.f32 %v670_v46, 0.0  ;;  %v698_v39 = vsub.f32 6.0, %v1709_v7  ;;  %1192 = vpow2.f32 %v795_v5 }
  0xac   :  { %v620_v2 = vsub.f32 %v1598_v57, %v1626_v60  ;;  %1194 = vpow2.f32 %v799_v53  ;;  %v803_v15 = vmul.f32 1.442695, %v802_v52  ;;  %v806_v32 = vsub.f32 %v1668_v43, %v1759_v54  ;;  %v881_v53 = vld [vmem:[#allocation5 + $0x64] sm:$0x3] }
  0xad   :  { %v617_v40 = vmul.f32 1.442695, %v616_v34  ;;  %v624_v35 = vsub.f32 %v1610_v20, %v1626_v60  ;;  %v628_v48 = vsub.f32 %v1616_v42, %v1626_v60  ;;  %v603_v36 = vadd.f32 %v1187_v33, %v599_v25 }
  0xae   :  { %1196 = vpow2.f32 %v613_v51  ;;  %v681_v9 = vmax.f32 %v680_v8, 0.0  ;;  %v690_v27 = vsub.f32 1.0, %v689_v50  ;;  %v663_v22 = vadd.f32 %v662_v62, %v653_v13  ;;  %v891_v50 = vld [vmem:[#allocation5 + $0x66] sm:$0x3] }
  0xaf   :  { %v1189_v4 = vpop.eup %1188  ;;  %v672_v28 = vmul.f32 %v671_v12, %v1668_v43  ;;  %v699_v46 = vand.u32 2147483647, %v698_v39  ;;  %v1800_v5 = vunpack.c.l.bf16 %v866_v19  ;;  %v621_v52 = vmul.f32 1.442695, %v620_v2 }
  0xb0   :  { %1198 = vpow2.f32 %v803_v15  ;;  %v807_v34 = vmul.f32 1.442695, %v806_v32  ;;  %v810_v41 = vsub.f32 %v1671_v29, %v1759_v54  ;;  %v625_v25 = vmul.f32 1.442695, %v624_v35 }
  0xb1   :  { %1200 = vpow2.f32 %v617_v40  ;;  %v708_v51 = vsub.f32 7.0, %v1709_v7  ;;  %v1805_v8 = vunpack.c.l.bf16 %v872_v44  ;;  %v607_v62 = vadd.f32 %v1189_v4, %v603_v36  ;;  %v901_v44 = vld [vmem:[#allocation5 + $0x68] sm:$0x3] }
  0xb2   :  { %v682_v43 = vmul.f32 %v681_v9, %v1671_v29  ;;  %v691_v33 = vmax.f32 %v690_v27, 0.0  ;;  %v1808_v13 = vunpack.c.l.bf16 %v881_v53  ;;  %v673_v39 = vadd.f32 %v672_v28, %v663_v22 }
  0xb3   :  { %v1191_v12 = vpop.eup %1190  ;;  %v700_v2 = vsub.f32 1.0, %v699_v46  ;;  %v863_v15 = vmax.f32 %v185_v18, 0.0  ;;  %v874_v32 = vmax.f32 %v1800_v5, %v1805_v8  ;;  %1202 = vpow2.f32 %v807_v34 }
  0xb4   :  { %v811_v19 = vmul.f32 1.442695, %v810_v41  ;;  %v814_v40 = vsub.f32 %v1677_v23, %v1759_v54  ;;  %v1817_v35 = vunpack.c.l.bf16 %v891_v50  ;;  %1204 = vpow2.f32 %v621_v52  ;;  %v911_v41 = vld [vmem:[#allocation5 + $0x6a] sm:$0x3] }
  0xb5   :  { %v1193_v29 = vpop.eup %1192  ;;  %v709_v36 = vand.u32 2147483647, %v708_v51  ;;  %v718_v9 = vsub.f32 8.0, %v1709_v7  ;;  %v883_v27 = vmax.f32 %v874_v32, %v1808_v13  ;;  %v611_v47 = vadd.f32 %v1191_v12, %v607_v62  ;;  %v921_v62 = vld [vmem:[#allocation5 + $0x6c] sm:$0x3] }
  0xb6   :  { %v1195_v10 = vpop.eup %1194  ;;  %1206 = vpow2.f32 %v625_v25  ;;  %v629_v18 = vmul.f32 1.442695, %v628_v48  ;;  %v692_v4 = vmul.f32 %v691_v33, %v1677_v23  ;;  %v683_v22 = vadd.f32 %v682_v43, %v673_v39 }
  0xb7   :  { %v701_v28 = vmax.f32 %v700_v2, 0.0  ;;  %v818_v46 = vsub.f32 %v1681_v49, %v1759_v54  ;;  %v893_v53 = vmax.f32 %v883_v27, %v1817_v35  ;;  %1208 = vpow2.f32 %v811_v19 }
  0xb8   :  { %v1197_v52 = vpop.eup %1196  ;;  %v815_v34 = vmul.f32 1.442695, %v814_v40  ;;  %v1825_v51 = vmin.f32 %v863_v15, 14.99  ;;  %v1827_v50 = vunpack.c.l.bf16 %v901_v44  ;;  %v710_v25 = vsub.f32 1.0, %v709_v36 }
  0xb9   :  { %v719_v48 = vand.u32 2147483647, %v718_v9  ;;  %v801_v12 = vadd.f32 %v1195_v10, %v1193_v29  ;;  %v1829_v23 = vunpack.c.l.bf16 %v911_v41  ;;  %v1833_v33 = vmul.f32 %v1777_v55, %v1598_v57  ;;  %v931_v29 = vld [vmem:[#allocation5 + $0x6e] sm:$0x3]  ;;  %v941_v41 = vld [vmem:[#allocation5 + $0x70] sm:$0x3] }
  0xba   :  { %v1199_v43 = vpop.eup %1198  ;;  %1210 = vpow2.f32 %v629_v18  ;;  %v728_v39 = vsub.f32 9.0, %v1709_v7  ;;  %v903_v2 = vmax.f32 %v893_v53, %v1827_v50  ;;  %v615_v32 = vadd.f32 %v1197_v52, %v611_v47 }
  0xbb   :  { %v1201_v15 = vpop.eup %1200  ;;  %v819_v19 = vmul.f32 1.442695, %v818_v46  ;;  %v822_v40 = vsub.f32 %v1692_v58, %v1759_v54  ;;  %v1839_v36 = vunpack.c.l.bf16 %v921_v62  ;;  %v693_v9 = vadd.f32 %v692_v4, %v683_v22 }
  0xbc   :  { %1212 = vpow2.f32 %v815_v34  ;;  %v868_v27 = vsub.f32 1.0, %v1825_v51  ;;  %v913_v57 = vmax.f32 %v903_v2, %v1829_v23  ;;  %v702_v55 = vmul.f32 %v701_v28, %v1681_v49 }
  0xbd   :  { %v711_v44 = vmax.f32 %v710_v25, 0.0  ;;  %v720_v10 = vsub.f32 1.0, %v719_v48  ;;  %v805_v18 = vadd.f32 %v1199_v43, %v801_v12  ;;  %v1203_v47 = vpop.eup %1202  ;;  %v729_v46 = vand.u32 2147483647, %v728_v39  ;;  %v951_v43 = vld [vmem:[#allocation5 + $0x72] sm:$0x3] }
  0xbe   :  { %v738_v53 = vsub.f32 10.0, %v1709_v7  ;;  %v923_v52 = vmax.f32 %v913_v57, %v1839_v36  ;;  %v1846_v62 = vunpack.c.l.bf16 %v931_v29  ;;  %v1205_v4 = vpop.eup %1204  ;;  %v619_v22 = vadd.f32 %v1201_v15, %v615_v32  ;;  %v961_v15 = vld [vmem:[#allocation5 + $0x74] sm:$0x3] }
  0xbf   :  { %1214 = vpow2.f32 %v819_v19  ;;  %v823_v34 = vmul.f32 1.442695, %v822_v40  ;;  %v826_v2 = vsub.f32 %v1701_v26, %v1759_v54  ;;  %v875_v28 = vand.u32 2147483647, %v868_v27 }
  0xc0   :  { %v1207_v49 = vpop.eup %1206  ;;  %v884_v25 = vsub.f32 2.0, %v1825_v51  ;;  %v933_v48 = vmax.f32 %v923_v52, %v1846_v62  ;;  %v1852_v12 = vunpack.c.l.bf16 %v941_v41  ;;  %v703_v39 = vadd.f32 %v702_v55, %v693_v9 }
  0xc1   :  { %v712_v29 = vmul.f32 %v711_v44, %v1692_v58  ;;  %v721_v57 = vmax.f32 %v720_v10, 0.0  ;;  %v809_v37 = vadd.f32 %v1203_v47, %v805_v18  ;;  %v1209_v32 = vpop.eup %1208  ;;  %v730_v19 = vsub.f32 1.0, %v729_v46  ;;  %v971_v18 = vld [vmem:[#allocation5 + $0x76] sm:$0x3] }
  0xc2   :  { %v1855_v40 = vand.u32 2147483647, %v738_v53  ;;  %v748_v56 = vsub.f32 11.0, %v1709_v7  ;;  %v943_v60 = vmax.f32 %v933_v48, %v1852_v12  ;;  %v827_v38 = vmul.f32 1.442695, %v826_v2 }
  0xc3   :  { %v830_v41 = vsub.f32 %v1706_v11, %v1759_v54  ;;  %v894_v52 = vsub.f32 3.0, %v1825_v51  ;;  %v1862_v9 = vunpack.c.l.bf16 %v951_v43  ;;  %1216 = vpow2.f32 %v823_v34  ;;  %v981_v34 = vld [vmem:[#allocation5 + $0x78] sm:$0x3] }
  0xc4   :  { %v1864_v58 = vpop.eup %1210  ;;  %v876_v55 = vsub.f32 1.0, %v875_v28  ;;  %v885_v44 = vand.u32 2147483647, %v884_v25  ;;  %v1866_v10 = vunpack.c.l.bf16 %v961_v15  ;;  %v623_v47 = vadd.f32 %v1205_v4, %v619_v22  ;;  %v991_v22 = vld [vmem:[#allocation5 + $0x7a] sm:$0x3] }
  0xc5   :  { %v713_v46 = vadd.f32 %v712_v29, %v703_v39  ;;  %v813_v53 = vadd.f32 %v1209_v32, %v809_v37  ;;  %v953_v2 = vmax.f32 %v943_v60, %v1862_v9  ;;  %v722_v61 = vmul.f32 %v721_v57, %v1701_v26 }
  0xc6   :  { %v1213_v48 = vpop.eup %1212  ;;  %v731_v6 = vmax.f32 %v730_v19, 0.0  ;;  %v740_v43 = vsub.f32 1.0, %v1855_v40  ;;  %v834_v42 = vsub.f32 %v1712_v3, %v1759_v54  ;;  %v831_v28 = vmul.f32 1.442695, %v830_v41 }
  0xc7   :  { %v895_v25 = vand.u32 2147483647, %v894_v52  ;;  %v963_v15 = vmax.f32 %v953_v2, %v1866_v10  ;;  %v1874_v45 = vunpack.c.l.bf16 %v971_v18  ;;  %1218 = vpow2.f32 %v827_v38 }
  0xc8   :  { %v869_v37 = vmax.f32 %v868_v27, 0.0  ;;  %v877_v4 = vmax.f32 %v876_v55, 0.0  ;;  %v886_v60 = vsub.f32 1.0, %v885_v44  ;;  %v817_v26 = vadd.f32 %v1213_v48, %v813_v53  ;;  %v1001_v27 = vld [vmem:[#allocation5 + $0x7c] sm:$0x3] }
  0xc9   :  { %v1215_v39 = vpop.eup %1214  ;;  %v904_v29 = vsub.f32 4.0, %v1825_v51  ;;  %v973_v57 = vmax.f32 %v963_v15, %v1874_v45  ;;  %v1878_v32 = vunpack.c.l.bf16 %v981_v34  ;;  %v1880_v19 = vadd.f32 %v1207_v49, %v623_v47  ;;  %v1011_v34 = vld [vmem:[#allocation5 + $0x7e] sm:$0x3] }
  0xca   :  { %v1882_v40 = vand.u32 2147483647, %v748_v56  ;;  %v835_v41 = vmul.f32 1.442695, %v834_v42  ;;  %v838_v38 = vsub.f32 %v1725_v31, %v1759_v54  ;;  %v896_v52 = vsub.f32 1.0, %v895_v25 }
  0xcb   :  { %v914_v55 = vsub.f32 5.0, %v1825_v51  ;;  %v983_v44 = vmax.f32 %v973_v57, %v1878_v32  ;;  %v1888_v18 = vunpack.c.l.bf16 %v991_v22  ;;  %1220 = vpow2.f32 %v831_v28 }
  0xcc   :  { %v870_v53 = vmul.f32 %v869_v37, %v1800_v5  ;;  %v878_v49 = vmul.f32 %v877_v4, %v1805_v8  ;;  %v887_v47 = vmax.f32 %v886_v60, 0.0  ;;  %v821_v56 = vadd.f32 %v1215_v39, %v817_v26 }
  0xcd   :  { %v905_v2 = vand.u32 2147483647, %v904_v29  ;;  %v993_v42 = vmax.f32 %v983_v44, %v1888_v18  ;;  %v1893_v48 = vunpack.c.l.bf16 %v1001_v27  ;;  %v1217_v25 = vpop.eup %1216  ;;  %v1895_v15 = vadd.f32 %v722_v61, %v713_v46 }
  0xce   :  { %v1898_v57 = vmul.f32 %v731_v6, %v1706_v11  ;;  %v842_v37 = vsub.f32 %v1731_v30, %v1759_v54  ;;  %v839_v4 = vmul.f32 1.442695, %v838_v38  ;;  %v897_v60 = vmax.f32 %v896_v52, 0.0 }
  0xcf   :  { %v915_v22 = vand.u32 2147483647, %v914_v55  ;;  %v1003_v39 = vmax.f32 %v993_v42, %v1893_v48  ;;  %v1904_v26 = vmax.f32 %v740_v43, 0.0  ;;  %1222 = vpow2.f32 %v835_v41 }
  0xd0   :  { %v888_v29 = vmul.f32 %v887_v47, %v1808_v13  ;;  %v1907_v61 = vunpack.c.l.bf16 %v1011_v34  ;;  %v825_v46 = vadd.f32 %v1217_v25, %v821_v56  ;;  %v879_v11 = vadd.f32 %v878_v49, %v870_v53 }
  0xd1   :  { %v906_v6 = vsub.f32 1.0, %v905_v2  ;;  %v924_v27 = vsub.f32 6.0, %v1825_v51  ;;  %v1219_v44 = vpop.eup %1218  ;;  %v843_v38 = vmul.f32 1.442695, %v842_v37  ;;  %v846_v52 = vsub.f32 %v1740_v17, %v1759_v54 }
  0xd2   :  { %v1914_v43 = vmax.f32 %v1003_v39, %v1907_v61  ;;  %1224 = vpow2.f32 %v839_v4  ;;  %v898_v41 = vmul.f32 %v897_v60, %v1817_v35  ;;  %v916_v55 = vsub.f32 1.0, %v915_v22 }
  0xd3   :  { %v934_v47 = vsub.f32 7.0, %v1825_v51  ;;  %v829_v42 = vadd.f32 %v1219_v44, %v825_v46  ;;  %v889_v34 = vadd.f32 %v888_v29, %v879_v11  ;;  %v907_v25 = vmax.f32 %v906_v6, 0.0 }
  0xd4   :  { %v1020_v53 = vsub.f32 %v1800_v5, %v1914_v43  ;;  %v1024_v49 = vsub.f32 %v1805_v8, %v1914_v43  ;;  %v1028_v56 = vsub.f32 %v1808_v13, %v1914_v43  ;;  %v1032_v2 = vsub.f32 %v1817_v35, %v1914_v43 }
  0xd5   :  { %v925_v37 = vand.u32 2147483647, %v924_v27  ;;  %v1221_v4 = vpop.eup %1220  ;;  %v1036_v5 = vsub.f32 %v1827_v50, %v1914_v43  ;;  %1226 = vpow2.f32 %v843_v38  ;;  %v847_v28 = vmul.f32 1.442695, %v846_v52 }
  0xd6   :  { %v1021_v60 = vmul.f32 1.442695, %v1020_v53  ;;  %v1025_v22 = vmul.f32 1.442695, %v1024_v49  ;;  %v1029_v39 = vmul.f32 1.442695, %v1028_v56  ;;  %v850_v8 = vsub.f32 %v1747_v59, %v1759_v54 }
  0xd7   :  { %v1033_v13 = vmul.f32 1.442695, %v1032_v2  ;;  %v917_v16 = vmax.f32 %v916_v55, 0.0  ;;  %v935_v17 = vand.u32 2147483647, %v934_v47  ;;  %v1040_v35 = vsub.f32 %v1829_v23, %v1914_v43 }
  0xd8   :  { %1228 = vpow2.f32 %v1021_v60  ;;  %v899_v29 = vadd.f32 %v898_v41, %v889_v34  ;;  %v1037_v46 = vmul.f32 1.442695, %v1036_v5  ;;  %v1044_v11 = vsub.f32 %v1839_v36, %v1914_v43 }
  0xd9   :  { %1230 = vpow2.f32 %v1025_v22  ;;  %v1223_v6 = vpop.eup %1222  ;;  %v833_v27 = vadd.f32 %v1221_v4, %v829_v42  ;;  %v908_v44 = vmul.f32 %v907_v25, %v1827_v50  ;;  %v926_v38 = vsub.f32 1.0, %v925_v37 }
  0xda   :  { %1232 = vpow2.f32 %v1029_v39  ;;  %v1937_v52 = vadd.f32 %v1864_v58, %v1880_v19  ;;  %v1041_v55 = vmul.f32 1.442695, %v1040_v35  ;;  %v1048_v41 = vsub.f32 %v1846_v62, %v1914_v43 }
  0xdb   :  { %1234 = vpow2.f32 %v1033_v13  ;;  %v851_v47 = vmul.f32 1.442695, %v850_v8  ;;  %v854_v53 = vsub.f32 %v1752_v21, %v1759_v54  ;;  %v944_v49 = vsub.f32 8.0, %v1825_v51 }
  0xdc   :  { %1236 = vpow2.f32 %v847_v28  ;;  %v1225_v56 = vpop.eup %1224  ;;  %v918_v50 = vmul.f32 %v917_v16, %v1829_v23  ;;  %v1045_v2 = vmul.f32 1.442695, %v1044_v11  ;;  %v1052_v58 = vsub.f32 %v1852_v12, %v1914_v43 }
  0xdd   :  { %1238 = vpow2.f32 %v1037_v46  ;;  %v837_v19 = vadd.f32 %v1223_v6, %v833_v27  ;;  %v909_v42 = vadd.f32 %v908_v44, %v899_v29  ;;  %v927_v34 = vmax.f32 %v926_v38, 0.0 }
  0xde   :  { %v936_v25 = vsub.f32 1.0, %v935_v17  ;;  %v954_v28 = vsub.f32 9.0, %v1825_v51  ;;  %1240 = vpow2.f32 %v1041_v55  ;;  %v1049_v37 = vmul.f32 1.442695, %v1048_v41 }
  0xdf   :  { %v1056_v4 = vsub.f32 %v1862_v9, %v1914_v43  ;;  %v2058_v60 = vsub.f32 12.0, %v1709_v7  ;;  %1242 = vpow2.f32 %v851_v47  ;;  %v855_v16 = vmul.f32 1.442695, %v854_v53  ;;  %v1227_v39 = vpop.eup %1226 }
  0xe0   :  { %v945_v23 = vand.u32 2147483647, %v944_v49  ;;  %v768_v5 = vsub.f32 13.0, %v1709_v7  ;;  %1244 = vpow2.f32 %v1045_v2  ;;  %v1053_v8 = vmul.f32 1.442695, %v1052_v58 }
  0xe1   :  { %v1952_v22 = vand.u32 2147483647, %v2058_v60  ;;  %v1060_v17 = vsub.f32 %v1866_v10, %v1914_v43  ;;  %v841_v35 = vadd.f32 %v1225_v56, %v837_v19  ;;  %v919_v29 = vadd.f32 %v918_v50, %v909_v42 }
  0xe2   :  { %v1229_v13 = vpop.eup %1228  ;;  %v928_v46 = vmul.f32 %v927_v34, %v1839_v36  ;;  %v937_v11 = vmax.f32 %v936_v25, 0.0  ;;  %v955_v27 = vand.u32 2147483647, %v954_v28  ;;  %1246 = vpow2.f32 %v1049_v37 }
  0xe3   :  { %v1231_v6 = vpop.eup %1230  ;;  %v1057_v44 = vmul.f32 1.442695, %v1056_v4  ;;  %v1064_v38 = vsub.f32 %v1874_v45, %v1914_v43  ;;  %1248 = vpow2.f32 %v855_v16  ;;  %v946_v41 = vsub.f32 1.0, %v945_v23 }
  0xe4   :  { %v1233_v55 = vpop.eup %1232  ;;  %v964_v47 = vsub.f32 10.0, %v1825_v51  ;;  %v1027_v53 = vadd.f32 %v1231_v6, %v1229_v13  ;;  %v733_v56 = vadd.f32 %v1898_v57, %v1895_v15  ;;  %1250 = vpow2.f32 %v1053_v8 }
  0xe5   :  { %v1235_v49 = vpop.eup %1234  ;;  %v1061_v36 = vmul.f32 1.442695, %v1060_v17  ;;  %v1068_v50 = vsub.f32 %v1878_v32, %v1914_v43  ;;  %v845_v58 = vadd.f32 %v1227_v39, %v841_v35  ;;  %v929_v19 = vadd.f32 %v928_v46, %v919_v29 }
  0xe6   :  { %v1237_v2 = vpop.eup %1236  ;;  %v938_v42 = vmul.f32 %v937_v11, %v1846_v62  ;;  %v1031_v34 = vadd.f32 %v1233_v55, %v1027_v53  ;;  %v956_v28 = vsub.f32 1.0, %v955_v27  ;;  %1252 = vpow2.f32 %v1057_v44 }
  0xe7   :  { %v1239_v25 = vpop.eup %1238  ;;  %v1065_v37 = vmul.f32 1.442695, %v1064_v38  ;;  %v1072_v4 = vsub.f32 %v1888_v18, %v1914_v43  ;;  %v947_v60 = vmax.f32 %v946_v41, 0.0  ;;  %v965_v15 = vand.u32 2147483647, %v964_v47 }
  0xe8   :  { %v974_v57 = vsub.f32 11.0, %v1825_v51  ;;  %v1035_v16 = vadd.f32 %v1235_v49, %v1031_v34  ;;  %v1241_v23 = vpop.eup %1240  ;;  %v742_v39 = vmul.f32 %v1904_v26, %v1712_v3  ;;  %1254 = vpow2.f32 %v1061_v36 }
  0xe9   :  { %v1069_v8 = vmul.f32 1.442695, %v1068_v50  ;;  %v1076_v62 = vsub.f32 %v1893_v48, %v1914_v43  ;;  %v1243_v17 = vpop.eup %1242  ;;  %1256 = vlog2.f32 %v1937_v52  ;;  %v849_v13 = vadd.f32 %v1237_v2, %v845_v58 }
  0xea   :  { %v939_v35 = vadd.f32 %v938_v42, %v929_v19  ;;  %v1039_v29 = vadd.f32 %v1239_v25, %v1035_v16  ;;  %v1245_v46 = vpop.eup %1244  ;;  %v957_v11 = vmax.f32 %v956_v28, 0.0  ;;  %1258 = vpow2.f32 %v1065_v37 }
  0xeb   :  { %v1073_v6 = vmul.f32 1.442695, %v1072_v4  ;;  %v1080_v27 = vsub.f32 %v1907_v61, %v1914_v43  ;;  %v948_v3 = vmul.f32 %v947_v60, %v1852_v12  ;;  %v966_v26 = vsub.f32 1.0, %v965_v15 }
  0xec   :  { %v975_v44 = vand.u32 2147483647, %v974_v57  ;;  %v1043_v38 = vadd.f32 %v1241_v23, %v1039_v29  ;;  %v1247_v55 = vpop.eup %1246  ;;  %v2059_v41 = vsub.f32 1.0, %v1882_v40  ;;  %v984_v52 = vsub.f32 12.0, %v1825_v51 }
  0xed   :  { %1260 = vpow2.f32 %v1069_v8  ;;  %v1077_v53 = vmul.f32 1.442695, %v1076_v62  ;;  %v1249_v49 = vpop.eup %1248  ;;  %v760_v36 = vsub.f32 1.0, %v1952_v22  ;;  %v769_v50 = vand.u32 2147483647, %v768_v5 }
  0xee   :  { %v751_v47 = vmax.f32 %v2059_v41, 0.0  ;;  %v853_v2 = vadd.f32 %v1243_v17, %v849_v13  ;;  %v1047_v58 = vadd.f32 %v1245_v46, %v1043_v38  ;;  %v1251_v12 = vpop.eup %1250  ;;  %vm161_vm2 = vcmp.eq.f32.partialorder %v1718_v63, inf }
  0xef   :  { %v778_v19 = vsub.f32 14.0, %v1709_v7  ;;  %v958_v40 = vmul.f32 %v957_v11, %v1862_v9  ;;  %1262 = vpow2.f32 %v1073_v6  ;;  %v1081_v42 = vmul.f32 1.442695, %v1080_v27 }
  0xf0   :  { %v949_v34 = vadd.f32 %v948_v3, %v939_v35  ;;  %v967_v25 = vmax.f32 %v966_v26, 0.0  ;;  %v976_v28 = vsub.f32 1.0, %v975_v44  ;;  %v1051_v37 = vadd.f32 %v1247_v55, %v1047_v58  ;;  %v1253_v4 = vpop.eup %1252 }
  0xf1   :  { %v743_v22 = vadd.f32 %v742_v39, %v733_v56  ;;  %v985_v60 = vand.u32 2147483647, %v984_v52  ;;  %v994_v5 = vsub.f32 13.0, %v1825_v51  ;;  %1264 = vpow2.f32 %v1077_v53 }
  0xf2   :  { %v752_v15 = vmul.f32 %v751_v47, %v1725_v31  ;;  %v761_v57 = vmax.f32 %v760_v36, 0.0  ;;  %v857_v16 = vadd.f32 %v1249_v49, %v853_v2  ;;  %v1055_v23 = vadd.f32 %v1251_v12, %v1051_v37  ;;  %v1255_v8 = vpop.eup %1254 }
  0xf3   :  { %vm163_vm3 = vcmp.eq.f32.partialorder %v1718_v63, 0.0  ;;  %v770_v9 = vsub.f32 1.0, %v769_v50  ;;  %v779_v62 = vand.u32 2147483647, %v778_v19  ;;  %v788_v17 = vsub.f32 15.0, %v1709_v7  ;;  %v1257_v13 = vpop.eup %1256 }
  0xf4   :  { %1266 = vpow2.f32 %v1081_v42  ;;  %v959_v35 = vadd.f32 %v958_v40, %v949_v34  ;;  %v968_v56 = vmul.f32 %v967_v25, %v1866_v10  ;;  %v977_v39 = vmax.f32 %v976_v28, 0.0  ;;  %v1259_v46 = vpop.eup %1258 }
  0xf5   :  { %v1059_v29 = vadd.f32 %v1253_v4, %v1055_v23  ;;  %v2060_v31 = vsub.f32 1.0, %v1762_v1  ;;  %v986_v6 = vsub.f32 1.0, %v985_v60  ;;  %v995_v27 = vand.u32 2147483647, %v994_v5  ;;  %v2063_v4 = vld [vmem:[#allocation15_spill] sm:$0xff] }
  0xf6   :  { %v1004_v3 = vsub.f32 14.0, %v1825_v51  ;;  %v160_v26 = vmul.f32 %v1768_v14, %v1718_v63  ;;  %v753_v44 = vadd.f32 %v752_v15, %v743_v22  ;;  %1268 = vlog2.f32 %v857_v16  ;;  %v2064_v22 = vld [vmem:[#allocation14_spill] sm:$0xff] }
  0xf7   :  { %v555_v11 = vmax.f32 %v2060_v31, 0.0  ;;  %v1063_v7 = vadd.f32 %v1255_v8, %v1059_v29  ;;  %v1261_v38 = vpop.eup %1260  ;;  %v762_v55 = vmul.f32 %v761_v57, %v1731_v30  ;;  %v771_v10 = vmax.f32 %v770_v9, 0.0  ;;  %v68_v23 = vld [vmem:[#allocation2 + $0x38] sm:$0xf] }
  0xf8   :  { %v780_v41 = vsub.f32 1.0, %v779_v62  ;;  %v789_v47 = vand.u32 2147483647, %v788_v17  ;;  %v2061_v52 = vsub.f32 1.0, %v1779_v0  ;;  %v969_v53 = vadd.f32 %v968_v56, %v959_v35  ;;  %v2067_v17 = vld [vmem:[#allocation18_spill] sm:$0xff] }
  0xf9   :  { %v978_v49 = vmul.f32 %v977_v39, %v1874_v45  ;;  %v1067_v36 = vadd.f32 %v1259_v46, %v1063_v7  ;;  %v1263_v50 = vpop.eup %1262  ;;  %v987_v2 = vmax.f32 %v986_v6, 0.0  ;;  %v996_v58 = vsub.f32 1.0, %v995_v27  ;;  %v2062_v45 = vld [vmem:[#allocation17_spill] sm:$0xff] }
  0xfa   :  { %v565_v1 = vmax.f32 %v2061_v52, 0.0  ;;  %v1005_v14 = vand.u32 2147483647, %v1004_v3  ;;  %v1014_v12 = vsub.f32 15.0, %v1825_v51  ;;  %v162_v30 = vsel %vm161_vm2, %v1718_v63, %v160_v26  ;;  %v2065_v51 = vld [vmem:[#allocation12_spill] sm:$0xff] }
  0xfb   :  { %v547_v19 = vadd.f32 %v1833_v33, %v1770_v24  ;;  %v556_v0 = vmul.f32 %v555_v11, %v1610_v20  ;;  %v1071_v40 = vadd.f32 %v1261_v38, %v1067_v36  ;;  %v1265_v42 = vpop.eup %1264  ;;  %v763_v34 = vadd.f32 %v762_v55, %v753_v44  ;;  %v2069_v55 = vld [vmem:[#allocation11_spill] sm:$0xff] }
  0xfc   :  { %v772_v25 = vmul.f32 %v771_v10, %v2062_v45  ;;  %v781_v28 = vmax.f32 %v780_v41, 0.0  ;;  %v790_v37 = vsub.f32 1.0, %v789_v47  ;;  %v331_v60 = vadd.f32 %v2064_v22, %v2063_v4 }
  0xfd   :  { %v566_v5 = vmul.f32 %v565_v1, %v2065_v51  ;;  %v979_v15 = vadd.f32 %v978_v49, %v969_v53  ;;  %v1075_v57 = vadd.f32 %v1263_v50, %v1071_v40  ;;  %v988_v24 = vmul.f32 %v987_v2, %v1878_v32  ;;  %v2068_v32 = vld [vmem:[#allocation16_spill] sm:$0xff] }
  0xfe   :  { %v1267_v16 = vpop.eup %1266  ;;  %v997_v33 = vmax.f32 %v996_v58, 0.0  ;;  %v1006_v20 = vsub.f32 1.0, %v1005_v14  ;;  %v1015_v8 = vand.u32 2147483647, %v1014_v12  ;;  %v2066_v9 = vand.u32 2147483648, %v1718_v63 }
  0xff   :  { %v407_v35 = vmul.f32 0.6931472, %v2067_v17  ;;  %v557_v56 = vadd.f32 %v556_v0, %v547_v19  ;;  %v1079_v39 = vadd.f32 %v1265_v42, %v1075_v57  ;;  %v633_v29 = vmul.f32 0.6931472, %v1257_v13  ;;  %v2070_v13 = vld [vmem:[#allocation13_spill] sm:$0xff] }
 0x100   :  { %v165_v62 = vsel %vm163_vm3, %v2066_v9, %v162_v30  ;;  %v773_v46 = vadd.f32 %v772_v25, %v763_v34  ;;  %v782_v31 = vmul.f32 %v781_v28, %v1747_v59  ;;  %v791_v11 = vmax.f32 %v790_v37, 0.0  ;;  %v1269_v6 = vpop.eup %1268 }
 0x101   :  { %vm69_vm4 = vcmp.gt.f32.partialorder %v68_v23, 0.0  ;;  %v341_v27 = vadd.f32 %v2068_v32, %v331_v60  ;;  %v1083_v3 = vadd.f32 %v1267_v16, %v1079_v39  ;;  %v989_v26 = vadd.f32 %v988_v24, %v979_v15 }
 0x102   :  { %v998_v44 = vmul.f32 %v997_v33, %v1888_v18  ;;  %v1007_v7 = vmax.f32 %v1006_v20, 0.0  ;;  %v1016_v63 = vsub.f32 1.0, %v1015_v8  ;;  %v166_v38 = vmul.f32 %v165_v62, %v68_v23 }
 0x103   :  { %v408_v10 = vadd.f32 %v407_v35, %v2069_v55  ;;  %v567_v41 = vadd.f32 %v566_v5, %v557_v56  ;;  %1270 = vlog2.f32 %v1083_v3  ;;  %v634_v47 = vadd.f32 %v633_v29, %v2070_v13 }
 0x104   :  { %v783_v52 = vadd.f32 %v782_v31, %v773_v46  ;;  %v792_v59 = vmul.f32 %v791_v11, %v1752_v21  ;;  %v859_v1 = vmul.f32 0.6931472, %v1269_v6  ;;  %v999_v53 = vadd.f32 %v998_v44, %v989_v26 }
 0x105   :  { %v1008_v49 = vmul.f32 %v1007_v7, %v1893_v48  ;;  %v1017_v36 = vmax.f32 %v1016_v63, 0.0  ;;  %v167_v50 = vsel %vm69_vm4, %v166_v38, 0.0  ;;  %v409_v18 = vsub.f32 %v408_v10, %v341_v27 }
 0x106   :  { %v635_v2 = vsub.f32 %v634_v47, %v567_v41  ;;  %v793_v58 = vadd.f32 %v792_v59, %v783_v52  ;;  %v860_v14 = vadd.f32 %v859_v1, %v1759_v54  ;;  %v169_v19 = vsel %vm168_vm5, %v167_v50, 0.0 }
 0x107   :  { %v1009_v12 = vadd.f32 %v1008_v49, %v999_v53  ;;  %v1018_v30 = vmul.f32 %v1017_v36, %v1907_v61  ;;  %v170_v42 = vrot.slane %v169_v19, 4 }
 0x108   :  { %v636_v0 = vadd.f32 %v635_v2, %v409_v18  ;;  %v861_v21 = vsub.f32 %v860_v14, %v793_v58 }
 0x109   :  { %v1019_v34 = vadd.f32 %v1018_v30, %v1009_v12  ;;  %v171_v28 = vadd.f32 %v170_v42, %v169_v19 }
 0x10a   :  { %v862_v45 = vadd.f32 %v861_v21, %v636_v0 }
 0x10b   :  { %v172_v22 = vrot.slane %v171_v28, 2 }
 0x10d   :  { %v1271_v40 = vpop.eup %1270  ;;  %v173_v51 = vadd.f32 %v172_v22, %v171_v28 }
 0x10e   :  { %v1085_v48 = vmul.f32 0.6931472, %v1271_v40 }
 0x10f   :  { %v174_v57 = vrot.slane %v173_v51, 1 }
 0x110   :  { %v1086_v25 = vadd.f32 %v1085_v48, %v1914_v43 }
 0x111   :  { %v175_v33 = vadd.f32 %v174_v57, %v173_v51 }
 0x112   :  { %v1087_v37 = vsub.f32 %v1086_v25, %v1019_v34 }
 0x114   :  { %v1088_v4 = vadd.f32 %v1087_v37, %v862_v45 }
 0x116   :  { %v1089_v60 = vmul.f32 %v1088_v4, %v68_v23 }
 0x118   :  { %v1090_v54 = vsel %vm69_vm4, %v1089_v60, 0.0 }
 0x119   :  { %v1091_v61 = vsel %vm168_vm5, %v1090_v54, 0.0 }
 0x11a   :  { %v1092_v5 = vrot.slane %v1091_v61, 4 }
 0x11c   :  { %v1093_v15 = vadd.f32 %v1092_v5, %v1091_v61 }
 0x11e   :  { %v1094_v16 = vrot.slane %v1093_v15, 2 }
 0x120   :  { %v1095_v24 = vadd.f32 %v1094_v16, %v1093_v15 }
 0x122   :  { %v1096_v20 = vrot.slane %v1095_v24, 1 }
 0x124   :  { %v1097_v43 = vadd.f32 %v1096_v20, %v1095_v24 }
 0x126   :  { %v1099_v8 = vsel %vm1098_vm6, %v175_v33, %v1097_v43 }
 0x127   :  { %1100 = vst [vmem:[#allocation7] sm:$0x3] %v1099_v8 }
 0x128   :  { %1327 = shalt.err (!%p1324_p6)
}
 0x129   :  { %s1328_s12 = scalar_lea.hbm %s2045_s2, 32 }
 0x12a   :  { %p1329_p7 = scmp.ne.s32.totalorder %s2045_s2, %s1328_s12  ;;  %p1332_p8 = scmp.lt.u32.totalorder %s1328_s12, %s2045_s2 }
 0x12c   :  { %p1334_p9 = pnand %p1332_p8, %p1329_p7 }
 0x12e   :  { %1337 = shalt.err (!%p1334_p9)
}
 0x12f   :  { %1110 = dma.vmem_to_hbm [thread:$0]  %s1108_s8, 32, %s2045_s2, [#allocation4]  }
 0x130   :  { %1342 = dma.done.wait [#allocation4], 32  }
 0x131   :  { %1343 = vsyncadd [#allocation4], 4294967264 }
 0x132   :  { %1114 = vsyncpa [#allocation3], 1 }
 0x133   :  { %1115 = vsyncpa [#allocation6], 1 }
 0x134   :  { %1116 = vsyncpa [#allocation4], 1 }

</bundles_post_ra>
